<compile_context>
chip_gen: v7x
topology: tpu7x:2x2x1
jax: 0.10.0
libtpu: 0.0.40
codegen_flags: <defaults>
</compile_context>

<pallas_src>
import math
from functools import partial

import jax
import jax.numpy as jnp
from jax.experimental import pallas as pl
from jax.experimental.pallas import tpu as pltpu

# ----------------------------- config (small) -------------------------------
D_MODEL = 32
N_LAYER = 2
VOCAB = 48                       # already multiple of pad_vocab_size_multiple=8
LANE = 128                       # lane-dense width for padded outputs/weights
V_PAD = LANE                     # padded logits width (sliced back to VOCAB)
D_STATE = 16
D_CONV = 4
EXPAND = 2
D_INNER = EXPAND * D_MODEL       # 64
DT_RANK = math.ceil(D_MODEL / 16)  # 2
EPS = 1e-5
BATCH = 2
SEQLEN = 8


# ------------------------------ fused kernel --------------------------------
def fused_forward_kernel(ids_ref, emb_ref, emb_t_ref,
                         ln_w_ref, ln_b_ref,
                         in_w_ref, conv_w_ref, conv_b_ref,
                         xproj_w_ref, dt_b_ref,
                         a_neg_ref, d_ref, out_w_ref,
                         lnf_w_ref, lnf_b_ref,
                         logits_ref,
                         *, B, L, V, d_inner, d_state, d_conv, n_layer, eps):
    BL = B * L
    f32 = jnp.float32
    bf16 = jnp.bfloat16

    def layernorm(x, w, b):
        mu = jnp.mean(x, axis=-1, keepdims=True)
        var = jnp.mean((x - mu) ** 2, axis=-1, keepdims=True)
        return (x - mu) * jax.lax.rsqrt(var + eps) * w + b

    # ---- embedding gather as a one-hot bf16 matmul (stays on MXU) ----------
    ids = ids_ref[...]                                             # (BL, 1) int32
    vocab_iota = jax.lax.broadcasted_iota(jnp.int32, (BL, V), 1)
    onehot = jnp.where(vocab_iota == ids, 1.0, 0.0).astype(bf16)   # (BL, V)
    h = jnp.dot(onehot, emb_ref[...], preferred_element_type=f32)  # (BL, dm)

    res = h                               # layer 0: residual = hidden_states
    # within-sequence position of every flattened row; causal-conv masks are
    # layer-invariant so hoist them out of the layer loop
    pos = jax.lax.broadcasted_iota(jnp.int32, (B, L, d_inner), 1).reshape(BL, d_inner)
    conv_masks = [pos >= s for s in range(1, d_conv)]

    for li in range(n_layer):             # static unroll; weights stay resident
        if li > 0:
            res = h + res                 # prenorm residual add
        xn = layernorm(res, ln_w_ref[li], ln_b_ref[li])

        # ---- merged in_proj: one (BL,dm)@(dm,2*d_inner) bf16 matmul --------
        xz = jnp.dot(xn.astype(bf16), in_w_ref[li],
                     preferred_element_type=f32)                   # (BL, 2*d_inner)
        x = xz[:, :d_inner]
        z = xz[:, d_inner:]

        # ---- causal depthwise conv1d along L (+bias): XLU rolls + masks ----
        conv_w = conv_w_ref[li]                                    # (d_conv, d_inner)
        xc = conv_b_ref[li] + conv_w[d_conv - 1:d_conv, :] * x     # tap with shift 0
        for s in range(1, d_conv):
            k = d_conv - 1 - s                                     # tap index for shift s
            rolled = pltpu.roll(x, shift=s, axis=0)                # sublane rotation
            xc = xc + conv_w[k:k + 1, :] * jnp.where(conv_masks[s - 1], rolled, 0.0)
        x_act = jax.nn.silu(xc)                                    # (BL, d_inner)

        # ---- merged x_proj (+ folded dt up-projection): one bf16 matmul ----
        #      columns: [0:d_inner]=dt_pre, [d_inner:+ds]=B, [+ds:+2ds]=C, rest pad
        xdbl = jnp.dot(x_act.astype(bf16), xproj_w_ref[li],
                       preferred_element_type=f32)                 # (BL, 128)
        dt = jax.nn.softplus(xdbl[:, :d_inner] + dt_b_ref[li])     # (BL, d_inner)
        Bm = xdbl[:, d_inner:d_inner + d_state]                    # (BL, d_state)
        Cm = xdbl[:, d_inner + d_state:d_inner + 2 * d_state]      # (BL, d_state)

        # ---- selective scan: vectorized dA / dBx; per-step C contraction ---
        A_neg = a_neg_ref[li]                                      # (d_state, d_inner)
        dA = jnp.exp(dt.reshape(B, L, 1, d_inner) * A_neg[None, None])        # (B,L,ds,di)
        dBx = (dt * x_act).reshape(B, L, 1, d_inner) * Bm.reshape(B, L, d_state, 1)
        Cr = Cm.reshape(B, L, d_state, 1)
        hstate = jnp.zeros((B, d_state, d_inner), f32)
        ys = []
        for t in range(L):                                         # static unroll
            hstate = dA[:, t] * hstate + dBx[:, t]                 # serial 2-op chain
            ys.append(jnp.sum(hstate * Cr[:, t], axis=1))          # (B, d_inner)
        y = jnp.stack(ys, axis=1).reshape(BL, d_inner)

        # ---- skip, gate, out_proj ------------------------------------------
        y = (y + d_ref[li] * x_act) * jax.nn.silu(z)
        h = jnp.dot(y.astype(bf16), out_w_ref[li],
                    preferred_element_type=f32)                    # (BL, dm)

    # ---- final add + LayerNorm + tied lm_head (lane-dense padded output) ----
    res = h + res
    xn = layernorm(res, lnf_w_ref[...], lnf_b_ref[...])
    logits_ref[...] = jnp.dot(xn.astype(bf16), emb_t_ref[...],
                              preferred_element_type=f32)


# ------------------------------ wrapper --------------------------------------
def prepare_fused_params(params):
    """Stack per-layer weights along a leading N_LAYER axis, fuse/fold matmul
    weights (in_proj kept whole; x_proj B/C + folded dt projection concatenated
    into one lane-dense (d_inner,128) matrix), precompute -exp(A_log).T and the
    zero-padded emb.T, and cast all MXU operands to bf16."""
    layers = params['layers']
    bf16 = jnp.bfloat16

    def stack(fn, dtype=jnp.float32):
        return jnp.stack([fn(p) for p in layers], axis=0).astype(dtype)

    emb = params['emb']
    emb_t = jnp.zeros((D_MODEL, V_PAD), jnp.float32).at[:, :VOCAB].set(emb.T)

    def xproj_combined(p):
        # fold the dt up-projection (x_proj_dt @ dt_proj) at prep time
        dtp = jnp.dot(p['xproj_w'][:, :DT_RANK], p['dt_w'],
                      precision=jax.lax.Precision.HIGHEST)          # (d_inner, d_inner)
        Bw = p['xproj_w'][:, DT_RANK:DT_RANK + D_STATE]             # (d_inner, d_state)
        Cw = p['xproj_w'][:, DT_RANK + D_STATE:]                    # (d_inner, d_state)
        pad = jnp.zeros((D_INNER, LANE - D_INNER - 2 * D_STATE), jnp.float32)
        return jnp.concatenate([dtp, Bw, Cw, pad], axis=1)          # (d_inner, 128)

    return dict(
        emb=emb.astype(bf16),                                        # (V, dm)
        emb_t=emb_t.astype(bf16),                                    # (dm, V_PAD)
        ln_w=stack(lambda p: p['ln_w']),                             # (N, 1, dm)
        ln_b=stack(lambda p: p['ln_b']),
        in_w=stack(lambda p: p['in_w'], bf16),                       # (N, dm, 2*d_inner)
        conv_w=stack(lambda p: p['conv_w']),                         # (N, d_conv, d_inner)
        conv_b=stack(lambda p: p['conv_b']),                         # (N, 1, d_inner)
        xproj_w=stack(xproj_combined, bf16),                         # (N, d_inner, 128)
        dt_b=stack(lambda p: p['dt_b']),                             # (N, 1, d_inner)
        a_neg=stack(lambda p: -jnp.exp(p['A_log']).T),               # (N, d_state, d_inner)
        D=stack(lambda p: p['D']),                                   # (N, 1, d_inner)
        out_w=stack(lambda p: p['out_w'], bf16),                     # (N, d_inner, dm)
        lnf_w=params['ln_f_w'],
        lnf_b=params['ln_f_b'],
    )


def mamba_lm_forward(input_ids, fused):
    B, L = input_ids.shape
    ids = input_ids.reshape(B * L, 1).astype(jnp.int32)
    kern = partial(fused_forward_kernel, B=B, L=L, V=VOCAB,
                   d_inner=D_INNER, d_state=D_STATE, d_conv=D_CONV,
                   n_layer=N_LAYER, eps=EPS)
    # Single grid-less pallas_call: every operand is a full block in VMEM.
    logits_pad = pl.pallas_call(
        kern,
        out_shape=jax.ShapeDtypeStruct((B * L, V_PAD), jnp.float32),
    )(ids, fused['emb'], fused['emb_t'], fused['ln_w'], fused['ln_b'],
      fused['in_w'], fused['conv_w'], fused['conv_b'],
      fused['xproj_w'], fused['dt_b'], fused['a_neg'], fused['D'],
      fused['out_w'], fused['lnf_w'], fused['lnf_b'])
    return logits_pad[:, :VOCAB].reshape(B, L, VOCAB)


# --------------------------- deterministic init ------------------------------
def init_params(key):
    def nrm(k, shape, scale):
        return (scale * jax.random.normal(k, shape)).astype(jnp.float32)

    keys = jax.random.split(key, 2 + N_LAYER * 8)
    ki = iter(keys)
    emb = nrm(next(ki), (VOCAB, D_MODEL), 0.02)
    layers = []
    for _ in range(N_LAYER):
        dt = jnp.exp(jax.random.uniform(next(ki), (D_INNER,), jnp.float32)
                     * (math.log(0.1) - math.log(0.001)) + math.log(0.001))
        dt = jnp.maximum(dt, 1e-4)
        dt_b = dt + jnp.log(-jnp.expm1(-dt))       # inverse softplus
        layers.append(dict(
            ln_w=jnp.ones((1, D_MODEL), jnp.float32),
            ln_b=jnp.zeros((1, D_MODEL), jnp.float32),
            in_w=nrm(next(ki), (D_MODEL, 2 * D_INNER), 0.05),
            conv_w=nrm(next(ki), (D_CONV, D_INNER), 0.2),
            conv_b=nrm(next(ki), (1, D_INNER), 0.1),
            xproj_w=nrm(next(ki), (D_INNER, DT_RANK + 2 * D_STATE), 0.05),
            dt_w=nrm(next(ki), (DT_RANK, D_INNER), 0.3),
            dt_b=dt_b.reshape(1, D_INNER).astype(jnp.float32),
            A_log=jnp.log(jnp.tile(
                jnp.arange(1, D_STATE + 1, dtype=jnp.float32)[None, :],
                (D_INNER, 1))),
            D=jnp.ones((1, D_INNER), jnp.float32),
            out_w=nrm(next(ki), (D_INNER, D_MODEL), 0.05) / math.sqrt(N_LAYER),
        ))
        # burn the unused key so each layer consumes a fixed number
        next(ki)
    return dict(emb=emb, layers=layers,
                ln_f_w=jnp.ones((1, D_MODEL), jnp.float32),
                ln_f_b=jnp.zeros((1, D_MODEL), jnp.float32))


# ------------------------------ pure-JAX reference ---------------------------
def reference_forward(input_ids, params):
    def layernorm(x, w, b):
        mu = jnp.mean(x, axis=-1, keepdims=True)
        var = jnp.mean((x - mu) ** 2, axis=-1, keepdims=True)
        return (x - mu) / jnp.sqrt(var + EPS) * w + b

    emb = params['emb']
    h = emb[input_ids]
    r = None
    B, L, _ = h.shape
    for p in params['layers']:
        r = h if r is None else h + r
        xn = layernorm(r, p['ln_w'][0], p['ln_b'][0])
        xz = xn @ p['in_w']
        x, z = xz[..., :D_INNER], xz[..., D_INNER:]
        xpad = jnp.pad(x, ((0, 0), (D_CONV - 1, 0), (0, 0)))
        xc = p['conv_b'][0]
        for k in range(D_CONV):
            xc = xc + p['conv_w'][k] * xpad[:, k:k + L, :]
        x = jax.nn.silu(xc)
        x_dbl = x @ p['xproj_w']
        dt_low = x_dbl[..., :DT_RANK]
        Bm = x_dbl[..., DT_RANK:DT_RANK + D_STATE]
        Cm = x_dbl[..., DT_RANK + D_STATE:]
        dt = jax.nn.softplus(dt_low @ p['dt_w'] + p['dt_b'][0])
        A = -jnp.exp(p['A_log'])                   # (d_inner, d_state)

        def scan_fn(hs, inp):
            dt_t, x_t, b_t, c_t = inp
            dA = jnp.exp(dt_t[..., None] * A)
            dBx = dt_t[..., None] * b_t[:, None, :] * x_t[..., None]
            hs = dA * hs + dBx
            y_t = jnp.einsum('bdn,bn->bd', hs, c_t)
            return hs, y_t

        h0 = jnp.zeros((B, D_INNER, D_STATE), jnp.float32)
        xs = (jnp.moveaxis(dt, 1, 0), jnp.moveaxis(x, 1, 0),
              jnp.moveaxis(Bm, 1, 0), jnp.moveaxis(Cm, 1, 0))
        _, ys = jax.lax.scan(scan_fn, h0, xs)
        y = jnp.moveaxis(ys, 0, 1)
        y = y + p['D'][0] * x
        y = y * jax.nn.silu(z)
        h = y @ p['out_w']
    r = h + r
    xn = layernorm(r, params['ln_f_w'][0], params['ln_f_b'][0])
    return xn @ emb.T


# --------------------------------- main --------------------------------------
if __name__ == "__main__":
    key = jax.random.PRNGKey(0)
    kp, kx = jax.random.split(key)
    params = init_params(kp)
    input_ids = jax.random.randint(kx, (BATCH, SEQLEN), 0, VOCAB,
                                   dtype=jnp.int32)

    # Kernel runs with bf16 MXU operands / f32 accumulation (no forced HIGHEST).
    fused = prepare_fused_params(params)
    logits = mamba_lm_forward(input_ids, fused)
    logits = jax.block_until_ready(logits)

    # Full-f32 reference for the correctness check.
    with jax.default_matmul_precision("float32"):
        ref = reference_forward(input_ids, params)
        ref = jax.block_until_ready(ref)

    assert logits.shape == (BATCH, SEQLEN, VOCAB)
    max_err = float(jnp.max(jnp.abs(logits - ref)))
    rel = max_err / (float(jnp.max(jnp.abs(ref))) + 1e-9)
    if rel < 2e-2:
        print("KERNEL_OK")
    else:
        raise SystemExit(f"mismatch: max_abs_err={max_err}, rel={rel}")
</pallas_src>

<mosaic_0001>
module attributes {stable_mosaic.version = 11 : i64} {
  func.func @fused_forward_kernel(%arg0: memref<16x1xi32, #tpu.memory_space<vmem>>, %arg1: memref<48x32xbf16, #tpu.memory_space<vmem>>, %arg2: memref<32x128xbf16, #tpu.memory_space<vmem>>, %arg3: memref<2x1x32xf32, #tpu.memory_space<vmem>>, %arg4: memref<2x1x32xf32, #tpu.memory_space<vmem>>, %arg5: memref<2x32x128xbf16, #tpu.memory_space<vmem>>, %arg6: memref<2x4x64xf32, #tpu.memory_space<vmem>>, %arg7: memref<2x1x64xf32, #tpu.memory_space<vmem>>, %arg8: memref<2x64x128xbf16, #tpu.memory_space<vmem>>, %arg9: memref<2x1x64xf32, #tpu.memory_space<vmem>>, %arg10: memref<2x16x64xf32, #tpu.memory_space<vmem>>, %arg11: memref<2x1x64xf32, #tpu.memory_space<vmem>>, %arg12: memref<2x64x32xbf16, #tpu.memory_space<vmem>>, %arg13: memref<1x32xf32, #tpu.memory_space<vmem>>, %arg14: memref<1x32xf32, #tpu.memory_space<vmem>>, %arg15: memref<16x128xf32, #tpu.memory_space<vmem>>) attributes {dimension_semantics = [], scalar_prefetch = 0 : i64, scratch_operands = 0 : i64, tpu.core_type = #tpu.core_type<tc>} {
    %c0 = arith.constant 0 : index
    %c0_0 = arith.constant 0 : index
    %0 = vector.load %arg0[%c0, %c0_0] : memref<16x1xi32, #tpu.memory_space<vmem>>, vector<16x1xi32>
    %1 = tpu.iota {dimensions = array<i32: 1>} : vector<16x48xi32>
    %2 = vector.broadcast %0 : vector<16x1xi32> to vector<16x48xi32>
    %3 = arith.cmpi eq, %1, %2 : vector<16x48xi32>
    %cst = arith.constant 1.000000e+00 : f32
    %cst_1 = arith.constant 0.000000e+00 : f32
    %4 = vector.broadcast %cst : f32 to vector<16x48xf32>
    %5 = vector.broadcast %cst_1 : f32 to vector<16x48xf32>
    %6 = arith.select %3, %4, %5 : vector<16x48xi1>, vector<16x48xf32>
    %7 = arith.truncf %6 : vector<16x48xf32> to vector<16x48xbf16>
    %c0_2 = arith.constant 0 : index
    %c0_3 = arith.constant 0 : index
    %8 = vector.load %arg1[%c0_2, %c0_3] : memref<48x32xbf16, #tpu.memory_space<vmem>>, vector<48x32xbf16>
    %cst_4 = arith.constant dense<0.000000e+00> : vector<16x32xf32>
    %9 = tpu.matmul %7, %8, %cst_4 {dimension_numbers = #tpu.dot_dimension_numbers<[1], [0], [0], [1], [0, 0, 1, 1], [], []>} : vector<16x48xbf16>, vector<48x32xbf16>, vector<16x32xf32> -> vector<16x32xf32>
    %10 = tpu.iota {dimensions = array<i32: 1>} : vector<2x8x64xi32>
    %11 = vector.shape_cast %10 : vector<2x8x64xi32> to vector<16x64xi32>
    %c1_i32 = arith.constant 1 : i32
    %12 = vector.broadcast %c1_i32 : i32 to vector<16x64xi32>
    %13 = arith.cmpi sge, %11, %12 : vector<16x64xi32>
    %c2_i32 = arith.constant 2 : i32
    %14 = vector.broadcast %c2_i32 : i32 to vector<16x64xi32>
    %15 = arith.cmpi sge, %11, %14 : vector<16x64xi32>
    %c3_i32 = arith.constant 3 : i32
    %16 = vector.broadcast %c3_i32 : i32 to vector<16x64xi32>
    %17 = arith.cmpi sge, %11, %16 : vector<16x64xi32>
    %c0_5 = arith.constant 0 : index
    %c0_6 = arith.constant 0 : index
    %c0_7 = arith.constant 0 : index
    %18 = vector.load %arg3[%c0_5, %c0_6, %c0_7] : memref<2x1x32xf32, #tpu.memory_space<vmem>>, vector<1x1x32xf32>
    %19 = vector.shape_cast %18 : vector<1x1x32xf32> to vector<1x32xf32>
    %c0_8 = arith.constant 0 : index
    %c0_9 = arith.constant 0 : index
    %c0_10 = arith.constant 0 : index
    %20 = vector.load %arg4[%c0_8, %c0_9, %c0_10] : memref<2x1x32xf32, #tpu.memory_space<vmem>>, vector<1x1x32xf32>
    %21 = vector.shape_cast %20 : vector<1x1x32xf32> to vector<1x32xf32>
    %cst_11 = arith.constant dense<0.000000e+00> : vector<16xf32>
    %22 = vector.multi_reduction <add>, %9, %cst_11 [1] : vector<16x32xf32> to vector<16xf32>
    %23 = vector.shape_cast %22 : vector<16xf32> to vector<16x1xf32>
    %cst_12 = arith.constant 3.200000e+01 : f32
    %24 = vector.broadcast %cst_12 : f32 to vector<16x1xf32>
    %25 = arith.divf %23, %24 : vector<16x1xf32>
    %26 = vector.broadcast %25 : vector<16x1xf32> to vector<16x32xf32>
    %27 = arith.subf %9, %26 : vector<16x32xf32>
    %28 = arith.mulf %27, %27 : vector<16x32xf32>
    %cst_13 = arith.constant dense<0.000000e+00> : vector<16xf32>
    %29 = vector.multi_reduction <add>, %28, %cst_13 [1] : vector<16x32xf32> to vector<16xf32>
    %30 = vector.shape_cast %29 : vector<16xf32> to vector<16x1xf32>
    %cst_14 = arith.constant 3.200000e+01 : f32
    %31 = vector.broadcast %cst_14 : f32 to vector<16x1xf32>
    %32 = arith.divf %30, %31 : vector<16x1xf32>
    %33 = vector.broadcast %25 : vector<16x1xf32> to vector<16x32xf32>
    %34 = arith.subf %9, %33 : vector<16x32xf32>
    %cst_15 = arith.constant 9.99999974E-6 : f32
    %35 = vector.broadcast %cst_15 : f32 to vector<16x1xf32>
    %36 = arith.addf %32, %35 : vector<16x1xf32>
    %37 = math.rsqrt %36 : vector<16x1xf32>
    %38 = vector.broadcast %37 : vector<16x1xf32> to vector<16x32xf32>
    %39 = arith.mulf %34, %38 : vector<16x32xf32>
    %40 = vector.broadcast %19 : vector<1x32xf32> to vector<16x32xf32>
    %41 = arith.mulf %39, %40 : vector<16x32xf32>
    %42 = vector.broadcast %21 : vector<1x32xf32> to vector<16x32xf32>
    %43 = arith.addf %41, %42 : vector<16x32xf32>
    %44 = arith.truncf %43 : vector<16x32xf32> to vector<16x32xbf16>
    %c0_16 = arith.constant 0 : index
    %c0_17 = arith.constant 0 : index
    %c0_18 = arith.constant 0 : index
    %45 = vector.load %arg5[%c0_16, %c0_17, %c0_18] : memref<2x32x128xbf16, #tpu.memory_space<vmem>>, vector<1x32x128xbf16>
    %46 = vector.shape_cast %45 : vector<1x32x128xbf16> to vector<32x128xbf16>
    %cst_19 = arith.constant dense<0.000000e+00> : vector<16x128xf32>
    %47 = tpu.matmul %44, %46, %cst_19 {dimension_numbers = #tpu.dot_dimension_numbers<[1], [0], [0], [1], [0, 0, 1, 1], [], []>} : vector<16x32xbf16>, vector<32x128xbf16>, vector<16x128xf32> -> vector<16x128xf32>
    %48 = vector.extract_strided_slice %47 {offsets = [0, 0], sizes = [16, 64], strides = [1, 1]} : vector<16x128xf32> to vector<16x64xf32>
    %49 = vector.extract_strided_slice %47 {offsets = [0, 64], sizes = [16, 64], strides = [1, 1]} : vector<16x128xf32> to vector<16x64xf32>
    %c0_20 = arith.constant 0 : index
    %c0_21 = arith.constant 0 : index
    %c0_22 = arith.constant 0 : index
    %50 = vector.load %arg6[%c0_20, %c0_21, %c0_22] : memref<2x4x64xf32, #tpu.memory_space<vmem>>, vector<1x4x64xf32>
    %51 = vector.shape_cast %50 : vector<1x4x64xf32> to vector<4x64xf32>
    %c0_23 = arith.constant 0 : index
    %c0_24 = arith.constant 0 : index
    %c0_25 = arith.constant 0 : index
    %52 = vector.load %arg7[%c0_23, %c0_24, %c0_25] : memref<2x1x64xf32, #tpu.memory_space<vmem>>, vector<1x1x64xf32>
    %53 = vector.shape_cast %52 : vector<1x1x64xf32> to vector<1x64xf32>
    %54 = vector.extract_strided_slice %51 {offsets = [3, 0], sizes = [1, 64], strides = [1, 1]} : vector<4x64xf32> to vector<1x64xf32>
    %55 = vector.broadcast %54 : vector<1x64xf32> to vector<16x64xf32>
    %56 = arith.mulf %55, %48 : vector<16x64xf32>
    %57 = vector.broadcast %53 : vector<1x64xf32> to vector<16x64xf32>
    %58 = arith.addf %57, %56 : vector<16x64xf32>
    %c1_i32_26 = arith.constant 1 : i32
    %59 = tpu.dynamic_rotate %48 by %c1_i32_26 dim 0 : vector<16x64xf32>, i32 -> vector<16x64xf32>
    %60 = vector.extract_strided_slice %51 {offsets = [2, 0], sizes = [1, 64], strides = [1, 1]} : vector<4x64xf32> to vector<1x64xf32>
    %cst_27 = arith.constant 0.000000e+00 : f32
    %61 = vector.broadcast %cst_27 : f32 to vector<16x64xf32>
    %62 = arith.select %13, %59, %61 : vector<16x64xi1>, vector<16x64xf32>
    %63 = vector.broadcast %60 : vector<1x64xf32> to vector<16x64xf32>
    %64 = arith.mulf %63, %62 : vector<16x64xf32>
    %65 = arith.addf %58, %64 : vector<16x64xf32>
    %c2_i32_28 = arith.constant 2 : i32
    %66 = tpu.dynamic_rotate %48 by %c2_i32_28 dim 0 : vector<16x64xf32>, i32 -> vector<16x64xf32>
    %67 = vector.extract_strided_slice %51 {offsets = [1, 0], sizes = [1, 64], strides = [1, 1]} : vector<4x64xf32> to vector<1x64xf32>
    %cst_29 = arith.constant 0.000000e+00 : f32
    %68 = vector.broadcast %cst_29 : f32 to vector<16x64xf32>
    %69 = arith.select %15, %66, %68 : vector<16x64xi1>, vector<16x64xf32>
    %70 = vector.broadcast %67 : vector<1x64xf32> to vector<16x64xf32>
    %71 = arith.mulf %70, %69 : vector<16x64xf32>
    %72 = arith.addf %65, %71 : vector<16x64xf32>
    %c3_i32_30 = arith.constant 3 : i32
    %73 = tpu.dynamic_rotate %48 by %c3_i32_30 dim 0 : vector<16x64xf32>, i32 -> vector<16x64xf32>
    %74 = vector.extract_strided_slice %51 {offsets = [0, 0], sizes = [1, 64], strides = [1, 1]} : vector<4x64xf32> to vector<1x64xf32>
    %cst_31 = arith.constant 0.000000e+00 : f32
    %75 = vector.broadcast %cst_31 : f32 to vector<16x64xf32>
    %76 = arith.select %17, %73, %75 : vector<16x64xi1>, vector<16x64xf32>
    %77 = vector.broadcast %74 : vector<1x64xf32> to vector<16x64xf32>
    %78 = arith.mulf %77, %76 : vector<16x64xf32>
    %79 = arith.addf %72, %78 : vector<16x64xf32>
    %80 = arith.negf %79 : vector<16x64xf32>
    %81 = math.exp %80 : vector<16x64xf32>
    %cst_32 = arith.constant 1.000000e+00 : f32
    %82 = vector.broadcast %cst_32 : f32 to vector<16x64xf32>
    %83 = arith.addf %82, %81 : vector<16x64xf32>
    %84 = arith.divf %82, %83 : vector<16x64xf32>
    %85 = arith.mulf %79, %84 : vector<16x64xf32>
    %86 = arith.truncf %85 : vector<16x64xf32> to vector<16x64xbf16>
    %c0_33 = arith.constant 0 : index
    %c0_34 = arith.constant 0 : index
    %c0_35 = arith.constant 0 : index
    %87 = vector.load %arg8[%c0_33, %c0_34, %c0_35] : memref<2x64x128xbf16, #tpu.memory_space<vmem>>, vector<1x64x128xbf16>
    %88 = vector.shape_cast %87 : vector<1x64x128xbf16> to vector<64x128xbf16>
    %cst_36 = arith.constant dense<0.000000e+00> : vector<16x128xf32>
    %89 = tpu.matmul %86, %88, %cst_36 {dimension_numbers = #tpu.dot_dimension_numbers<[1], [0], [0], [1], [0, 0, 1, 1], [], []>} : vector<16x64xbf16>, vector<64x128xbf16>, vector<16x128xf32> -> vector<16x128xf32>
    %90 = vector.extract_strided_slice %89 {offsets = [0, 0], sizes = [16, 64], strides = [1, 1]} : vector<16x128xf32> to vector<16x64xf32>
    %c0_37 = arith.constant 0 : index
    %c0_38 = arith.constant 0 : index
    %c0_39 = arith.constant 0 : index
    %91 = vector.load %arg9[%c0_37, %c0_38, %c0_39] : memref<2x1x64xf32, #tpu.memory_space<vmem>>, vector<1x1x64xf32>
    %92 = vector.shape_cast %91 : vector<1x1x64xf32> to vector<1x64xf32>
    %93 = vector.broadcast %92 : vector<1x64xf32> to vector<16x64xf32>
    %94 = arith.addf %90, %93 : vector<16x64xf32>
    %cst_40 = arith.constant 0.000000e+00 : f32
    %95 = vector.broadcast %cst_40 : f32 to vector<16x64xf32>
    %96 = arith.maximumf %94, %95 : vector<16x64xf32>
    %97 = vector.broadcast %cst_40 : f32 to vector<16x64xf32>
    %98 = arith.subf %94, %97 : vector<16x64xf32>
    %99 = arith.cmpf one, %98, %98 : vector<16x64xf32>
    %100 = vector.broadcast %cst_40 : f32 to vector<16x64xf32>
    %101 = arith.addf %94, %100 : vector<16x64xf32>
    %102 = math.absf %98 : vector<16x64xf32>
    %cst_41 = arith.constant 0.000000e+00 : f32
    %103 = vector.broadcast %cst_41 : f32 to vector<16x64xf32>
    %104 = arith.subf %103, %102 : vector<16x64xf32>
    %105 = math.exp %104 : vector<16x64xf32>
    %106 = math.log1p %105 : vector<16x64xf32>
    %107 = arith.addf %96, %106 : vector<16x64xf32>
    %108 = arith.select %99, %101, %107 : vector<16x64xi1>, vector<16x64xf32>
    %109 = vector.extract_strided_slice %89 {offsets = [0, 64], sizes = [16, 16], strides = [1, 1]} : vector<16x128xf32> to vector<16x16xf32>
    %110 = vector.extract_strided_slice %89 {offsets = [0, 80], sizes = [16, 16], strides = [1, 1]} : vector<16x128xf32> to vector<16x16xf32>
    %c0_42 = arith.constant 0 : index
    %c0_43 = arith.constant 0 : index
    %c0_44 = arith.constant 0 : index
    %111 = vector.load %arg10[%c0_42, %c0_43, %c0_44] : memref<2x16x64xf32, #tpu.memory_space<vmem>>, vector<1x16x64xf32>
    %112 = vector.shape_cast %111 : vector<1x16x64xf32> to vector<16x64xf32>
    %113 = vector.shape_cast %108 : vector<16x64xf32> to vector<2x8x1x64xf32>
    %114 = vector.shape_cast %112 : vector<16x64xf32> to vector<1x1x16x64xf32>
    %115 = vector.broadcast %113 : vector<2x8x1x64xf32> to vector<2x8x16x64xf32>
    %116 = vector.broadcast %114 : vector<1x1x16x64xf32> to vector<2x8x16x64xf32>
    %117 = arith.mulf %115, %116 : vector<2x8x16x64xf32>
    %118 = math.exp %117 : vector<2x8x16x64xf32>
    %119 = arith.mulf %108, %85 : vector<16x64xf32>
    %120 = vector.shape_cast %119 : vector<16x64xf32> to vector<2x8x1x64xf32>
    %121 = vector.shape_cast %109 : vector<16x16xf32> to vector<2x8x16x1xf32>
    %122 = vector.broadcast %120 : vector<2x8x1x64xf32> to vector<2x8x16x64xf32>
    %123 = vector.broadcast %121 : vector<2x8x16x1xf32> to vector<2x8x16x64xf32>
    %124 = arith.mulf %122, %123 : vector<2x8x16x64xf32>
    %125 = vector.shape_cast %110 : vector<16x16xf32> to vector<2x8x16x1xf32>
    %cst_45 = arith.constant 0.000000e+00 : f32
    %126 = vector.broadcast %cst_45 : f32 to vector<2x16x64xf32>
    %127 = vector.extract_strided_slice %118 {offsets = [0, 0, 0, 0], sizes = [2, 1, 16, 64], strides = [1, 1, 1, 1]} : vector<2x8x16x64xf32> to vector<2x1x16x64xf32>
    %128 = vector.shape_cast %127 : vector<2x1x16x64xf32> to vector<2x16x64xf32>
    %129 = arith.mulf %128, %126 : vector<2x16x64xf32>
    %130 = vector.extract_strided_slice %124 {offsets = [0, 0, 0, 0], sizes = [2, 1, 16, 64], strides = [1, 1, 1, 1]} : vector<2x8x16x64xf32> to vector<2x1x16x64xf32>
    %131 = vector.shape_cast %130 : vector<2x1x16x64xf32> to vector<2x16x64xf32>
    %132 = arith.addf %129, %131 : vector<2x16x64xf32>
    %133 = vector.extract_strided_slice %125 {offsets = [0, 0, 0, 0], sizes = [2, 1, 16, 1], strides = [1, 1, 1, 1]} : vector<2x8x16x1xf32> to vector<2x1x16x1xf32>
    %134 = vector.shape_cast %133 : vector<2x1x16x1xf32> to vector<2x16x1xf32>
    %135 = vector.broadcast %134 : vector<2x16x1xf32> to vector<2x16x64xf32>
    %136 = arith.mulf %132, %135 : vector<2x16x64xf32>
    %cst_46 = arith.constant dense<0.000000e+00> : vector<2x64xf32>
    %137 = vector.multi_reduction <add>, %136, %cst_46 [1] : vector<2x16x64xf32> to vector<2x64xf32>
    %138 = vector.extract_strided_slice %118 {offsets = [0, 1, 0, 0], sizes = [2, 1, 16, 64], strides = [1, 1, 1, 1]} : vector<2x8x16x64xf32> to vector<2x1x16x64xf32>
    %139 = vector.shape_cast %138 : vector<2x1x16x64xf32> to vector<2x16x64xf32>
    %140 = arith.mulf %139, %132 : vector<2x16x64xf32>
    %141 = vector.extract_strided_slice %124 {offsets = [0, 1, 0, 0], sizes = [2, 1, 16, 64], strides = [1, 1, 1, 1]} : vector<2x8x16x64xf32> to vector<2x1x16x64xf32>
    %142 = vector.shape_cast %141 : vector<2x1x16x64xf32> to vector<2x16x64xf32>
    %143 = arith.addf %140, %142 : vector<2x16x64xf32>
    %144 = vector.extract_strided_slice %125 {offsets = [0, 1, 0, 0], sizes = [2, 1, 16, 1], strides = [1, 1, 1, 1]} : vector<2x8x16x1xf32> to vector<2x1x16x1xf32>
    %145 = vector.shape_cast %144 : vector<2x1x16x1xf32> to vector<2x16x1xf32>
    %146 = vector.broadcast %145 : vector<2x16x1xf32> to vector<2x16x64xf32>
    %147 = arith.mulf %143, %146 : vector<2x16x64xf32>
    %cst_47 = arith.constant dense<0.000000e+00> : vector<2x64xf32>
    %148 = vector.multi_reduction <add>, %147, %cst_47 [1] : vector<2x16x64xf32> to vector<2x64xf32>
    %149 = vector.extract_strided_slice %118 {offsets = [0, 2, 0, 0], sizes = [2, 1, 16, 64], strides = [1, 1, 1, 1]} : vector<2x8x16x64xf32> to vector<2x1x16x64xf32>
    %150 = vector.shape_cast %149 : vector<2x1x16x64xf32> to vector<2x16x64xf32>
    %151 = arith.mulf %150, %143 : vector<2x16x64xf32>
    %152 = vector.extract_strided_slice %124 {offsets = [0, 2, 0, 0], sizes = [2, 1, 16, 64], strides = [1, 1, 1, 1]} : vector<2x8x16x64xf32> to vector<2x1x16x64xf32>
    %153 = vector.shape_cast %152 : vector<2x1x16x64xf32> to vector<2x16x64xf32>
    %154 = arith.addf %151, %153 : vector<2x16x64xf32>
    %155 = vector.extract_strided_slice %125 {offsets = [0, 2, 0, 0], sizes = [2, 1, 16, 1], strides = [1, 1, 1, 1]} : vector<2x8x16x1xf32> to vector<2x1x16x1xf32>
    %156 = vector.shape_cast %155 : vector<2x1x16x1xf32> to vector<2x16x1xf32>
    %157 = vector.broadcast %156 : vector<2x16x1xf32> to vector<2x16x64xf32>
    %158 = arith.mulf %154, %157 : vector<2x16x64xf32>
    %cst_48 = arith.constant dense<0.000000e+00> : vector<2x64xf32>
    %159 = vector.multi_reduction <add>, %158, %cst_48 [1] : vector<2x16x64xf32> to vector<2x64xf32>
    %160 = vector.extract_strided_slice %118 {offsets = [0, 3, 0, 0], sizes = [2, 1, 16, 64], strides = [1, 1, 1, 1]} : vector<2x8x16x64xf32> to vector<2x1x16x64xf32>
    %161 = vector.shape_cast %160 : vector<2x1x16x64xf32> to vector<2x16x64xf32>
    %162 = arith.mulf %161, %154 : vector<2x16x64xf32>
    %163 = vector.extract_strided_slice %124 {offsets = [0, 3, 0, 0], sizes = [2, 1, 16, 64], strides = [1, 1, 1, 1]} : vector<2x8x16x64xf32> to vector<2x1x16x64xf32>
    %164 = vector.shape_cast %163 : vector<2x1x16x64xf32> to vector<2x16x64xf32>
    %165 = arith.addf %162, %164 : vector<2x16x64xf32>
    %166 = vector.extract_strided_slice %125 {offsets = [0, 3, 0, 0], sizes = [2, 1, 16, 1], strides = [1, 1, 1, 1]} : vector<2x8x16x1xf32> to vector<2x1x16x1xf32>
    %167 = vector.shape_cast %166 : vector<2x1x16x1xf32> to vector<2x16x1xf32>
    %168 = vector.broadcast %167 : vector<2x16x1xf32> to vector<2x16x64xf32>
    %169 = arith.mulf %165, %168 : vector<2x16x64xf32>
    %cst_49 = arith.constant dense<0.000000e+00> : vector<2x64xf32>
    %170 = vector.multi_reduction <add>, %169, %cst_49 [1] : vector<2x16x64xf32> to vector<2x64xf32>
    %171 = vector.extract_strided_slice %118 {offsets = [0, 4, 0, 0], sizes = [2, 1, 16, 64], strides = [1, 1, 1, 1]} : vector<2x8x16x64xf32> to vector<2x1x16x64xf32>
    %172 = vector.shape_cast %171 : vector<2x1x16x64xf32> to vector<2x16x64xf32>
    %173 = arith.mulf %172, %165 : vector<2x16x64xf32>
    %174 = vector.extract_strided_slice %124 {offsets = [0, 4, 0, 0], sizes = [2, 1, 16, 64], strides = [1, 1, 1, 1]} : vector<2x8x16x64xf32> to vector<2x1x16x64xf32>
    %175 = vector.shape_cast %174 : vector<2x1x16x64xf32> to vector<2x16x64xf32>
    %176 = arith.addf %173, %175 : vector<2x16x64xf32>
    %177 = vector.extract_strided_slice %125 {offsets = [0, 4, 0, 0], sizes = [2, 1, 16, 1], strides = [1, 1, 1, 1]} : vector<2x8x16x1xf32> to vector<2x1x16x1xf32>
    %178 = vector.shape_cast %177 : vector<2x1x16x1xf32> to vector<2x16x1xf32>
    %179 = vector.broadcast %178 : vector<2x16x1xf32> to vector<2x16x64xf32>
    %180 = arith.mulf %176, %179 : vector<2x16x64xf32>
    %cst_50 = arith.constant dense<0.000000e+00> : vector<2x64xf32>
    %181 = vector.multi_reduction <add>, %180, %cst_50 [1] : vector<2x16x64xf32> to vector<2x64xf32>
    %182 = vector.extract_strided_slice %118 {offsets = [0, 5, 0, 0], sizes = [2, 1, 16, 64], strides = [1, 1, 1, 1]} : vector<2x8x16x64xf32> to vector<2x1x16x64xf32>
    %183 = vector.shape_cast %182 : vector<2x1x16x64xf32> to vector<2x16x64xf32>
    %184 = arith.mulf %183, %176 : vector<2x16x64xf32>
    %185 = vector.extract_strided_slice %124 {offsets = [0, 5, 0, 0], sizes = [2, 1, 16, 64], strides = [1, 1, 1, 1]} : vector<2x8x16x64xf32> to vector<2x1x16x64xf32>
    %186 = vector.shape_cast %185 : vector<2x1x16x64xf32> to vector<2x16x64xf32>
    %187 = arith.addf %184, %186 : vector<2x16x64xf32>
    %188 = vector.extract_strided_slice %125 {offsets = [0, 5, 0, 0], sizes = [2, 1, 16, 1], strides = [1, 1, 1, 1]} : vector<2x8x16x1xf32> to vector<2x1x16x1xf32>
    %189 = vector.shape_cast %188 : vector<2x1x16x1xf32> to vector<2x16x1xf32>
    %190 = vector.broadcast %189 : vector<2x16x1xf32> to vector<2x16x64xf32>
    %191 = arith.mulf %187, %190 : vector<2x16x64xf32>
    %cst_51 = arith.constant dense<0.000000e+00> : vector<2x64xf32>
    %192 = vector.multi_reduction <add>, %191, %cst_51 [1] : vector<2x16x64xf32> to vector<2x64xf32>
    %193 = vector.extract_strided_slice %118 {offsets = [0, 6, 0, 0], sizes = [2, 1, 16, 64], strides = [1, 1, 1, 1]} : vector<2x8x16x64xf32> to vector<2x1x16x64xf32>
    %194 = vector.shape_cast %193 : vector<2x1x16x64xf32> to vector<2x16x64xf32>
    %195 = arith.mulf %194, %187 : vector<2x16x64xf32>
    %196 = vector.extract_strided_slice %124 {offsets = [0, 6, 0, 0], sizes = [2, 1, 16, 64], strides = [1, 1, 1, 1]} : vector<2x8x16x64xf32> to vector<2x1x16x64xf32>
    %197 = vector.shape_cast %196 : vector<2x1x16x64xf32> to vector<2x16x64xf32>
    %198 = arith.addf %195, %197 : vector<2x16x64xf32>
    %199 = vector.extract_strided_slice %125 {offsets = [0, 6, 0, 0], sizes = [2, 1, 16, 1], strides = [1, 1, 1, 1]} : vector<2x8x16x1xf32> to vector<2x1x16x1xf32>
    %200 = vector.shape_cast %199 : vector<2x1x16x1xf32> to vector<2x16x1xf32>
    %201 = vector.broadcast %200 : vector<2x16x1xf32> to vector<2x16x64xf32>
    %202 = arith.mulf %198, %201 : vector<2x16x64xf32>
    %cst_52 = arith.constant dense<0.000000e+00> : vector<2x64xf32>
    %203 = vector.multi_reduction <add>, %202, %cst_52 [1] : vector<2x16x64xf32> to vector<2x64xf32>
    %204 = vector.extract_strided_slice %118 {offsets = [0, 7, 0, 0], sizes = [2, 1, 16, 64], strides = [1, 1, 1, 1]} : vector<2x8x16x64xf32> to vector<2x1x16x64xf32>
    %205 = vector.shape_cast %204 : vector<2x1x16x64xf32> to vector<2x16x64xf32>
    %206 = arith.mulf %205, %198 : vector<2x16x64xf32>
    %207 = vector.extract_strided_slice %124 {offsets = [0, 7, 0, 0], sizes = [2, 1, 16, 64], strides = [1, 1, 1, 1]} : vector<2x8x16x64xf32> to vector<2x1x16x64xf32>
    %208 = vector.shape_cast %207 : vector<2x1x16x64xf32> to vector<2x16x64xf32>
    %209 = arith.addf %206, %208 : vector<2x16x64xf32>
    %210 = vector.extract_strided_slice %125 {offsets = [0, 7, 0, 0], sizes = [2, 1, 16, 1], strides = [1, 1, 1, 1]} : vector<2x8x16x1xf32> to vector<2x1x16x1xf32>
    %211 = vector.shape_cast %210 : vector<2x1x16x1xf32> to vector<2x16x1xf32>
    %212 = vector.broadcast %211 : vector<2x16x1xf32> to vector<2x16x64xf32>
    %213 = arith.mulf %209, %212 : vector<2x16x64xf32>
    %cst_53 = arith.constant dense<0.000000e+00> : vector<2x64xf32>
    %214 = vector.multi_reduction <add>, %213, %cst_53 [1] : vector<2x16x64xf32> to vector<2x64xf32>
    %215 = vector.shape_cast %137 : vector<2x64xf32> to vector<2x1x64xf32>
    %216 = vector.shape_cast %148 : vector<2x64xf32> to vector<2x1x64xf32>
    %217 = vector.shape_cast %159 : vector<2x64xf32> to vector<2x1x64xf32>
    %218 = vector.shape_cast %170 : vector<2x64xf32> to vector<2x1x64xf32>
    %219 = vector.shape_cast %181 : vector<2x64xf32> to vector<2x1x64xf32>
    %220 = vector.shape_cast %192 : vector<2x64xf32> to vector<2x1x64xf32>
    %221 = vector.shape_cast %203 : vector<2x64xf32> to vector<2x1x64xf32>
    %222 = vector.shape_cast %214 : vector<2x64xf32> to vector<2x1x64xf32>
    %223 = tpu.concatenate %215, %216, %217, %218, %219, %220, %221, %222 in 1 : vector<2x1x64xf32>, vector<2x1x64xf32>, vector<2x1x64xf32>, vector<2x1x64xf32>, vector<2x1x64xf32>, vector<2x1x64xf32>, vector<2x1x64xf32>, vector<2x1x64xf32> -> vector<2x8x64xf32>
    %224 = vector.shape_cast %223 : vector<2x8x64xf32> to vector<16x64xf32>
    %c0_54 = arith.constant 0 : index
    %c0_55 = arith.constant 0 : index
    %c0_56 = arith.constant 0 : index
    %225 = vector.load %arg11[%c0_54, %c0_55, %c0_56] : memref<2x1x64xf32, #tpu.memory_space<vmem>>, vector<1x1x64xf32>
    %226 = vector.shape_cast %225 : vector<1x1x64xf32> to vector<1x64xf32>
    %227 = vector.broadcast %226 : vector<1x64xf32> to vector<16x64xf32>
    %228 = arith.mulf %227, %85 : vector<16x64xf32>
    %229 = arith.addf %224, %228 : vector<16x64xf32>
    %230 = arith.negf %49 : vector<16x64xf32>
    %231 = math.exp %230 : vector<16x64xf32>
    %cst_57 = arith.constant 1.000000e+00 : f32
    %232 = vector.broadcast %cst_57 : f32 to vector<16x64xf32>
    %233 = arith.addf %232, %231 : vector<16x64xf32>
    %234 = arith.divf %232, %233 : vector<16x64xf32>
    %235 = arith.mulf %49, %234 : vector<16x64xf32>
    %236 = arith.mulf %229, %235 : vector<16x64xf32>
    %237 = arith.truncf %236 : vector<16x64xf32> to vector<16x64xbf16>
    %c0_58 = arith.constant 0 : index
    %c0_59 = arith.constant 0 : index
    %c0_60 = arith.constant 0 : index
    %238 = vector.load %arg12[%c0_58, %c0_59, %c0_60] : memref<2x64x32xbf16, #tpu.memory_space<vmem>>, vector<1x64x32xbf16>
    %239 = vector.shape_cast %238 : vector<1x64x32xbf16> to vector<64x32xbf16>
    %cst_61 = arith.constant dense<0.000000e+00> : vector<16x32xf32>
    %240 = tpu.matmul %237, %239, %cst_61 {dimension_numbers = #tpu.dot_dimension_numbers<[1], [0], [0], [1], [0, 0, 1, 1], [], []>} : vector<16x64xbf16>, vector<64x32xbf16>, vector<16x32xf32> -> vector<16x32xf32>
    %241 = arith.addf %240, %9 : vector<16x32xf32>
    %c1 = arith.constant 1 : index
    %c0_62 = arith.constant 0 : index
    %c0_63 = arith.constant 0 : index
    %242 = vector.load %arg3[%c1, %c0_62, %c0_63] : memref<2x1x32xf32, #tpu.memory_space<vmem>>, vector<1x1x32xf32>
    %243 = vector.shape_cast %242 : vector<1x1x32xf32> to vector<1x32xf32>
    %c1_64 = arith.constant 1 : index
    %c0_65 = arith.constant 0 : index
    %c0_66 = arith.constant 0 : index
    %244 = vector.load %arg4[%c1_64, %c0_65, %c0_66] : memref<2x1x32xf32, #tpu.memory_space<vmem>>, vector<1x1x32xf32>
    %245 = vector.shape_cast %244 : vector<1x1x32xf32> to vector<1x32xf32>
    %cst_67 = arith.constant dense<0.000000e+00> : vector<16xf32>
    %246 = vector.multi_reduction <add>, %241, %cst_67 [1] : vector<16x32xf32> to vector<16xf32>
    %247 = vector.shape_cast %246 : vector<16xf32> to vector<16x1xf32>
    %cst_68 = arith.constant 3.200000e+01 : f32
    %248 = vector.broadcast %cst_68 : f32 to vector<16x1xf32>
    %249 = arith.divf %247, %248 : vector<16x1xf32>
    %250 = vector.broadcast %249 : vector<16x1xf32> to vector<16x32xf32>
    %251 = arith.subf %241, %250 : vector<16x32xf32>
    %252 = arith.mulf %251, %251 : vector<16x32xf32>
    %cst_69 = arith.constant dense<0.000000e+00> : vector<16xf32>
    %253 = vector.multi_reduction <add>, %252, %cst_69 [1] : vector<16x32xf32> to vector<16xf32>
    %254 = vector.shape_cast %253 : vector<16xf32> to vector<16x1xf32>
    %cst_70 = arith.constant 3.200000e+01 : f32
    %255 = vector.broadcast %cst_70 : f32 to vector<16x1xf32>
    %256 = arith.divf %254, %255 : vector<16x1xf32>
    %257 = vector.broadcast %249 : vector<16x1xf32> to vector<16x32xf32>
    %258 = arith.subf %241, %257 : vector<16x32xf32>
    %cst_71 = arith.constant 9.99999974E-6 : f32
    %259 = vector.broadcast %cst_71 : f32 to vector<16x1xf32>
    %260 = arith.addf %256, %259 : vector<16x1xf32>
    %261 = math.rsqrt %260 : vector<16x1xf32>
    %262 = vector.broadcast %261 : vector<16x1xf32> to vector<16x32xf32>
    %263 = arith.mulf %258, %262 : vector<16x32xf32>
    %264 = vector.broadcast %243 : vector<1x32xf32> to vector<16x32xf32>
    %265 = arith.mulf %263, %264 : vector<16x32xf32>
    %266 = vector.broadcast %245 : vector<1x32xf32> to vector<16x32xf32>
    %267 = arith.addf %265, %266 : vector<16x32xf32>
    %268 = arith.truncf %267 : vector<16x32xf32> to vector<16x32xbf16>
    %c1_72 = arith.constant 1 : index
    %c0_73 = arith.constant 0 : index
    %c0_74 = arith.constant 0 : index
    %269 = vector.load %arg5[%c1_72, %c0_73, %c0_74] : memref<2x32x128xbf16, #tpu.memory_space<vmem>>, vector<1x32x128xbf16>
    %270 = vector.shape_cast %269 : vector<1x32x128xbf16> to vector<32x128xbf16>
    %cst_75 = arith.constant dense<0.000000e+00> : vector<16x128xf32>
    %271 = tpu.matmul %268, %270, %cst_75 {dimension_numbers = #tpu.dot_dimension_numbers<[1], [0], [0], [1], [0, 0, 1, 1], [], []>} : vector<16x32xbf16>, vector<32x128xbf16>, vector<16x128xf32> -> vector<16x128xf32>
    %272 = vector.extract_strided_slice %271 {offsets = [0, 0], sizes = [16, 64], strides = [1, 1]} : vector<16x128xf32> to vector<16x64xf32>
    %273 = vector.extract_strided_slice %271 {offsets = [0, 64], sizes = [16, 64], strides = [1, 1]} : vector<16x128xf32> to vector<16x64xf32>
    %c1_76 = arith.constant 1 : index
    %c0_77 = arith.constant 0 : index
    %c0_78 = arith.constant 0 : index
    %274 = vector.load %arg6[%c1_76, %c0_77, %c0_78] : memref<2x4x64xf32, #tpu.memory_space<vmem>>, vector<1x4x64xf32>
    %275 = vector.shape_cast %274 : vector<1x4x64xf32> to vector<4x64xf32>
    %c1_79 = arith.constant 1 : index
    %c0_80 = arith.constant 0 : index
    %c0_81 = arith.constant 0 : index
    %276 = vector.load %arg7[%c1_79, %c0_80, %c0_81] : memref<2x1x64xf32, #tpu.memory_space<vmem>>, vector<1x1x64xf32>
    %277 = vector.shape_cast %276 : vector<1x1x64xf32> to vector<1x64xf32>
    %278 = vector.extract_strided_slice %275 {offsets = [3, 0], sizes = [1, 64], strides = [1, 1]} : vector<4x64xf32> to vector<1x64xf32>
    %279 = vector.broadcast %278 : vector<1x64xf32> to vector<16x64xf32>
    %280 = arith.mulf %279, %272 : vector<16x64xf32>
    %281 = vector.broadcast %277 : vector<1x64xf32> to vector<16x64xf32>
    %282 = arith.addf %281, %280 : vector<16x64xf32>
    %c1_i32_82 = arith.constant 1 : i32
    %283 = tpu.dynamic_rotate %272 by %c1_i32_82 dim 0 : vector<16x64xf32>, i32 -> vector<16x64xf32>
    %284 = vector.extract_strided_slice %275 {offsets = [2, 0], sizes = [1, 64], strides = [1, 1]} : vector<4x64xf32> to vector<1x64xf32>
    %cst_83 = arith.constant 0.000000e+00 : f32
    %285 = vector.broadcast %cst_83 : f32 to vector<16x64xf32>
    %286 = arith.select %13, %283, %285 : vector<16x64xi1>, vector<16x64xf32>
    %287 = vector.broadcast %284 : vector<1x64xf32> to vector<16x64xf32>
    %288 = arith.mulf %287, %286 : vector<16x64xf32>
    %289 = arith.addf %282, %288 : vector<16x64xf32>
    %c2_i32_84 = arith.constant 2 : i32
    %290 = tpu.dynamic_rotate %272 by %c2_i32_84 dim 0 : vector<16x64xf32>, i32 -> vector<16x64xf32>
    %291 = vector.extract_strided_slice %275 {offsets = [1, 0], sizes = [1, 64], strides = [1, 1]} : vector<4x64xf32> to vector<1x64xf32>
    %cst_85 = arith.constant 0.000000e+00 : f32
    %292 = vector.broadcast %cst_85 : f32 to vector<16x64xf32>
    %293 = arith.select %15, %290, %292 : vector<16x64xi1>, vector<16x64xf32>
    %294 = vector.broadcast %291 : vector<1x64xf32> to vector<16x64xf32>
    %295 = arith.mulf %294, %293 : vector<16x64xf32>
    %296 = arith.addf %289, %295 : vector<16x64xf32>
    %c3_i32_86 = arith.constant 3 : i32
    %297 = tpu.dynamic_rotate %272 by %c3_i32_86 dim 0 : vector<16x64xf32>, i32 -> vector<16x64xf32>
    %298 = vector.extract_strided_slice %275 {offsets = [0, 0], sizes = [1, 64], strides = [1, 1]} : vector<4x64xf32> to vector<1x64xf32>
    %cst_87 = arith.constant 0.000000e+00 : f32
    %299 = vector.broadcast %cst_87 : f32 to vector<16x64xf32>
    %300 = arith.select %17, %297, %299 : vector<16x64xi1>, vector<16x64xf32>
    %301 = vector.broadcast %298 : vector<1x64xf32> to vector<16x64xf32>
    %302 = arith.mulf %301, %300 : vector<16x64xf32>
    %303 = arith.addf %296, %302 : vector<16x64xf32>
    %304 = arith.negf %303 : vector<16x64xf32>
    %305 = math.exp %304 : vector<16x64xf32>
    %cst_88 = arith.constant 1.000000e+00 : f32
    %306 = vector.broadcast %cst_88 : f32 to vector<16x64xf32>
    %307 = arith.addf %306, %305 : vector<16x64xf32>
    %308 = arith.divf %306, %307 : vector<16x64xf32>
    %309 = arith.mulf %303, %308 : vector<16x64xf32>
    %310 = arith.truncf %309 : vector<16x64xf32> to vector<16x64xbf16>
    %c1_89 = arith.constant 1 : index
    %c0_90 = arith.constant 0 : index
    %c0_91 = arith.constant 0 : index
    %311 = vector.load %arg8[%c1_89, %c0_90, %c0_91] : memref<2x64x128xbf16, #tpu.memory_space<vmem>>, vector<1x64x128xbf16>
    %312 = vector.shape_cast %311 : vector<1x64x128xbf16> to vector<64x128xbf16>
    %cst_92 = arith.constant dense<0.000000e+00> : vector<16x128xf32>
    %313 = tpu.matmul %310, %312, %cst_92 {dimension_numbers = #tpu.dot_dimension_numbers<[1], [0], [0], [1], [0, 0, 1, 1], [], []>} : vector<16x64xbf16>, vector<64x128xbf16>, vector<16x128xf32> -> vector<16x128xf32>
    %314 = vector.extract_strided_slice %313 {offsets = [0, 0], sizes = [16, 64], strides = [1, 1]} : vector<16x128xf32> to vector<16x64xf32>
    %c1_93 = arith.constant 1 : index
    %c0_94 = arith.constant 0 : index
    %c0_95 = arith.constant 0 : index
    %315 = vector.load %arg9[%c1_93, %c0_94, %c0_95] : memref<2x1x64xf32, #tpu.memory_space<vmem>>, vector<1x1x64xf32>
    %316 = vector.shape_cast %315 : vector<1x1x64xf32> to vector<1x64xf32>
    %317 = vector.broadcast %316 : vector<1x64xf32> to vector<16x64xf32>
    %318 = arith.addf %314, %317 : vector<16x64xf32>
    %cst_96 = arith.constant 0.000000e+00 : f32
    %319 = vector.broadcast %cst_96 : f32 to vector<16x64xf32>
    %320 = arith.maximumf %318, %319 : vector<16x64xf32>
    %321 = vector.broadcast %cst_96 : f32 to vector<16x64xf32>
    %322 = arith.subf %318, %321 : vector<16x64xf32>
    %323 = arith.cmpf one, %322, %322 : vector<16x64xf32>
    %324 = vector.broadcast %cst_96 : f32 to vector<16x64xf32>
    %325 = arith.addf %318, %324 : vector<16x64xf32>
    %326 = math.absf %322 : vector<16x64xf32>
    %cst_97 = arith.constant 0.000000e+00 : f32
    %327 = vector.broadcast %cst_97 : f32 to vector<16x64xf32>
    %328 = arith.subf %327, %326 : vector<16x64xf32>
    %329 = math.exp %328 : vector<16x64xf32>
    %330 = math.log1p %329 : vector<16x64xf32>
    %331 = arith.addf %320, %330 : vector<16x64xf32>
    %332 = arith.select %323, %325, %331 : vector<16x64xi1>, vector<16x64xf32>
    %333 = vector.extract_strided_slice %313 {offsets = [0, 64], sizes = [16, 16], strides = [1, 1]} : vector<16x128xf32> to vector<16x16xf32>
    %334 = vector.extract_strided_slice %313 {offsets = [0, 80], sizes = [16, 16], strides = [1, 1]} : vector<16x128xf32> to vector<16x16xf32>
    %c1_98 = arith.constant 1 : index
    %c0_99 = arith.constant 0 : index
    %c0_100 = arith.constant 0 : index
    %335 = vector.load %arg10[%c1_98, %c0_99, %c0_100] : memref<2x16x64xf32, #tpu.memory_space<vmem>>, vector<1x16x64xf32>
    %336 = vector.shape_cast %335 : vector<1x16x64xf32> to vector<16x64xf32>
    %337 = vector.shape_cast %332 : vector<16x64xf32> to vector<2x8x1x64xf32>
    %338 = vector.shape_cast %336 : vector<16x64xf32> to vector<1x1x16x64xf32>
    %339 = vector.broadcast %337 : vector<2x8x1x64xf32> to vector<2x8x16x64xf32>
    %340 = vector.broadcast %338 : vector<1x1x16x64xf32> to vector<2x8x16x64xf32>
    %341 = arith.mulf %339, %340 : vector<2x8x16x64xf32>
    %342 = math.exp %341 : vector<2x8x16x64xf32>
    %343 = arith.mulf %332, %309 : vector<16x64xf32>
    %344 = vector.shape_cast %343 : vector<16x64xf32> to vector<2x8x1x64xf32>
    %345 = vector.shape_cast %333 : vector<16x16xf32> to vector<2x8x16x1xf32>
    %346 = vector.broadcast %344 : vector<2x8x1x64xf32> to vector<2x8x16x64xf32>
    %347 = vector.broadcast %345 : vector<2x8x16x1xf32> to vector<2x8x16x64xf32>
    %348 = arith.mulf %346, %347 : vector<2x8x16x64xf32>
    %349 = vector.shape_cast %334 : vector<16x16xf32> to vector<2x8x16x1xf32>
    %cst_101 = arith.constant 0.000000e+00 : f32
    %350 = vector.broadcast %cst_101 : f32 to vector<2x16x64xf32>
    %351 = vector.extract_strided_slice %342 {offsets = [0, 0, 0, 0], sizes = [2, 1, 16, 64], strides = [1, 1, 1, 1]} : vector<2x8x16x64xf32> to vector<2x1x16x64xf32>
    %352 = vector.shape_cast %351 : vector<2x1x16x64xf32> to vector<2x16x64xf32>
    %353 = arith.mulf %352, %350 : vector<2x16x64xf32>
    %354 = vector.extract_strided_slice %348 {offsets = [0, 0, 0, 0], sizes = [2, 1, 16, 64], strides = [1, 1, 1, 1]} : vector<2x8x16x64xf32> to vector<2x1x16x64xf32>
    %355 = vector.shape_cast %354 : vector<2x1x16x64xf32> to vector<2x16x64xf32>
    %356 = arith.addf %353, %355 : vector<2x16x64xf32>
    %357 = vector.extract_strided_slice %349 {offsets = [0, 0, 0, 0], sizes = [2, 1, 16, 1], strides = [1, 1, 1, 1]} : vector<2x8x16x1xf32> to vector<2x1x16x1xf32>
    %358 = vector.shape_cast %357 : vector<2x1x16x1xf32> to vector<2x16x1xf32>
    %359 = vector.broadcast %358 : vector<2x16x1xf32> to vector<2x16x64xf32>
    %360 = arith.mulf %356, %359 : vector<2x16x64xf32>
    %cst_102 = arith.constant dense<0.000000e+00> : vector<2x64xf32>
    %361 = vector.multi_reduction <add>, %360, %cst_102 [1] : vector<2x16x64xf32> to vector<2x64xf32>
    %362 = vector.extract_strided_slice %342 {offsets = [0, 1, 0, 0], sizes = [2, 1, 16, 64], strides = [1, 1, 1, 1]} : vector<2x8x16x64xf32> to vector<2x1x16x64xf32>
    %363 = vector.shape_cast %362 : vector<2x1x16x64xf32> to vector<2x16x64xf32>
    %364 = arith.mulf %363, %356 : vector<2x16x64xf32>
    %365 = vector.extract_strided_slice %348 {offsets = [0, 1, 0, 0], sizes = [2, 1, 16, 64], strides = [1, 1, 1, 1]} : vector<2x8x16x64xf32> to vector<2x1x16x64xf32>
    %366 = vector.shape_cast %365 : vector<2x1x16x64xf32> to vector<2x16x64xf32>
    %367 = arith.addf %364, %366 : vector<2x16x64xf32>
    %368 = vector.extract_strided_slice %349 {offsets = [0, 1, 0, 0], sizes = [2, 1, 16, 1], strides = [1, 1, 1, 1]} : vector<2x8x16x1xf32> to vector<2x1x16x1xf32>
    %369 = vector.shape_cast %368 : vector<2x1x16x1xf32> to vector<2x16x1xf32>
    %370 = vector.broadcast %369 : vector<2x16x1xf32> to vector<2x16x64xf32>
    %371 = arith.mulf %367, %370 : vector<2x16x64xf32>
    %cst_103 = arith.constant dense<0.000000e+00> : vector<2x64xf32>
    %372 = vector.multi_reduction <add>, %371, %cst_103 [1] : vector<2x16x64xf32> to vector<2x64xf32>
    %373 = vector.extract_strided_slice %342 {offsets = [0, 2, 0, 0], sizes = [2, 1, 16, 64], strides = [1, 1, 1, 1]} : vector<2x8x16x64xf32> to vector<2x1x16x64xf32>
    %374 = vector.shape_cast %373 : vector<2x1x16x64xf32> to vector<2x16x64xf32>
    %375 = arith.mulf %374, %367 : vector<2x16x64xf32>
    %376 = vector.extract_strided_slice %348 {offsets = [0, 2, 0, 0], sizes = [2, 1, 16, 64], strides = [1, 1, 1, 1]} : vector<2x8x16x64xf32> to vector<2x1x16x64xf32>
    %377 = vector.shape_cast %376 : vector<2x1x16x64xf32> to vector<2x16x64xf32>
    %378 = arith.addf %375, %377 : vector<2x16x64xf32>
    %379 = vector.extract_strided_slice %349 {offsets = [0, 2, 0, 0], sizes = [2, 1, 16, 1], strides = [1, 1, 1, 1]} : vector<2x8x16x1xf32> to vector<2x1x16x1xf32>
    %380 = vector.shape_cast %379 : vector<2x1x16x1xf32> to vector<2x16x1xf32>
    %381 = vector.broadcast %380 : vector<2x16x1xf32> to vector<2x16x64xf32>
    %382 = arith.mulf %378, %381 : vector<2x16x64xf32>
    %cst_104 = arith.constant dense<0.000000e+00> : vector<2x64xf32>
    %383 = vector.multi_reduction <add>, %382, %cst_104 [1] : vector<2x16x64xf32> to vector<2x64xf32>
    %384 = vector.extract_strided_slice %342 {offsets = [0, 3, 0, 0], sizes = [2, 1, 16, 64], strides = [1, 1, 1, 1]} : vector<2x8x16x64xf32> to vector<2x1x16x64xf32>
    %385 = vector.shape_cast %384 : vector<2x1x16x64xf32> to vector<2x16x64xf32>
    %386 = arith.mulf %385, %378 : vector<2x16x64xf32>
    %387 = vector.extract_strided_slice %348 {offsets = [0, 3, 0, 0], sizes = [2, 1, 16, 64], strides = [1, 1, 1, 1]} : vector<2x8x16x64xf32> to vector<2x1x16x64xf32>
    %388 = vector.shape_cast %387 : vector<2x1x16x64xf32> to vector<2x16x64xf32>
    %389 = arith.addf %386, %388 : vector<2x16x64xf32>
    %390 = vector.extract_strided_slice %349 {offsets = [0, 3, 0, 0], sizes = [2, 1, 16, 1], strides = [1, 1, 1, 1]} : vector<2x8x16x1xf32> to vector<2x1x16x1xf32>
    %391 = vector.shape_cast %390 : vector<2x1x16x1xf32> to vector<2x16x1xf32>
    %392 = vector.broadcast %391 : vector<2x16x1xf32> to vector<2x16x64xf32>
    %393 = arith.mulf %389, %392 : vector<2x16x64xf32>
    %cst_105 = arith.constant dense<0.000000e+00> : vector<2x64xf32>
    %394 = vector.multi_reduction <add>, %393, %cst_105 [1] : vector<2x16x64xf32> to vector<2x64xf32>
    %395 = vector.extract_strided_slice %342 {offsets = [0, 4, 0, 0], sizes = [2, 1, 16, 64], strides = [1, 1, 1, 1]} : vector<2x8x16x64xf32> to vector<2x1x16x64xf32>
    %396 = vector.shape_cast %395 : vector<2x1x16x64xf32> to vector<2x16x64xf32>
    %397 = arith.mulf %396, %389 : vector<2x16x64xf32>
    %398 = vector.extract_strided_slice %348 {offsets = [0, 4, 0, 0], sizes = [2, 1, 16, 64], strides = [1, 1, 1, 1]} : vector<2x8x16x64xf32> to vector<2x1x16x64xf32>
    %399 = vector.shape_cast %398 : vector<2x1x16x64xf32> to vector<2x16x64xf32>
    %400 = arith.addf %397, %399 : vector<2x16x64xf32>
    %401 = vector.extract_strided_slice %349 {offsets = [0, 4, 0, 0], sizes = [2, 1, 16, 1], strides = [1, 1, 1, 1]} : vector<2x8x16x1xf32> to vector<2x1x16x1xf32>
    %402 = vector.shape_cast %401 : vector<2x1x16x1xf32> to vector<2x16x1xf32>
    %403 = vector.broadcast %402 : vector<2x16x1xf32> to vector<2x16x64xf32>
    %404 = arith.mulf %400, %403 : vector<2x16x64xf32>
    %cst_106 = arith.constant dense<0.000000e+00> : vector<2x64xf32>
    %405 = vector.multi_reduction <add>, %404, %cst_106 [1] : vector<2x16x64xf32> to vector<2x64xf32>
    %406 = vector.extract_strided_slice %342 {offsets = [0, 5, 0, 0], sizes = [2, 1, 16, 64], strides = [1, 1, 1, 1]} : vector<2x8x16x64xf32> to vector<2x1x16x64xf32>
    %407 = vector.shape_cast %406 : vector<2x1x16x64xf32> to vector<2x16x64xf32>
    %408 = arith.mulf %407, %400 : vector<2x16x64xf32>
    %409 = vector.extract_strided_slice %348 {offsets = [0, 5, 0, 0], sizes = [2, 1, 16, 64], strides = [1, 1, 1, 1]} : vector<2x8x16x64xf32> to vector<2x1x16x64xf32>
    %410 = vector.shape_cast %409 : vector<2x1x16x64xf32> to vector<2x16x64xf32>
    %411 = arith.addf %408, %410 : vector<2x16x64xf32>
    %412 = vector.extract_strided_slice %349 {offsets = [0, 5, 0, 0], sizes = [2, 1, 16, 1], strides = [1, 1, 1, 1]} : vector<2x8x16x1xf32> to vector<2x1x16x1xf32>
    %413 = vector.shape_cast %412 : vector<2x1x16x1xf32> to vector<2x16x1xf32>
    %414 = vector.broadcast %413 : vector<2x16x1xf32> to vector<2x16x64xf32>
    %415 = arith.mulf %411, %414 : vector<2x16x64xf32>
    %cst_107 = arith.constant dense<0.000000e+00> : vector<2x64xf32>
    %416 = vector.multi_reduction <add>, %415, %cst_107 [1] : vector<2x16x64xf32> to vector<2x64xf32>
    %417 = vector.extract_strided_slice %342 {offsets = [0, 6, 0, 0], sizes = [2, 1, 16, 64], strides = [1, 1, 1, 1]} : vector<2x8x16x64xf32> to vector<2x1x16x64xf32>
    %418 = vector.shape_cast %417 : vector<2x1x16x64xf32> to vector<2x16x64xf32>
    %419 = arith.mulf %418, %411 : vector<2x16x64xf32>
    %420 = vector.extract_strided_slice %348 {offsets = [0, 6, 0, 0], sizes = [2, 1, 16, 64], strides = [1, 1, 1, 1]} : vector<2x8x16x64xf32> to vector<2x1x16x64xf32>
    %421 = vector.shape_cast %420 : vector<2x1x16x64xf32> to vector<2x16x64xf32>
    %422 = arith.addf %419, %421 : vector<2x16x64xf32>
    %423 = vector.extract_strided_slice %349 {offsets = [0, 6, 0, 0], sizes = [2, 1, 16, 1], strides = [1, 1, 1, 1]} : vector<2x8x16x1xf32> to vector<2x1x16x1xf32>
    %424 = vector.shape_cast %423 : vector<2x1x16x1xf32> to vector<2x16x1xf32>
    %425 = vector.broadcast %424 : vector<2x16x1xf32> to vector<2x16x64xf32>
    %426 = arith.mulf %422, %425 : vector<2x16x64xf32>
    %cst_108 = arith.constant dense<0.000000e+00> : vector<2x64xf32>
    %427 = vector.multi_reduction <add>, %426, %cst_108 [1] : vector<2x16x64xf32> to vector<2x64xf32>
    %428 = vector.extract_strided_slice %342 {offsets = [0, 7, 0, 0], sizes = [2, 1, 16, 64], strides = [1, 1, 1, 1]} : vector<2x8x16x64xf32> to vector<2x1x16x64xf32>
    %429 = vector.shape_cast %428 : vector<2x1x16x64xf32> to vector<2x16x64xf32>
    %430 = arith.mulf %429, %422 : vector<2x16x64xf32>
    %431 = vector.extract_strided_slice %348 {offsets = [0, 7, 0, 0], sizes = [2, 1, 16, 64], strides = [1, 1, 1, 1]} : vector<2x8x16x64xf32> to vector<2x1x16x64xf32>
    %432 = vector.shape_cast %431 : vector<2x1x16x64xf32> to vector<2x16x64xf32>
    %433 = arith.addf %430, %432 : vector<2x16x64xf32>
    %434 = vector.extract_strided_slice %349 {offsets = [0, 7, 0, 0], sizes = [2, 1, 16, 1], strides = [1, 1, 1, 1]} : vector<2x8x16x1xf32> to vector<2x1x16x1xf32>
    %435 = vector.shape_cast %434 : vector<2x1x16x1xf32> to vector<2x16x1xf32>
    %436 = vector.broadcast %435 : vector<2x16x1xf32> to vector<2x16x64xf32>
    %437 = arith.mulf %433, %436 : vector<2x16x64xf32>
    %cst_109 = arith.constant dense<0.000000e+00> : vector<2x64xf32>
    %438 = vector.multi_reduction <add>, %437, %cst_109 [1] : vector<2x16x64xf32> to vector<2x64xf32>
    %439 = vector.shape_cast %361 : vector<2x64xf32> to vector<2x1x64xf32>
    %440 = vector.shape_cast %372 : vector<2x64xf32> to vector<2x1x64xf32>
    %441 = vector.shape_cast %383 : vector<2x64xf32> to vector<2x1x64xf32>
    %442 = vector.shape_cast %394 : vector<2x64xf32> to vector<2x1x64xf32>
    %443 = vector.shape_cast %405 : vector<2x64xf32> to vector<2x1x64xf32>
    %444 = vector.shape_cast %416 : vector<2x64xf32> to vector<2x1x64xf32>
    %445 = vector.shape_cast %427 : vector<2x64xf32> to vector<2x1x64xf32>
    %446 = vector.shape_cast %438 : vector<2x64xf32> to vector<2x1x64xf32>
    %447 = tpu.concatenate %439, %440, %441, %442, %443, %444, %445, %446 in 1 : vector<2x1x64xf32>, vector<2x1x64xf32>, vector<2x1x64xf32>, vector<2x1x64xf32>, vector<2x1x64xf32>, vector<2x1x64xf32>, vector<2x1x64xf32>, vector<2x1x64xf32> -> vector<2x8x64xf32>
    %448 = vector.shape_cast %447 : vector<2x8x64xf32> to vector<16x64xf32>
    %c1_110 = arith.constant 1 : index
    %c0_111 = arith.constant 0 : index
    %c0_112 = arith.constant 0 : index
    %449 = vector.load %arg11[%c1_110, %c0_111, %c0_112] : memref<2x1x64xf32, #tpu.memory_space<vmem>>, vector<1x1x64xf32>
    %450 = vector.shape_cast %449 : vector<1x1x64xf32> to vector<1x64xf32>
    %451 = vector.broadcast %450 : vector<1x64xf32> to vector<16x64xf32>
    %452 = arith.mulf %451, %309 : vector<16x64xf32>
    %453 = arith.addf %448, %452 : vector<16x64xf32>
    %454 = arith.negf %273 : vector<16x64xf32>
    %455 = math.exp %454 : vector<16x64xf32>
    %cst_113 = arith.constant 1.000000e+00 : f32
    %456 = vector.broadcast %cst_113 : f32 to vector<16x64xf32>
    %457 = arith.addf %456, %455 : vector<16x64xf32>
    %458 = arith.divf %456, %457 : vector<16x64xf32>
    %459 = arith.mulf %273, %458 : vector<16x64xf32>
    %460 = arith.mulf %453, %459 : vector<16x64xf32>
    %461 = arith.truncf %460 : vector<16x64xf32> to vector<16x64xbf16>
    %c1_114 = arith.constant 1 : index
    %c0_115 = arith.constant 0 : index
    %c0_116 = arith.constant 0 : index
    %462 = vector.load %arg12[%c1_114, %c0_115, %c0_116] : memref<2x64x32xbf16, #tpu.memory_space<vmem>>, vector<1x64x32xbf16>
    %463 = vector.shape_cast %462 : vector<1x64x32xbf16> to vector<64x32xbf16>
    %cst_117 = arith.constant dense<0.000000e+00> : vector<16x32xf32>
    %464 = tpu.matmul %461, %463, %cst_117 {dimension_numbers = #tpu.dot_dimension_numbers<[1], [0], [0], [1], [0, 0, 1, 1], [], []>} : vector<16x64xbf16>, vector<64x32xbf16>, vector<16x32xf32> -> vector<16x32xf32>
    %465 = arith.addf %464, %241 : vector<16x32xf32>
    %c0_118 = arith.constant 0 : index
    %c0_119 = arith.constant 0 : index
    %466 = vector.load %arg13[%c0_118, %c0_119] : memref<1x32xf32, #tpu.memory_space<vmem>>, vector<1x32xf32>
    %c0_120 = arith.constant 0 : index
    %c0_121 = arith.constant 0 : index
    %467 = vector.load %arg14[%c0_120, %c0_121] : memref<1x32xf32, #tpu.memory_space<vmem>>, vector<1x32xf32>
    %cst_122 = arith.constant dense<0.000000e+00> : vector<16xf32>
    %468 = vector.multi_reduction <add>, %465, %cst_122 [1] : vector<16x32xf32> to vector<16xf32>
    %469 = vector.shape_cast %468 : vector<16xf32> to vector<16x1xf32>
    %cst_123 = arith.constant 3.200000e+01 : f32
    %470 = vector.broadcast %cst_123 : f32 to vector<16x1xf32>
    %471 = arith.divf %469, %470 : vector<16x1xf32>
    %472 = vector.broadcast %471 : vector<16x1xf32> to vector<16x32xf32>
    %473 = arith.subf %465, %472 : vector<16x32xf32>
    %474 = arith.mulf %473, %473 : vector<16x32xf32>
    %cst_124 = arith.constant dense<0.000000e+00> : vector<16xf32>
    %475 = vector.multi_reduction <add>, %474, %cst_124 [1] : vector<16x32xf32> to vector<16xf32>
    %476 = vector.shape_cast %475 : vector<16xf32> to vector<16x1xf32>
    %cst_125 = arith.constant 3.200000e+01 : f32
    %477 = vector.broadcast %cst_125 : f32 to vector<16x1xf32>
    %478 = arith.divf %476, %477 : vector<16x1xf32>
    %479 = vector.broadcast %471 : vector<16x1xf32> to vector<16x32xf32>
    %480 = arith.subf %465, %479 : vector<16x32xf32>
    %cst_126 = arith.constant 9.99999974E-6 : f32
    %481 = vector.broadcast %cst_126 : f32 to vector<16x1xf32>
    %482 = arith.addf %478, %481 : vector<16x1xf32>
    %483 = math.rsqrt %482 : vector<16x1xf32>
    %484 = vector.broadcast %483 : vector<16x1xf32> to vector<16x32xf32>
    %485 = arith.mulf %480, %484 : vector<16x32xf32>
    %486 = vector.broadcast %466 : vector<1x32xf32> to vector<16x32xf32>
    %487 = arith.mulf %485, %486 : vector<16x32xf32>
    %488 = vector.broadcast %467 : vector<1x32xf32> to vector<16x32xf32>
    %489 = arith.addf %487, %488 : vector<16x32xf32>
    %490 = arith.truncf %489 : vector<16x32xf32> to vector<16x32xbf16>
    %c0_127 = arith.constant 0 : index
    %c0_128 = arith.constant 0 : index
    %491 = vector.load %arg2[%c0_127, %c0_128] : memref<32x128xbf16, #tpu.memory_space<vmem>>, vector<32x128xbf16>
    %cst_129 = arith.constant dense<0.000000e+00> : vector<16x128xf32>
    %492 = tpu.matmul %490, %491, %cst_129 {dimension_numbers = #tpu.dot_dimension_numbers<[1], [0], [0], [1], [0, 0, 1, 1], [], []>} : vector<16x32xbf16>, vector<32x128xbf16>, vector<16x128xf32> -> vector<16x128xf32>
    %c0_130 = arith.constant 0 : index
    %c0_131 = arith.constant 0 : index
    %493 = vector.load %arg15[%c0_130, %c0_131] : memref<16x128xf32, #tpu.memory_space<vmem>>, vector<16x128xf32>
    tpu.vector_store %arg15[%c0_130, %c0_131], %492 {strides = array<i32>} : memref<16x128xf32, #tpu.memory_space<vmem>>, vector<16x128xf32>,
    return
  }
}

</mosaic_0001>

<bundles_post_ra>
// kernel: tpu_custom_call.1
= control target key start
LH: loop header
LB: loop body
LE: loop exit
PB: predicated region body
PF: predicated region fallthrough
CT: control target
= control target key end

     0   :  { %20 = vsyncpa [#allocation3], 0  ;;  %s5265_s0 = inlined_call_operand.vmem [shape: s32[16,1], index: 0, kind: input, shape index: {}]   ;;  %s5266_s1 = inlined_call_operand.vmem [shape: bf16[48,32], index: 1, kind: input, shape index: {}]   ;;  %s5267_s2 = inlined_call_operand.hbm [shape: bf16[32,128], index: 2, kind: input, shape index: {}]   ;;  %s5268_s3 = inlined_call_operand.hbm [shape: f32[2,1,32], index: 3, kind: input, shape index: {}]   ;;  %s5269_s4 = inlined_call_operand.hbm [shape: f32[2,1,32], index: 4, kind: input, shape index: {}]   ;;  %s5270_s5 = inlined_call_operand.vmem [shape: bf16[2,32,128], index: 5, kind: input, shape index: {}]   ;;  %s5271_s6 = inlined_call_operand.vmem [shape: f32[2,4,64], index: 6, kind: input, shape index: {}]   ;;  %s5272_s7 = inlined_call_operand.vmem [shape: f32[2,1,64], index: 7, kind: input, shape index: {}]   ;;  %s5273_s8 = inlined_call_operand.vmem [shape: bf16[2,64,128], index: 8, kind: input, shape index: {}]   ;;  %s5274_s9 = inlined_call_operand.vmem [shape: f32[2,1,64], index: 9, kind: input, shape index: {}]   ;;  %s5275_s10 = inlined_call_operand.vmem [shape: f32[2,16,64], index: 10, kind: input, shape index: {}]   ;;  %s5276_s11 = inlined_call_operand.vmem [shape: f32[2,1,64], index: 11, kind: input, shape index: {}]   ;;  %s5277_s12 = inlined_call_operand.vmem [shape: bf16[2,64,32], index: 12, kind: input, shape index: {}]   ;;  %s5278_s13 = inlined_call_operand.vmem [shape: f32[1,32], index: 13, kind: input, shape index: {}]   ;;  %s5279_s14 = inlined_call_operand.vmem [shape: f32[1,32], index: 14, kind: input, shape index: {}]   ;;  %s5280_s15 = inlined_call_operand.hbm [shape: f32[16,128], index: 15, kind: output, shape index: {}]  }
   0x1   :  { %21 = vsyncpa [#allocation6], 0 }
   0x2   :  { %22 = vsyncpa [#allocation4], 0  ;;  %s3800_s18 = smov [#allocation5]   ;;  %s3706_s22 = scalar_lea.hbm %s5268_s3, 32 }
   0x3   :  { %s44_s19 = sshll.u32 %s3800_s18, 4  ;;  %p3707_p0 = scmp.ne.s32.totalorder %s5268_s3, %s3706_s22  ;;  %s45_s19 = int_to_ptr.vmem [resolvable:$true] %s44_s19 }
   0x4   :  { %p3710_p1 = scmp.lt.u32.totalorder %s3706_s22, %s5268_s3 }
   0x6   :  { %p3712_p2 = pnand %p3710_p1, %p3707_p0 }
   0x8   :  { %3715 = shalt.err (!%p3712_p2)
}
   0x9   :  { %s3716_s27 = scalar_lea.vmem %s45_s19, 32  ;;  %p3721_p4 = scmp.lt.s32.totalorder %s45_s19, %s45_s19 }
   0xa   :  { %p3717_p3 = scmp.ne.s32.totalorder %s45_s19, %s3716_s27  ;;  %p3722_p5 = scmp.lt.s32.totalorder %s3716_s27, %s3716_s27 }
   0xc   :  { %p3723_p6 = por %p3722_p5, %p3721_p4 }
   0xe   :  { %p3724_p7 = pnand %p3723_p6, %p3717_p3 }
  0x10   :  { %3727 = shalt.err (!%p3724_p7)
}
  0x11   :  { %s5281_s28 = smov 16   ;;  %s3802_s29 = smov 1  }
  0x12   :  { %50 = dma.hbm_to_vmem [thread:$0]  %s5268_s3, 32, %s45_s19, [#allocation6], %s5281_s28, %s5281_s28, %s3802_s29  }
  0x13   :  { %s3803_s17 = smov [#allocation2]   ;;  %s3728_s22 = scalar_lea.hbm %s5267_s2, 256 }
  0x14   :  { %s32_s18 = sshll.u32 %s3803_s17, 4  ;;  %p3729_p8 = scmp.ne.s32.totalorder %s5267_s2, %s3728_s22  ;;  %s33_s18 = int_to_ptr.vmem [resolvable:$true] %s32_s18 }
  0x15   :  { %p3732_p9 = scmp.lt.u32.totalorder %s3728_s22, %s5267_s2 }
  0x17   :  { %p3734_p10 = pnand %p3732_p9, %p3729_p8 }
  0x19   :  { %3737 = shalt.err (!%p3734_p10)
}
  0x1a   :  { %s3738_s27 = scalar_lea.vmem %s33_s18, 256  ;;  %p3743_p12 = scmp.lt.s32.totalorder %s33_s18, %s33_s18 }
  0x1b   :  { %p3739_p11 = scmp.ne.s32.totalorder %s33_s18, %s3738_s27  ;;  %p3744_p13 = scmp.lt.s32.totalorder %s3738_s27, %s3738_s27 }
  0x1d   :  { %p3745_p0 = por %p3744_p13, %p3743_p12 }
  0x1f   :  { %p3746_p1 = pnand %p3745_p0, %p3739_p11 }
  0x21   :  { %3749 = shalt.err (!%p3746_p1)
}
  0x22   :  { %s3804_s3 = smov 64   ;;  %s3805_s19 = smov 4  }
  0x23   :  { %38 = dma.hbm_to_vmem [thread:$0]  %s5267_s2, 256, %s33_s18, [#allocation3], %s3804_s3, %s3804_s3, %s3805_s19  }
  0x24   :  { %s3806_s17 = smov [#allocation7]   ;;  %s3750_s23 = scalar_lea.hbm %s5269_s4, 32 }
  0x25   :  { %s56_s20 = sshll.u32 %s3806_s17, 4  ;;  %p3751_p2 = scmp.ne.s32.totalorder %s5269_s4, %s3750_s23  ;;  %s57_s20 = int_to_ptr.vmem [resolvable:$true] %s56_s20 }
  0x26   :  { %p3754_p3 = scmp.lt.u32.totalorder %s3750_s23, %s5269_s4 }
  0x28   :  { %p3756_p4 = pnand %p3754_p3, %p3751_p2 }
  0x2a   :  { %3759 = shalt.err (!%p3756_p4)
}
  0x2b   :  { %s3760_s28 = scalar_lea.vmem %s57_s20, 32  ;;  %p3765_p6 = scmp.lt.s32.totalorder %s57_s20, %s57_s20 }
  0x2c   :  { %p3761_p5 = scmp.ne.s32.totalorder %s57_s20, %s3760_s28  ;;  %p3766_p7 = scmp.lt.s32.totalorder %s3760_s28, %s3760_s28 }
  0x2e   :  { %p3767_p8 = por %p3766_p7, %p3765_p6 }
  0x30   :  { %p3768_p9 = pnand %p3767_p8, %p3761_p5 }
  0x32   :  { %3771 = shalt.err (!%p3768_p9)
}
  0x33   :  { %s5309_s2 = smov 16  }
  0x34   :  { %62 = dma.hbm_to_vmem [thread:$0]  %s5269_s4, 32, %s57_s20, [#allocation6], %s5309_s2, %s5309_s2, %s3802_s29  }
  0x35   :  { %3794 = dma.done.wait [#allocation3], 256  }
  0x36   :  { %3795 = vsyncadd [#allocation3], 4294967040 }
  0x37   :  { %3796 = dma.done.wait [#allocation6], 64  }
  0x38   :  { %3797 = vsyncadd [#allocation6], 4294967232  ;;  %v3807_v0 = vmov 0   ;;  %v5286_v1 = vmov 0.0   ;;  %v93_v2 = vld [vmem:[%s5265_s0] sm:$0xff]  ;;  %v94_v3 = vld [vmem:[%s5265_s0 + $0x8] sm:$0xff]  ;;  %v95_v7 = vlaneseq }
  0x39   :  { %3492 = vset.pattern.permute.xlu0 %v3807_v0  ;;  %3396 = vmatprep.subr.bf16.mxu0 %v5286_v1  ;;  %v3493_v4 = vld [vmem:[%s5266_s1] sm:$0xff]   ;;  %v3494_v5 = vld [vmem:[%s5266_s1 + $0x8] sm:$0xff]   ;;  %v3495_v6 = vld [vmem:[%s5266_s1 + $0x10] sm:$0xff]   ;;  %vm3809_vm0 = vmmov 0   ;;  %vm132_vm3 = vcmask 392192   ;;  %vm184_vm4 = vcmask 261120  }
  0x3a   :  { %3406 = vmatprep.subr.bf16.mxu1 %v5286_v1  ;;  %98 = vperm.xlu0 %3492, %v93_v2   ;;  %v96_v8 = vand.u32 127, %v95_v7  ;;  %v3496_v30 = vld [vmem:[%s5270_s5] sm:$0xff]   ;;  %v3497_v31 = vld [vmem:[%s5270_s5 + $0x8] sm:$0xff]   ;;  %v3500_v51 = vld [vmem:[%s5273_s8 + $0x10] sm:$0xff]   ;;  %v4007_v53 = vshrl.u32 %v95_v7, 7  ;;  %vm397_vm11 = vcmask 523264  }
  0x3b   :  { %3397 = vmatpush3.bf16.msra.mxu0 %v3493_v4  ;;  %3402 = vmatprep.mubr.msk.bf16.mxu0 %vm3809_vm0, %v5286_v1  ;;  %v3288_v40 = vld [vmem:[#allocation5] ss:$0 sm:$0xff]  ;;  %v3289_v44 = vld [vmem:[#allocation7] ss:$0 sm:$0xff]  ;;  %v3498_v49 = vld [vmem:[%s5273_s8] sm:$0xff]   ;;  %s3811_s1 = smov [#allocation8]  }
  0x3c   :  { %3398 = vmatprep.subr.bf16.mxu0 %v5286_v1  ;;  %3410 = vmatprep.mubr.msk.bf16.mxu1 %vm3809_vm0, %v5286_v1  ;;  %v3499_v50 = vld [vmem:[%s5273_s8 + $0x8] sm:$0xff]   ;;  %v3501_v52 = vld [vmem:[%s5273_s8 + $0x18] sm:$0xff]   ;;  %5312 = vst [vmem:[#allocation14_spill] sm:$0xff] %v4007_v53  ;;  %v4010_v54 = vsub.s32 3, %v4007_v53  ;;  %v289_v55 = vld [vmem:[%s5271_s6] sm:$0xf] }
  0x3d   :  { %3407 = vmatpush3.bf16.msra.mxu1 %v3496_v30  ;;  %v4017_v57 = vsub.s32 2, %v4007_v53  ;;  %v4020_v58 = vsub.s32 0, %v4007_v53  ;;  %vm179_vm5 = vcmp.ge.s32.totalorder %v4007_v53, 1  ;;  %v4026_v60 = vsub.s32 1, %v4007_v53  ;;  %v3293_v63 = vld [vmem:[%s5272_s7] ss:$0 sm:$0xff] }
  0x3e   :  { %101 = vperm.xlu0 %3492, %v94_v3   ;;  %3408 = vmatprep.subr.bf16.mxu1 %v5286_v1  ;;  %5313 = vst [vmem:[#allocation15_spill] sm:$0xff] %v4010_v54  ;;  %v294_v56 = vrot.slane %v289_v55, %v4010_v54  ;;  %vm180_vm6 = vcmp.ge.s32.totalorder %v4007_v53, 2  ;;  %vm181_vm7 = vcmp.ge.s32.totalorder %v4007_v53, 3  ;;  %vm307_vm8 = vcmp.lt.s32.totalorder %v4007_v53, 1  ;;  %s3271_s24 = sshll.u32 %s3811_s1, 4  ;;  %s3272_s24 = int_to_ptr.vmem [resolvable:$true] %s3271_s24 }
  0x3f   :  { %3399 = vmatpush3.bf16.msra.mxu0 %v3494_v5  ;;  %5314 = vst [vmem:[#allocation16_spill] sm:$0xff] %v4017_v57  ;;  %5315 = vst [vmem:[#allocation17_spill] sm:$0xff] %v4026_v60  ;;  %v315_v3 = vrot.slane %v289_v55, %v4017_v57  ;;  %vm322_vm9 = vcmp.lt.s32.totalorder %v4007_v53, 2  ;;  %vm337_vm10 = vcmp.lt.s32.totalorder %v4007_v53, 3  ;;  %p3777_p11 = scmp.lt.s32.totalorder %s3272_s24, %s3272_s24 }
  0x40   :  { %3400 = vmatprep.subr.bf16.mxu0 %v5286_v1 }
  0x41   :  { %3409 = vmatpush3.bf16.msra.mxu1 %v3497_v31 }
  0x42   :  { %3414 = vmatprep.subr.bf16.mxu1 %v5286_v1 }
  0x43   :  { %3401 = vmatpush3.bf16.msra.mxu0 %v3495_v6 }
  0x44   :  { %3426 = vmatprep.subr.bf16.mxu0 %v5286_v1 }
  0xb9   :  { %v99_v9 = vpop.permute.xlu0 %98 }
  0xba   :  { %vm103_vm1 = vcmp.eq.s32.totalorder %v96_v8, %v99_v9 }
  0xbb   :  { %v105_v11 = vsel %vm103_vm1, 1.0, %v5286_v1  ;;  %vm1539_vm1 = vcmask 1040384  }
  0xbd   :  { %v102_v10 = vpop.permute.xlu0 %101 }
  0xbe   :  { %vm104_vm2 = vcmp.eq.s32.totalorder %v96_v8, %v102_v10  ;;  %v330_v10 = vrot.slane %v289_v55, %v4026_v60 }
  0xbf   :  { %v106_v12 = vsel %vm104_vm2, 1.0, %v5286_v1  ;;  %vm1542_vm2 = vcmask 1041408  }
  0xc0   :  { %v107_v13 = vpack.c.bf16 %v106_v12, %v105_v11  ;;  %v345_v12 = vrot.slane %v289_v55, %v4020_v58 }
  0xc2   :  { %3403 = vmatmul.mubr.msk.bf16.vlgmr.msra.gmra.mrb[0].mxu0 %vm132_vm3, %v107_v13  ;;  %vm1545_vm3 = vcmask 1042432  }
  0xc3   :  { %3434 = vmatprep.mubr.msk.bf16.mxu0 %vm3809_vm0, %v5286_v1 }
 0x195   :  { %v3967_v14 = vpop.f32.mrb[0].mxu0 }
 0x196   :  { %5310 = vst [vmem:[#allocation12_spill] sm:$0xff] %v3967_v14  ;;  %v3404_v15 = vpop.f32.mrb[1].mxu0  ;;  %v185_v16 = vsel %vm184_vm4, %v3967_v14, 0.0 }
 0x197   :  { %186 = vadd.xlane.f32.xlu1 %v185_v16  ;;  %v3971_v17 = vpop.f32.mrb[2].mxu0 }
 0x198   :  { %5311 = vst [vmem:[#allocation13_spill] sm:$0xff] %v3971_v17  ;;  %v3405_v18 = vpop.f32.mrb[3].mxu0  ;;  %v188_v19 = vsel %vm184_vm4, %v3971_v17, 0.0 }
 0x19b   :  { %189 = vadd.xlane.f32.xlu1 %v188_v19 }
 0x224   :  { %v187_v20 = vpop.xlane.xlu1 %186 }
 0x225   :  { %v192_v21 = vmul.f32 0.03125, %v187_v20 }
 0x227   :  { %v194_v22 = vsub.f32 %v3967_v14, %v192_v21 }
 0x228   :  { %v190_v23 = vpop.xlane.xlu1 %189 }
 0x229   :  { %v193_v24 = vmul.f32 0.03125, %v190_v23  ;;  %v196_v25 = vmul.f32 %v194_v22, %v194_v22 }
 0x22b   :  { %v195_v26 = vsub.f32 %v3971_v17, %v193_v24  ;;  %v198_v27 = vsel %vm184_vm4, %v196_v25, 0.0 }
 0x22c   :  { %199 = vadd.xlane.f32.xlu0 %v198_v27 }
 0x22d   :  { %v197_v28 = vmul.f32 %v195_v26, %v195_v26 }
 0x22f   :  { %v201_v29 = vsel %vm184_vm4, %v197_v28, 0.0 }
 0x230   :  { %202 = vadd.xlane.f32.xlu1 %v201_v29 }
 0x2b9   :  { %v200_v32 = vpop.xlane.xlu0 %199 }
 0x2ba   :  { %v204_v33 = vmul.f32 0.03125, %v200_v32 }
 0x2bc   :  { %v206_v34 = vadd.f32 1e-05, %v204_v33 }
 0x2bd   :  { %v203_v35 = vpop.xlane.xlu1 %202 }
 0x2be   :  { %3518 = vrsqrt.f32 %v206_v34  ;;  %v205_v36 = vmul.f32 0.03125, %v203_v35 }
 0x2c0   :  { %v207_v37 = vadd.f32 1e-05, %v205_v36 }
 0x2c2   :  { %3520 = vrsqrt.f32 %v207_v37 }
 0x2c8   :  { %v3519_v38 = vpop.eup %3518 }
 0x2c9   :  { %v210_v39 = vmul.f32 %v3519_v38, %v194_v22 }
 0x2cb   :  { %v218_v43 = vmul.f32 %v3288_v40, %v210_v39 }
 0x2cc   :  { %v3521_v41 = vpop.eup %3520 }
 0x2cd   :  { %v211_v42 = vmul.f32 %v3521_v41, %v195_v26  ;;  %v226_v46 = vadd.f32 %v3289_v44, %v218_v43 }
 0x2cf   :  { %v219_v45 = vmul.f32 %v3288_v40, %v211_v42 }
 0x2d1   :  { %v227_v47 = vadd.f32 %v3289_v44, %v219_v45 }
 0x2d3   :  { %v228_v48 = vpack.c.bf16 %v227_v47, %v226_v46 }
 0x2d5   :  { %3411 = vmatmul.mubr.msk.bf16.vlgmr.msra.gmra.mrb[0].mxu1 %vm184_vm4, %v228_v48 }
 0x2d6   :  { %3422 = vmatprep.mubr.msk.bf16.mxu1 %vm3809_vm0, %v5286_v1  ;;  %3415 = vmatpush3.bf16.msra.mxu1 %v3498_v49 }
 0x2d7   :  { %3416 = vmatprep.subr.bf16.mxu1 %v5286_v1 }
 0x2da   :  { %3417 = vmatpush3.bf16.msra.mxu1 %v3499_v50 }
 0x2db   :  { %3418 = vmatprep.subr.bf16.mxu1 %v5286_v1 }
 0x2de   :  { %3419 = vmatpush3.bf16.msra.mxu1 %v3500_v51 }
 0x2df   :  { %3420 = vmatprep.subr.bf16.mxu1 %v5286_v1 }
 0x2e2   :  { %3421 = vmatpush3.bf16.msra.mxu1 %v3501_v52 }
 0x2e3   :  { %3438 = vmatprep.subr.bf16.mxu1 %v5286_v1 }
 0x3a8   :  { %v4022_v59 = vpop.f32.mrb[0].mxu1 }
 0x3a9   :  { %v295_v61 = vmul.f32 %v294_v56, %v4022_v59  ;;  %v3412_v62 = vpop.f32.mrb[1].mxu1  ;;  %v305_v0 = vrot.slane %v4022_v59, 7  ;;  %v320_v4 = vrot.slane %v4022_v59, 6  ;;  %v335_v9 = vrot.slane %v4022_v59, 5 }
 0x3aa   :  { %v4036_v2 = vpop.f32.mrb[2].mxu1 }
 0x3ab   :  { %v296_v5 = vmul.f32 %v294_v56, %v4036_v2  ;;  %v306_v6 = vrot.slane %v4036_v2, 7  ;;  %v321_v7 = vrot.slane %v4036_v2, 6  ;;  %v3413_v8 = vpop.f32.mrb[3].mxu1  ;;  %v336_v11 = vrot.slane %v4036_v2, 5 }
 0x3ac   :  { %v303_v13 = vadd.f32 %v3293_v63, %v295_v61  ;;  %v4097_v8 = vsub.s32 6, %v4007_v53 }
 0x3ad   :  { %v308_v15 = vsel %vm307_vm8, %v305_v0, %v306_v6  ;;  %v309_v16 = vsel %vm307_vm8, %v306_v6, %v305_v0  ;;  %v323_v18 = vsel %vm322_vm9, %v320_v4, %v321_v7  ;;  %v324_v21 = vsel %vm322_vm9, %v321_v7, %v320_v4 }
 0x3ae   :  { %v310_v19 = vsel %vm179_vm5, %v309_v16, 0.0  ;;  %v311_v20 = vsel %vm179_vm5, %v308_v15, 0.0  ;;  %v326_v22 = vsel %vm180_vm6, %v323_v18, 0.0  ;;  %v304_v23 = vadd.f32 %v3293_v63, %v296_v5  ;;  %5320 = vst [vmem:[#allocation22_spill] sm:$0xff] %v4097_v8 }
 0x3af   :  { %v316_v24 = vmul.f32 %v315_v3, %v310_v19  ;;  %v317_v25 = vmul.f32 %v315_v3, %v311_v20  ;;  %v325_v26 = vsel %vm180_vm6, %v324_v21, 0.0  ;;  %v332_v28 = vmul.f32 %v330_v10, %v326_v22  ;;  %v3301_v20 = vld [vmem:[%s5274_s9] ss:$0 sm:$0xff] }
 0x3b0   :  { %v331_v27 = vmul.f32 %v330_v10, %v325_v26  ;;  %v338_v29 = vsel %vm337_vm10, %v335_v9, %v336_v11  ;;  %v339_v30 = vsel %vm337_vm10, %v336_v11, %v335_v9  ;;  %v4088_v3 = vsub.s32 4, %v4007_v53 }
 0x3b1   :  { %v318_v31 = vadd.f32 %v316_v24, %v303_v13  ;;  %v319_v32 = vadd.f32 %v317_v25, %v304_v23  ;;  %v340_v33 = vsel %vm181_vm7, %v339_v30, 0.0  ;;  %v341_v34 = vsel %vm181_vm7, %v338_v29, 0.0 }
 0x3b2   :  { %v346_v37 = vmul.f32 %v345_v12, %v340_v33  ;;  %v347_v38 = vmul.f32 %v345_v12, %v341_v34  ;;  %5318 = vst [vmem:[#allocation20_spill] sm:$0xff] %v4088_v3  ;;  %v4092_v5 = vsub.s32 5, %v4007_v53  ;;  %v4101_v10 = vsub.s32 7, %v4007_v53 }
 0x3b3   :  { %v333_v35 = vadd.f32 %v331_v27, %v318_v31  ;;  %v334_v36 = vadd.f32 %v332_v28, %v319_v32  ;;  %v3303_v21 = vmul.f32 -1.442695, %v4022_v59 }
 0x3b4   :  { %5319 = vst [vmem:[#allocation21_spill] sm:$0xff] %v4092_v5  ;;  %5321 = vst [vmem:[#allocation23_spill] sm:$0xff] %v4101_v10 }
 0x3b5   :  { %v348_v39 = vadd.f32 %v346_v37, %v333_v35  ;;  %v349_v40 = vadd.f32 %v347_v38, %v334_v36  ;;  %v3304_v35 = vmul.f32 -1.442695, %v4036_v2 }
 0x3b7   :  { %v3294_v41 = vmul.f32 -1.442695, %v348_v39  ;;  %v3295_v42 = vmul.f32 -1.442695, %v349_v40 }
 0x3b9   :  { %3522 = vpow2.f32 %v3294_v41 }
 0x3ba   :  { %3524 = vpow2.f32 %v3295_v42 }
 0x3c3   :  { %v3523_v43 = vpop.eup %3522 }
 0x3c4   :  { %v3525_v44 = vpop.eup %3524  ;;  %v356_v45 = vadd.f32 1.0, %v3523_v43 }
 0x3c5   :  { %v357_v46 = vadd.f32 1.0, %v3525_v44 }
 0x3c6   :  { %3526 = vrcp.f32 %v356_v45 }
 0x3c7   :  { %3528 = vrcp.f32 %v357_v46 }
 0x3c8   :  { %3530 = vpow2.f32 %v3303_v21 }
 0x3d0   :  { %v3527_v47 = vpop.eup %3526 }
 0x3d1   :  { %v3529_v48 = vpop.eup %3528  ;;  %v4073_v49 = vmul.f32 %v3527_v47, %v348_v39 }
 0x3d2   :  { %v4075_v50 = vmul.f32 %v3529_v48, %v349_v40  ;;  %v3531_v28 = vpop.eup %3530 }
 0x3d3   :  { %5316 = vst [vmem:[#allocation18_spill] sm:$0xff] %v4073_v49  ;;  %v1577_v29 = vadd.f32 1.0, %v3531_v28 }
 0x3d4   :  { %5317 = vst [vmem:[#allocation19_spill] sm:$0xff] %v4075_v50  ;;  %v364_v51 = vpack.c.bf16 %v4075_v50, %v4073_v49 }
 0x3d6   :  { %3423 = vmatmul.mubr.msk.bf16.vlgmr.msra.gmra.mrb[4].mxu1 %vm397_vm11, %v364_v51 }
 0x3d7   :  { %3442 = vmatprep.mubr.msk.bf16.mxu1 %vm3809_vm0, %v5286_v1 }
 0x4a9   :  { %v435_v52 = vpop.f32.mrb[4].mxu1 }
 0x4aa   :  { %v3424_v55 = vpop.f32.mrb[5].mxu1  ;;  %v882_v56 = vrot.slane %v435_v52, %v4026_v60  ;;  %v870_v61 = vrot.slane %v435_v52, %v4020_v58  ;;  %v906_v0 = vrot.slane %v435_v52, %v4010_v54  ;;  %v918_v4 = vrot.slane %v435_v52, %v4088_v3 }
 0x4ab   :  { %v4084_v62 = vpop.f32.mrb[6].mxu1  ;;  %v930_v6 = vrot.slane %v435_v52, %v4092_v5  ;;  %v894_v7 = vrot.slane %v435_v52, %v4017_v57  ;;  %v942_v9 = vrot.slane %v435_v52, %v4097_v8  ;;  %v954_v11 = vrot.slane %v435_v52, %v4101_v10 }
 0x4ac   :  { %885 = vbcast.lane.b32.xlu0 %v882_v56, 320  ;;  %873 = vbcast.lane.b32.xlu1 %v870_v61, 320  ;;  %v3425_v63 = vpop.f32.mrb[7].mxu1  ;;  %v4106_v12 = vrot.slane %v4084_v62, %v4017_v57  ;;  %v4111_v13 = vrot.slane %v4084_v62, %v4010_v54  ;;  %v4116_v15 = vrot.slane %v4084_v62, %v4088_v3 }
 0x4ad   :  { %v4121_v16 = vrot.slane %v4084_v62, %v4092_v5  ;;  %v4126_v18 = vrot.slane %v4084_v62, %v4097_v8  ;;  %v966_v19 = vrot.slane %v4084_v62, %v4020_v58  ;;  %v4135_v22 = vadd.f32 %v3301_v20, %v435_v52 }
 0x4ae   :  { %v978_v23 = vrot.slane %v4084_v62, %v4026_v60  ;;  %v4143_v26 = vrot.slane %v4084_v62, %v4101_v10  ;;  %v4152_v30 = vadd.f32 %v3301_v20, %v4084_v62  ;;  %v3810_v52 = vmov 1966171168  }
 0x4af   :  { %v457_v24 = vand.u32 2147483647, %v4135_v22  ;;  %v493_v55 = vunpack.c.l.s4 %v3810_v52  ;;  %vm453_vm13 = vcmp.ne.f32.partialorder %v4135_v22, %v4135_v22 }
 0x4b0   :  { %909 = vbcast.lane.b32.xlu0 %v906_v0, 320  ;;  %877 = vbcast.lane.b32.xlu1 %v870_v61, 328  ;;  %v458_v32 = vand.u32 2147483647, %v4152_v30  ;;  %vm454_vm15 = vcmp.ne.f32.partialorder %v4152_v30, %v4152_v30 }
 0x4b1   :  { %v459_v25 = vsub.f32 0.0, %v457_v24 }
 0x4b2   :  { %v460_v36 = vsub.f32 0.0, %v458_v32 }
 0x4b3   :  { %v461_v27 = vmul.f32 1.442695, %v459_v25 }
 0x4b4   :  { %921 = vbcast.lane.b32.xlu0 %v918_v4, 320  ;;  %889 = vbcast.lane.b32.xlu1 %v882_v56, 328  ;;  %v463_v38 = vmul.f32 1.442695, %v460_v36 }
 0x4b5   :  { %3532 = vpow2.f32 %v461_v27 }
 0x4b6   :  { %3534 = vrcp.f32 %v1577_v29 }
 0x4b8   :  { %933 = vbcast.lane.b32.xlu0 %v930_v6, 320  ;;  %897 = vbcast.lane.b32.xlu1 %v894_v7, 320 }
 0x4bc   :  { %945 = vbcast.lane.b32.xlu0 %v942_v9, 320  ;;  %901 = vbcast.lane.b32.xlu1 %v894_v7, 328 }
 0x4bf   :  { %v3533_v31 = vpop.eup %3532 }
 0x4c0   :  { %1173 = vbcast.lane.b32.xlu0 %v870_v61, 336  ;;  %913 = vbcast.lane.b32.xlu1 %v906_v0, 328  ;;  %v465_v33 = vadd.f32 1.0, %v3533_v31  ;;  %v3535_v34 = vpop.eup %3534  ;;  %v468_v41 = vmul.f32 -0.5, %v3533_v31 }
 0x4c1   :  { %v1583_v37 = vmul.f32 %v3535_v34, %v4022_v59  ;;  %v471_v59 = vand.u32 2147483647, %v3533_v31 }
 0x4c2   :  { %3536 = vlog2.f32 %v465_v33  ;;  %v469_v45 = vadd.f32 1.0, %v468_v41 }
 0x4c3   :  { %3538 = vpow2.f32 %v3304_v35  ;;  %vm472_vm12 = vcmp.lt.f32.partialorder %v471_v59, 0.0004427343  ;;  %v4217_v35 = vld [vmem:[%s5275_s10] sm:$0xff] }
 0x4c4   :  { %1181 = vbcast.lane.b32.xlu0 %v882_v56, 336  ;;  %925 = vbcast.lane.b32.xlu1 %v918_v4, 328  ;;  %3540 = vpow2.f32 %v463_v38 }
 0x4c8   :  { %1189 = vbcast.lane.b32.xlu0 %v894_v7, 336  ;;  %937 = vbcast.lane.b32.xlu1 %v930_v6, 328 }
 0x4cc   :  { %957 = vbcast.lane.b32.xlu0 %v954_v11, 320  ;;  %949 = vbcast.lane.b32.xlu1 %v942_v9, 328  ;;  %v3537_v44 = vpop.eup %3536 }
 0x4cd   :  { %v3539_v46 = vpop.eup %3538  ;;  %v467_v47 = vmul.f32 0.6931472, %v3537_v44 }
 0x4ce   :  { %v3541_v62 = vpop.eup %3540 }
 0x4d0   :  { %1197 = vbcast.lane.b32.xlu0 %v906_v0, 336  ;;  %1177 = vbcast.lane.b32.xlu1 %v870_v61, 344  ;;  %v1578_v61 = vadd.f32 1.0, %v3539_v46 }
 0x4d2   :  { %3542 = vrcp.f32 %v1578_v61  ;;  %v4239_v61 = vld [vmem:[%s5275_s10 + $0x8] sm:$0xff] }
 0x4d4   :  { %1205 = vbcast.lane.b32.xlu0 %v918_v4, 336  ;;  %1185 = vbcast.lane.b32.xlu1 %v882_v56, 344  ;;  %v470_v56 = vmul.f32 %v3533_v31, %v469_v45 }
 0x4d6   :  { %v473_v63 = vsel %vm472_vm12, %v470_v56, %v467_v47  ;;  %v3502_v47 = vld [vmem:[%s5277_s12] sm:$0xff]   ;;  %vm1548_vm12 = vcmask 1043456  }
 0x4d7   :  { %3427 = vmatpush3.bf16.msra.mxu0 %v3502_v47 }
 0x4d8   :  { %1213 = vbcast.lane.b32.xlu0 %v930_v6, 336  ;;  %1193 = vbcast.lane.b32.xlu1 %v894_v7, 344  ;;  %v494_v7 = vunpack.c.0.s8 %v493_v55 }
 0x4d9   :  { %3428 = vmatprep.subr.bf16.mxu0 %v5286_v1 }
 0x4dc   :  { %1221 = vbcast.lane.b32.xlu0 %v942_v9, 336  ;;  %961 = vbcast.lane.b32.xlu1 %v954_v11, 328  ;;  %v3543_v27 = vpop.eup %3542 }
 0x4dd   :  { %v1584_v31 = vmul.f32 %v3543_v27, %v4036_v2 }
 0x4e0   :  { %1229 = vbcast.lane.b32.xlu0 %v954_v11, 336  ;;  %1201 = vbcast.lane.b32.xlu1 %v906_v0, 344 }
 0x4e4   :  { %1209 = vbcast.lane.b32.xlu1 %v918_v4, 344  ;;  %993 = vbcast.lane.b32.xlu0 %v4106_v12, 320 }
 0x4e8   :  { %1217 = vbcast.lane.b32.xlu1 %v930_v6, 344  ;;  %1005 = vbcast.lane.b32.xlu0 %v4111_v13, 320  ;;  %v451_v6 = vmax.f32 %v4135_v22, 0.0 }
 0x4ec   :  { %1225 = vbcast.lane.b32.xlu1 %v942_v9, 344  ;;  %1017 = vbcast.lane.b32.xlu0 %v4116_v15, 320  ;;  %v483_v9 = vadd.f32 %v473_v63, %v451_v6  ;;  %v452_v6 = vmax.f32 %v4152_v30, 0.0 }
 0x4ee   :  { %v485_v20 = vsel %vm453_vm13, %v4135_v22, %v483_v9  ;;  %vm1551_vm13 = vcmask 1044480  }
 0x4ef   :  { %v765_v36 = vmul.f32 %v485_v20, %v4073_v49  ;;  %v491_v45 = vcombine.high %v485_v20, %v485_v20 }
 0x4f0   :  { %1233 = vbcast.lane.b32.xlu1 %v954_v11, 344  ;;  %1029 = vbcast.lane.b32.xlu0 %v4121_v16, 320  ;;  %v474_v11 = vadd.f32 1.0, %v3541_v62 }
 0x4f1   :  { %v769_v55 = vcombine.high %v765_v36, %v765_v36 }
 0x4f2   :  { %3544 = vlog2.f32 %v474_v11 }
 0x4f4   :  { %1041 = vbcast.lane.b32.xlu0 %v4126_v18, 320  ;;  %969 = vbcast.lane.b32.xlu1 %v966_v19, 320 }
 0x4f8   :  { %1237 = vbcast.lane.b32.xlu0 %v966_v19, 336  ;;  %973 = vbcast.lane.b32.xlu1 %v966_v19, 328 }
 0x4fc   :  { %1245 = vbcast.lane.b32.xlu0 %v978_v23, 336  ;;  %981 = vbcast.lane.b32.xlu1 %v978_v23, 320  ;;  %v3545_v32 = vpop.eup %3544 }
 0x4fd   :  { %v476_v2 = vmul.f32 0.6931472, %v3545_v32 }
 0x500   :  { %1253 = vbcast.lane.b32.xlu0 %v4106_v12, 336  ;;  %985 = vbcast.lane.b32.xlu1 %v978_v23, 328 }
 0x504   :  { %1053 = vbcast.lane.b32.xlu0 %v4143_v26, 320  ;;  %997 = vbcast.lane.b32.xlu1 %v4106_v12, 328 }
 0x508   :  { %1261 = vbcast.lane.b32.xlu0 %v4111_v13, 336  ;;  %1009 = vbcast.lane.b32.xlu1 %v4111_v13, 328 }
 0x50c   :  { %1269 = vbcast.lane.b32.xlu0 %v4116_v15, 336  ;;  %1021 = vbcast.lane.b32.xlu1 %v4116_v15, 328 }
 0x510   :  { %1277 = vbcast.lane.b32.xlu0 %v4121_v16, 336  ;;  %1033 = vbcast.lane.b32.xlu1 %v4121_v16, 328 }
 0x514   :  { %1285 = vbcast.lane.b32.xlu0 %v4126_v18, 336  ;;  %1045 = vbcast.lane.b32.xlu1 %v4126_v18, 328 }
 0x518   :  { %1293 = vbcast.lane.b32.xlu0 %v4143_v26, 336  ;;  %1241 = vbcast.lane.b32.xlu1 %v966_v19, 344 }
 0x51c   :  { %1587 = vrot.lane.b32.xlu0 %v1583_v37, %s3804_s3  ;;  %1249 = vbcast.lane.b32.xlu1 %v978_v23, 344 }
 0x51e   :  { %v4163_v39 = vpop.permute.xlu0 %885  ;;  %v4165_v40 = vpop.permute.xlu1 %873 }
 0x520   :  { %1257 = vbcast.lane.b32.xlu1 %v4106_v12, 344 }
 0x522   :  { %v4168_v42 = vpop.permute.xlu0 %909  ;;  %v4170_v43 = vpop.permute.xlu1 %877 }
 0x524   :  { %1057 = vbcast.lane.b32.xlu1 %v4143_v26, 328 }
 0x526   :  { %v4173_v48 = vpop.permute.xlu0 %921  ;;  %v4175_v51 = vpop.permute.xlu1 %889 }
 0x528   :  { %1265 = vbcast.lane.b32.xlu1 %v4111_v13, 344  ;;  %v4189_v13 = vsub.s32 %v494_v7, %v4007_v53  ;;  %v3503_v7 = vld [vmem:[%s5277_s12 + $0x8] sm:$0xff]  }
 0x529   :  { %3429 = vmatpush3.bf16.msra.mxu0 %v3503_v7 }
 0x52a   :  { %v4178_v0 = vpop.permute.xlu0 %933  ;;  %v4180_v4 = vpop.permute.xlu1 %897  ;;  %5322 = vst [vmem:[#allocation24_spill] sm:$0xff] %v4189_v13  ;;  %v498_v23 = vrot.slane %v485_v20, %v4189_v13  ;;  %v776_v52 = vrot.slane %v765_v36, %v4189_v13  ;;  %v505_v20 = vrot.slane %v491_v45, %v4189_v13  ;;  %v3504_v36 = vld [vmem:[%s5277_s12 + $0x10] sm:$0xff]   ;;  %3430 = vmatprep.subr.bf16.mxu0 %v5286_v1 }
 0x52c   :  { %1273 = vbcast.lane.b32.xlu1 %v4116_v15, 344  ;;  %v514_v28 = vrot.slane %v498_v23, %v4189_v13  ;;  %v506_v33 = vcombine.high %v498_v23, %v498_v23  ;;  %v507_v45 = vcombine.high %v505_v20, %v505_v20 }
 0x52d   :  { %3431 = vmatpush3.bf16.msra.mxu0 %v3504_v36 }
 0x52e   :  { %v4184_v12 = vpop.permute.xlu0 %945  ;;  %v4186_v19 = vpop.permute.xlu1 %901  ;;  %v528_v41 = vrot.slane %v506_v33, %v4189_v13  ;;  %v536_v32 = vcombine.high %v514_v28, %v514_v28  ;;  %3432 = vmatprep.subr.bf16.mxu0 %v5286_v1 }
 0x530   :  { %1281 = vbcast.lane.b32.xlu1 %v4121_v16, 344  ;;  %v477_v16 = vmul.f32 -0.5, %v3541_v62  ;;  %v596_v11 = vrot.slane %v528_v41, %v4020_v58  ;;  %v600_v47 = vrot.slane %v536_v32, %v4020_v58 }
 0x532   :  { %v4195_v21 = vpop.permute.xlu0 %1173  ;;  %v4197_v15 = vpop.permute.xlu1 %913  ;;  %v478_v34 = vadd.f32 1.0, %v477_v16  ;;  %v784_v16 = vcombine.high %v776_v52, %v776_v52  ;;  %v673_v36 = vmul.f32 %v600_v47, %v4217_v35 }
 0x534   :  { %1289 = vbcast.lane.b32.xlu1 %v4126_v18, 344  ;;  %v592_v18 = vrot.slane %v514_v28, %v4020_v58  ;;  %v479_v59 = vmul.f32 %v3541_v62, %v478_v34  ;;  %v792_v28 = vrot.slane %v776_v52, %v4189_v13  ;;  %v3505_v52 = vld [vmem:[%s5277_s12 + $0x18] sm:$0xff]   ;;  %v709_v57 = vmul.f32 1.442695, %v673_v36 }
 0x535   :  { %3433 = vmatpush3.bf16.msra.mxu0 %v3505_v52 }
 0x536   :  { %v4201_v24 = vpop.permute.xlu0 %1181  ;;  %v4203_v25 = vpop.permute.xlu1 %925  ;;  %v669_v44 = vmul.f32 %v592_v18, %v4217_v35  ;;  %v670_v23 = vmul.f32 %v592_v18, %v4239_v61  ;;  %v521_v18 = vrot.slane %v505_v20, %v4189_v13  ;;  %v1062_v1 = vrot.slane %v792_v28, %v4020_v58 }
 0x538   :  { %1297 = vbcast.lane.b32.xlu1 %v4143_v26, 344  ;;  %v480_v26 = vand.u32 2147483647, %v3541_v62  ;;  %v701_v9 = vmul.f32 1.442695, %v669_v44 }
 0x539   :  { %v703_v44 = vmul.f32 1.442695, %v670_v23  ;;  %v814_v23 = vcombine.high %v792_v28, %v792_v28 }
 0x53a   :  { %v4207_v22 = vpop.permute.xlu0 %1189  ;;  %v4209_v29 = vpop.permute.xlu1 %937  ;;  %vm4226_vm14 = vcmp.lt.f32.partialorder %v480_v26, 0.0004427343  ;;  %v538_v26 = vcombine.high %v528_v41, %v528_v41  ;;  %3546 = vpow2.f32 %v701_v9  ;;  %v608_v9 = vrot.slane %v521_v18, %v4020_v58 }
 0x53b   :  { %v482_v62 = vsel %vm4226_vm14, %v479_v59, %v476_v2  ;;  %v671_v2 = vmul.f32 %v596_v11, %v4217_v35  ;;  %v806_v59 = vrot.slane %v784_v16, %v4189_v13  ;;  %3548 = vpow2.f32 %v703_v44 }
 0x53c   :  { %1589 = vrot.lane.b32.xlu1 %v1584_v31, %s3804_s3  ;;  %v484_v27 = vadd.f32 %v482_v62, %v452_v6  ;;  %v783_v31 = vrot.slane %v769_v55, %v4189_v13  ;;  %v604_v6 = vrot.slane %v538_v26, %v4020_v58  ;;  %v535_v16 = vrot.slane %v507_v45, %v4189_v13 }
 0x53d   :  { %v816_v32 = vcombine.high %v806_v59, %v806_v59  ;;  %v4294_v8 = vrot.slane %v806_v59, %v4020_v58  ;;  %v5331_v59 = vmov 0.0   ;;  %v4311_v28 = vrot.slane %v814_v23, %v4020_v58 }
 0x53e   :  { %v4220_v37 = vpop.permute.xlu0 %957  ;;  %v4222_v38 = vpop.permute.xlu1 %949  ;;  %v4268_v41 = vsel %vm454_vm15, %v4152_v30, %v484_v27  ;;  %v785_v46 = vcombine.high %v783_v31, %v783_v31  ;;  %v799_v7 = vrot.slane %v783_v31, %v4189_v13  ;;  %v705_v30 = vmul.f32 1.442695, %v671_v2  ;;  %3446 = vmatprep.subr.bf16.mxu0 %v5331_v59 }
 0x53f   :  { %5323 = vst [vmem:[#allocation25_spill] sm:$0xff] %v4220_v37  ;;  %5324 = vst [vmem:[#allocation26_spill] sm:$0xff] %v4222_v38  ;;  %v547_v20 = vrot.slane %v4268_v41, %v4189_v13  ;;  %v672_v27 = vmul.f32 %v596_v11, %v4239_v61  ;;  %v537_v2 = vcombine.high %v521_v18, %v521_v18  ;;  %vm1554_vm14 = vcmask 1045504  }
 0x540   :  { %v813_v26 = vrot.slane %v785_v46, %v4189_v13  ;;  %v675_v44 = vmul.f32 %v604_v6, %v4217_v35  ;;  %v4300_v11 = vmul.f32 %v4268_v41, %v4075_v50  ;;  %v4303_v45 = vrot.slane %v799_v7, %v4020_v58 }
 0x541   :  { %3550 = vpow2.f32 %v705_v30  ;;  %v677_v18 = vmul.f32 %v608_v9, %v4217_v35  ;;  %v4307_v46 = vrot.slane %v547_v20, %v4189_v13  ;;  %v815_v5 = vcombine.high %v799_v7, %v799_v7 }
 0x542   :  { %v4234_v56 = vpop.permute.xlu0 %1197  ;;  %v4241_v63 = vpop.permute.xlu1 %1177  ;;  %v707_v3 = vmul.f32 1.442695, %v672_v27  ;;  %v612_v53 = vrot.slane %v535_v16, %v4020_v58  ;;  %v4315_v52 = vrot.slane %v816_v32, %v4020_v58  ;;  %v4318_v30 = vrot.slane %v813_v26, %v4020_v58 }
 0x543   :  { %v616_v54 = vrot.slane %v537_v2, %v4020_v58  ;;  %v1139_v23 = vmul.f32 %v1062_v1, %v4165_v40  ;;  %v817_v7 = vcombine.high %v813_v26, %v813_v26  ;;  %v713_v27 = vmul.f32 1.442695, %v675_v44 }
 0x544   :  { %v3547_v60 = vpop.eup %3546  ;;  %v674_v59 = vmul.f32 %v600_v47, %v4239_v61  ;;  %v717_v50 = vmul.f32 1.442695, %v677_v18  ;;  %v676_v32 = vmul.f32 %v604_v6, %v4239_v61  ;;  %v555_v49 = vcombine.high %v547_v20, %v547_v20 }
 0x545   :  { %v1299_v36 = vmul.f32 0.0, %v3547_v60  ;;  %3552 = vpow2.f32 %v707_v3  ;;  %v679_v2 = vmul.f32 %v612_v53, %v4217_v35  ;;  %v681_v40 = vmul.f32 %v616_v54, %v4217_v35  ;;  %v3549_v6 = vpop.eup %3548 }
 0x546   :  { %v4254_v33 = vpop.permute.xlu0 %1205  ;;  %v4256_v34 = vpop.permute.xlu1 %1185  ;;  %3554 = vpow2.f32 %v709_v57  ;;  %v825_v47 = vrot.slane %v4300_v11, %v4189_v13  ;;  %v711_v60 = vmul.f32 1.442695, %v674_v59  ;;  %v678_v3 = vmul.f32 %v608_v9, %v4239_v61 }
 0x547   :  { %5327 = vst [vmem:[#allocation27_spill] sm:$0xff] %v4254_v33  ;;  %v4339_v20 = vadd.f32 %v1299_v36, %v1139_v23  ;;  %3556 = vpow2.f32 %v713_v27  ;;  %v715_v44 = vmul.f32 1.442695, %v676_v32  ;;  %v577_v57 = vrot.slane %v555_v49, %v4189_v13 }
 0x548   :  { %3558 = vpow2.f32 %v717_v50  ;;  %v1300_v59 = vmul.f32 0.0, %v3549_v6  ;;  %v725_v36 = vmul.f32 1.442695, %v681_v40  ;;  %v4352_v9 = vrot.slane %v825_v47, %v4189_v13 }
 0x549   :  { %3560 = vpow2.f32 %v711_v60  ;;  %v719_v32 = vmul.f32 1.442695, %v678_v3  ;;  %v585_v40 = vcombine.high %v4307_v46, %v4307_v46  ;;  %vm1557_vm15 = vcmask 1046528  }
 0x54a   :  { %v4272_v55 = vpop.permute.xlu0 %1213  ;;  %v4274_v62 = vpop.permute.xlu1 %1193  ;;  %3562 = vpow2.f32 %v715_v44  ;;  %v587_v44 = vcombine.high %v577_v57, %v577_v57 }
 0x54b   :  { %5328 = vst [vmem:[#allocation28_spill] sm:$0xff] %v4272_v55  ;;  %v4348_v55 = vrot.slane %v817_v7, %v4020_v58  ;;  %v3551_v27 = vpop.eup %3550  ;;  %v680_v7 = vmul.f32 %v612_v53, %v4239_v61  ;;  %v863_v53 = vcombine.high %v4352_v9, %v4352_v9 }
 0x54c   :  { %v1329_v49 = vmul.f32 %v3551_v27, %v4339_v20  ;;  %v1142_v27 = vmul.f32 %v4294_v8, %v4175_v51 }
 0x54d   :  { %5334 = vst [vmem:[#allocation33_spill] sm:$0xff] %v4348_v55 }
 0x54e   :  { %v4289_v31 = vpop.permute.xlu0 %1221  ;;  %v4291_v10 = vpop.permute.xlu1 %961 }
 0x54f   :  { %5329 = vst [vmem:[#allocation29_spill] sm:$0xff] %v4289_v31  ;;  %5330 = vst [vmem:[#allocation30_spill] sm:$0xff] %v4291_v10  ;;  %v624_v31 = vrot.slane %v4307_v46, %v4020_v58  ;;  %v4332_v10 = vrot.slane %v815_v5, %v4020_v58  ;;  %v682_v46 = vmul.f32 %v616_v54, %v4239_v61 }
 0x550   :  { %v540_v54 = vcombine.high %v4268_v41, %v4268_v41 }
 0x551   :  { %v685_v18 = vmul.f32 %v624_v31, %v4217_v35 }
 0x552   :  { %v4321_v17 = vpop.permute.xlu0 %1229  ;;  %v4323_v14 = vpop.permute.xlu1 %1201 }
 0x553   :  { %5332 = vst [vmem:[#allocation31_spill] sm:$0xff] %v4321_v17  ;;  %v539_v17 = vcombine.high %v535_v16, %v535_v16  ;;  %v1140_v16 = vmul.f32 %v1062_v1, %v4170_v43  ;;  %v833_v43 = vcombine.high %v825_v47, %v825_v47  ;;  %v733_v50 = vmul.f32 1.442695, %v685_v18 }
 0x554   :  { %v686_v47 = vmul.f32 %v624_v31, %v4239_v61  ;;  %v818_v31 = vcombine.high %v4300_v11, %v4300_v11 }
 0x555   :  { %v620_v23 = vrot.slane %v539_v17, %v4020_v58  ;;  %v4358_v33 = vadd.f32 %v1300_v59, %v1140_v16  ;;  %v628_v17 = vrot.slane %v577_v57, %v4020_v58  ;;  %v4372_v3 = vrot.slane %v833_v43, %v4189_v13 }
 0x556   :  { %v4335_v26 = vpop.permute.xlu1 %1209  ;;  %v4343_v5 = vpop.permute.xlu0 %993  ;;  %v735_v11 = vmul.f32 1.442695, %v686_v47  ;;  %v832_v41 = vrot.slane %v818_v31, %v4189_v13  ;;  %v1144_v31 = vmul.f32 %v4311_v28, %v4186_v19 }
 0x557   :  { %5333 = vst [vmem:[#allocation32_spill] sm:$0xff] %v4335_v26  ;;  %v721_v26 = vmul.f32 1.442695, %v679_v2  ;;  %v1141_v2 = vmul.f32 %v4294_v8, %v4163_v39  ;;  %v683_v6 = vmul.f32 %v620_v23, %v4217_v35  ;;  %v3553_v39 = vpop.eup %3552  ;;  %v684_v8 = vmul.f32 %v620_v23, %v4239_v61 }
 0x558   :  { %v3555_v18 = vpop.eup %3554  ;;  %v1330_v59 = vmul.f32 %v3553_v39, %v4358_v33  ;;  %v4397_v39 = vrot.slane %v863_v53, %v4020_v58  ;;  %v636_v23 = vrot.slane %v587_v44, %v4020_v58  ;;  %v554_v53 = vrot.slane %v540_v54, %v4189_v13 }
 0x559   :  { %3564 = vpow2.f32 %v721_v26  ;;  %v4376_v26 = vadd.f32 %v1329_v49, %v1141_v2  ;;  %v3557_v43 = vpop.eup %3556  ;;  %v1143_v49 = vmul.f32 %v4311_v28, %v4180_v4  ;;  %v632_v2 = vrot.slane %v585_v40, %v4020_v58 }
 0x55a   :  { %v4354_v1 = vpop.permute.xlu1 %1217  ;;  %3566 = vpow2.f32 %v725_v36  ;;  %v4369_v60 = vpop.permute.xlu0 %1005  ;;  %v687_v36 = vmul.f32 %v628_v17, %v4217_v35  ;;  %v729_v57 = vmul.f32 1.442695, %v683_v6  ;;  %v865_v4 = vcombine.high %v4372_v3, %v4372_v3 }
 0x55b   :  { %5335 = vst [vmem:[#allocation34_spill] sm:$0xff] %v4354_v1  ;;  %3568 = vpow2.f32 %v733_v50  ;;  %v4393_v51 = vpop.eup %3558  ;;  %v1359_v50 = vmul.f32 %v3555_v18, %v4376_v26  ;;  %v4402_v40 = vadd.f32 %v1330_v59, %v1142_v27  ;;  %v689_v18 = vmul.f32 %v632_v2, %v4217_v35 }
 0x55c   :  { %3570 = vpow2.f32 %v719_v32  ;;  %v727_v32 = vmul.f32 1.442695, %v682_v46  ;;  %v737_v47 = vmul.f32 1.442695, %v687_v36  ;;  %v3561_v6 = vpop.eup %3560  ;;  %v731_v27 = vmul.f32 1.442695, %v684_v8 }
 0x55d   :  { %3572 = vpow2.f32 %v735_v11  ;;  %v3563_v55 = vpop.eup %3562  ;;  %v688_v59 = vmul.f32 %v628_v17, %v4239_v61  ;;  %v848_v44 = vrot.slane %v832_v41, %v4189_v13  ;;  %v1360_v11 = vmul.f32 %v3561_v6, %v4402_v40 }
 0x55e   :  { %v4374_v16 = vpop.permute.xlu1 %1225  ;;  %3574 = vpow2.f32 %v729_v57  ;;  %v4423_v19 = vrot.slane %v865_v4, %v4020_v58  ;;  %v691_v28 = vmul.f32 %v636_v23, %v4217_v35  ;;  %v570_v57 = vrot.slane %v554_v53, %v4189_v13 }
 0x55f   :  { %5336 = vst [vmem:[#allocation35_spill] sm:$0xff] %v4374_v16  ;;  %v723_v16 = vmul.f32 1.442695, %v680_v7  ;;  %v4404_v7 = vpop.permute.xlu0 %1017  ;;  %v556_v6 = vcombine.high %v554_v53, %v554_v53  ;;  %v739_v37 = vmul.f32 1.442695, %v688_v59  ;;  %v1145_v4 = vmul.f32 %v4315_v52, %v4168_v42 }
 0x560   :  { %5338 = vst [vmem:[#allocation37_spill] sm:$0xff] %v4404_v7  ;;  %v4438_v38 = vrot.slane %v848_v44, %v4020_v58  ;;  %v640_v42 = vrot.slane %v570_v57, %v4020_v58 }
 0x561   :  { %3576 = vpow2.f32 %v723_v16  ;;  %v741_v16 = vmul.f32 1.442695, %v689_v18 }
 0x562   :  { %v4390_v1 = vpop.permute.xlu1 %1233  ;;  %3578 = vpow2.f32 %v737_v47  ;;  %5340 = vst [vmem:[#allocation39_spill] sm:$0xff] %v4438_v38 }
 0x563   :  { %5337 = vst [vmem:[#allocation36_spill] sm:$0xff] %v4390_v1  ;;  %v4407_v1 = vadd.f32 %v1359_v50, %v1143_v49  ;;  %v4414_v36 = vpop.eup %3564  ;;  %v834_v49 = vcombine.high %v832_v41, %v832_v41  ;;  %v1094_v50 = vrot.slane %v4352_v9, %v4020_v58  ;;  %3580 = vpow2.f32 %v727_v32  ;;  %v4430_v9 = vpop.permute.xlu0 %1029 }
 0x564   :  { %v4419_v54 = vpop.eup %3566  ;;  %v4428_v41 = vadd.f32 %v1360_v11, %v1144_v31  ;;  %3582 = vpow2.f32 %v731_v27  ;;  %5339 = vst [vmem:[#allocation38_spill] sm:$0xff] %v4430_v9  ;;  %v1098_v31 = vrot.slane %v4372_v3, %v4020_v58  ;;  %v745_v27 = vmul.f32 1.442695, %v691_v28 }
 0x565   :  { %v1389_v17 = vmul.f32 %v3557_v43, %v4407_v1  ;;  %v3569_v8 = vpop.eup %3568  ;;  %v4435_v47 = vrot.slane %v834_v49, %v4189_v13  ;;  %v864_v43 = vcombine.high %v848_v44, %v848_v44  ;;  %v690_v11 = vmul.f32 %v632_v2, %v4239_v61 }
 0x566   :  { %v970_v46 = vpop.permute.xlu1 %969  ;;  %v3571_v18 = vpop.eup %3570  ;;  %v1301_v59 = vmul.f32 0.0, %v3569_v8  ;;  %3584 = vpow2.f32 %v741_v16  ;;  %v1146_v49 = vmul.f32 %v4315_v52, %v4197_v15  ;;  %v584_v44 = vrot.slane %v556_v6, %v4189_v13 }
 0x567   :  { %v1155_v32 = vmul.f32 %v1094_v50, %v970_v46  ;;  %v4443_v53 = vadd.f32 %v1389_v17, %v1145_v4  ;;  %v1390_v46 = vmul.f32 %v3563_v55, %v4428_v41  ;;  %3586 = vpow2.f32 %v739_v37  ;;  %v3573_v38 = vpop.eup %3572  ;;  %v4463_v55 = vpop.permute.xlu0 %1041 }
 0x568   :  { %v4452_v3 = vrot.slane %v4435_v47, %v4020_v58  ;;  %v4455_v2 = vrot.slane %v864_v43, %v4020_v58  ;;  %v4461_v15 = vpop.eup %3574  ;;  %3588 = vpow2.f32 %v745_v27  ;;  %v586_v52 = vcombine.high %v570_v57, %v570_v57 }
 0x569   :  { %v4457_v28 = vadd.f32 %v1301_v59, %v1155_v32  ;;  %v743_v37 = vmul.f32 1.442695, %v690_v11  ;;  %v692_v16 = vmul.f32 %v636_v23, %v4239_v61  ;;  %v1419_v6 = vmul.f32 %v4393_v51, %v4443_v53 }
 0x56a   :  { %v974_v7 = vpop.permute.xlu1 %973  ;;  %5341 = vst [vmem:[#allocation40_spill] sm:$0xff] %v4455_v2  ;;  %v1338_v4 = vmul.f32 %v4402_v40, %v4256_v34  ;;  %v4472_v17 = vadd.f32 %v1390_v46, %v1146_v49  ;;  %v693_v27 = vmul.f32 %v640_v42, %v4217_v35  ;;  %v644_v57 = vrot.slane %v584_v44, %v4020_v58 }
 0x56b   :  { %v4466_v8 = vpop.eup %3576  ;;  %v1156_v43 = vmul.f32 %v1094_v50, %v974_v7  ;;  %v1302_v11 = vmul.f32 0.0, %v3573_v38  ;;  %v1147_v2 = vmul.f32 %v4303_v45, %v4173_v48  ;;  %v1337_v51 = vmul.f32 %v4376_v26, %v4201_v24  ;;  %v4500_v26 = vpop.permute.xlu0 %1237 }
 0x56c   :  { %v3579_v59 = vpop.eup %3578  ;;  %v1308_v34 = vmul.f32 %v4358_v33, %v4241_v63  ;;  %v1307_v50 = vmul.f32 %v4339_v20, %v4195_v21  ;;  %v648_v38 = vrot.slane %v586_v52, %v4020_v58  ;;  %3590 = vpow2.f32 %v743_v37 }
 0x56d   :  { %v4476_v23 = vpop.eup %3580  ;;  %v1331_v40 = vmul.f32 %v3579_v59, %v4457_v28  ;;  %v4490_v49 = vadd.f32 %v1419_v6, %v1147_v2  ;;  %v1342_v48 = vsel %vm397_vm11, %v1338_v4, 0.0  ;;  %v4495_v24 = vadd.f32 %v1302_v11, %v1156_v43 }
 0x56e   :  { %v982_v9 = vpop.permute.xlu1 %981  ;;  %v4485_v7 = vpop.eup %3582  ;;  %v1148_v63 = vmul.f32 %v4303_v45, %v4203_v25  ;;  %v1420_v33 = vmul.f32 %v3571_v18, %v4472_v17  ;;  %v695_v20 = vmul.f32 %v644_v57, %v4217_v35  ;;  %v1341_v52 = vsel %vm397_vm11, %v1337_v51, 0.0 }
 0x56f   :  { %v1157_v32 = vmul.f32 %v1098_v31, %v982_v9  ;;  %v588_v9 = vcombine.high %v584_v44, %v584_v44  ;;  %v694_v44 = vmul.f32 %v640_v42, %v4239_v61  ;;  %v1312_v37 = vsel %vm397_vm11, %v1308_v34, 0.0 }
 0x570   :  { %v3585_v2 = vpop.eup %3584  ;;  %v747_v4 = vmul.f32 1.442695, %v692_v16  ;;  %v749_v59 = vmul.f32 1.442695, %v693_v27  ;;  %v697_v25 = vmul.f32 %v648_v38, %v4217_v35  ;;  %v1311_v18 = vsel %vm397_vm11, %v1307_v50, 0.0 }
 0x571   :  { %v4493_v46 = vadd.f32 %v1331_v40, %v1157_v32  ;;  %v3587_v43 = vpop.eup %3586  ;;  %v1343_v32 = vadd.f32 %v1342_v48, %v1341_v52  ;;  %v652_v45 = vrot.slane %v588_v9, %v4020_v58  ;;  %v1449_v11 = vmul.f32 %v4414_v36, %v4490_v49  ;;  %v4523_v52 = vpop.permute.xlu0 %1245 }
 0x572   :  { %v986_v13 = vpop.permute.xlu1 %985  ;;  %v1332_v51 = vmul.f32 %v3587_v43, %v4495_v24  ;;  %v3589_v40 = vpop.eup %3588  ;;  %v1313_v34 = vadd.f32 %v1312_v37, %v1311_v18  ;;  %v753_v16 = vmul.f32 1.442695, %v695_v20  ;;  %v751_v27 = vmul.f32 1.442695, %v694_v44 }
 0x573   :  { %v1158_v6 = vmul.f32 %v1098_v31, %v986_v13  ;;  %v1361_v42 = vmul.f32 %v3585_v2, %v4493_v46  ;;  %v4513_v13 = vadd.f32 %v1420_v33, %v1148_v63  ;;  %v1149_v48 = vmul.f32 %v4318_v30, %v4178_v0 }
 0x574   :  { %v1368_v50 = vmul.f32 %v4428_v41, %v4274_v62  ;;  %v1159_v36 = vmul.f32 %v4397_v39, %v4343_v5  ;;  %v1344_v2 = vrot.slane %v1343_v32, 4  ;;  %v757_v37 = vmul.f32 1.442695, %v697_v25 }
 0x575   :  { %v4521_v9 = vadd.f32 %v1332_v51, %v1158_v6  ;;  %3592 = vpow2.f32 %v747_v4  ;;  %v696_v63 = vmul.f32 %v644_v57, %v4239_v61  ;;  %v1367_v33 = vmul.f32 %v4407_v1, %v4207_v22 }
 0x576   :  { %v998_v21 = vpop.permute.xlu1 %997  ;;  %v4528_v20 = vadd.f32 %v1449_v11, %v1149_v48  ;;  %v4530_v0 = vadd.f32 %v1361_v42, %v1159_v36  ;;  %3594 = vpow2.f32 %v749_v59  ;;  %v3591_v62 = vpop.eup %3590  ;;  %v1150_v5 = vmul.f32 %v4318_v30, %v4209_v29 }
 0x577   :  { %v1314_v41 = vrot.slane %v1313_v34, 4  ;;  %v1450_v44 = vmul.f32 %v4466_v8, %v4513_v13  ;;  %v699_v57 = vmul.f32 %v652_v45, %v4217_v35  ;;  %v1372_v4 = vsel %vm397_vm11, %v1368_v50, 0.0  ;;  %v4550_v11 = vpop.permute.xlu0 %1253 }
 0x578   :  { %v1160_v22 = vmul.f32 %v4397_v39, %v998_v21  ;;  %3596 = vpow2.f32 %v753_v16  ;;  %v1362_v1 = vmul.f32 %v3591_v62, %v4521_v9  ;;  %v1345_v43 = vadd.f32 %v1344_v2, %v1343_v32 }
 0x579   :  { %3598 = vpow2.f32 %v757_v37  ;;  %v698_v59 = vmul.f32 %v648_v38, %v4239_v61  ;;  %v700_v29 = vmul.f32 %v652_v45, %v4239_v61  ;;  %v1371_v30 = vsel %vm397_vm11, %v1367_v33, 0.0 }
 0x57a   :  { %v1010_v31 = vpop.permute.xlu1 %1009  ;;  %v1479_v8 = vmul.f32 %v4419_v54, %v4528_v20  ;;  %v1398_v35 = vmul.f32 %v4472_v17, %v4323_v14  ;;  %v1391_v25 = vmul.f32 %v3589_v40, %v4530_v0  ;;  %v1315_v39 = vadd.f32 %v1314_v41, %v1313_v34 }
 0x57b   :  { %v1373_v21 = vadd.f32 %v1372_v4, %v1371_v30  ;;  %v1454_v18 = vadd.f32 %v1450_v44, %v1150_v5  ;;  %v761_v38 = vmul.f32 1.442695, %v699_v57  ;;  %v1151_v61 = vmul.f32 %v4332_v10, %v4184_v12  ;;  %v5342_v12 = vld [vmem:[#allocation26_spill] sm:$0xff]  ;;  %v4573_v41 = vpop.permute.xlu0 %1053  ;;  %v5344_v57 = vld [vmem:[#allocation25_spill] sm:$0xff] }
 0x57c   :  { %v1397_v45 = vmul.f32 %v4443_v53, %v4234_v56  ;;  %v1161_v54 = vmul.f32 %v4423_v19, %v4369_v60  ;;  %v4560_v14 = vadd.f32 %v1362_v1, %v1160_v22  ;;  %v1346_v17 = vrot.slane %v1345_v43, 2  ;;  %v5345_v4 = vld [vmem:[#allocation33_spill] sm:$0xff] }
 0x57d   :  { %3600 = vpow2.f32 %v751_v27  ;;  %v755_v42 = vmul.f32 1.442695, %v696_v63  ;;  %v759_v51 = vmul.f32 1.442695, %v698_v59  ;;  %v1483_v40 = vadd.f32 %v1479_v8, %v1151_v61  ;;  %v5346_v59 = vld [vmem:[#allocation27_spill] sm:$0xff] }
 0x57e   :  { %v4536_v6 = vpop.permute.xlu1 %1021  ;;  %v1402_v34 = vsel %vm397_vm11, %v1398_v35, 0.0  ;;  %v4563_v16 = vadd.f32 %v1391_v25, %v1161_v54  ;;  %v763_v48 = vmul.f32 1.442695, %v700_v29  ;;  %v1152_v36 = vmul.f32 %v4332_v10, %v5342_v12  ;;  %v5347_v35 = vld [vmem:[#allocation32_spill] sm:$0xff]  ;;  %v5349_v61 = vld [vmem:[#allocation39_spill] sm:$0xff]  ;;  %v5353_v12 = vld [vmem:[#allocation34_spill] sm:$0xff] }
 0x57f   :  { %v3593_v50 = vpop.eup %3592  ;;  %v1316_v56 = vrot.slane %v1315_v39, 2  ;;  %v1374_v53 = vrot.slane %v1373_v21, 4  ;;  %v1480_v60 = vmul.f32 %v4476_v23, %v1454_v18  ;;  %v1401_v27 = vsel %vm397_vm11, %v1397_v45, 0.0 }
 0x580   :  { %v3595_v37 = vpop.eup %3594  ;;  %v1162_v63 = vmul.f32 %v4423_v19, %v1010_v31  ;;  %3602 = vpow2.f32 %v761_v38  ;;  %v1392_v33 = vmul.f32 %v3593_v50, %v4560_v14  ;;  %v1347_v62 = vadd.f32 %v1346_v17, %v1345_v43  ;;  %v5348_v38 = vld [vmem:[#allocation37_spill] sm:$0xff]  ;;  %v5350_v17 = vld [vmem:[#allocation28_spill] sm:$0xff] }
 0x581   :  { %v1403_v5 = vadd.f32 %v1402_v34, %v1401_v27  ;;  %v5343_v10 = vcombine.high %v4435_v47, %v4435_v47  ;;  %3604 = vpow2.f32 %v755_v42  ;;  %v1153_v22 = vmul.f32 %v5345_v4, %v5344_v57  ;;  %v1262_v27 = vpop.permute.xlu0 %1261 }
 0x582   :  { %v4552_v32 = vpop.permute.xlu1 %1033  ;;  %v3597_v23 = vpop.eup %3596  ;;  %v1509_v19 = vmul.f32 %v4461_v15, %v1483_v40  ;;  %v1421_v31 = vmul.f32 %v3595_v37, %v4563_v16  ;;  %3606 = vpow2.f32 %v759_v51  ;;  %v1317_v43 = vadd.f32 %v1316_v56, %v1315_v39  ;;  %v5351_v39 = vld [vmem:[#allocation30_spill] sm:$0xff] }
 0x583   :  { %v4579_v44 = vrot.slane %v5343_v10, %v4020_v58  ;;  %v4585_v1 = vpop.eup %3598  ;;  %v1427_v29 = vmul.f32 %v4490_v49, %v5346_v59  ;;  %v1375_v47 = vadd.f32 %v1374_v53, %v1373_v21  ;;  %v1484_v30 = vadd.f32 %v1480_v60, %v1152_v36  ;;  %v5352_v21 = vld [vmem:[#allocation29_spill] sm:$0xff] }
 0x584   :  { %v1428_v25 = vmul.f32 %v4513_v13, %v5347_v35  ;;  %v1163_v45 = vmul.f32 %v5349_v61, %v5348_v38  ;;  %v4593_v54 = vadd.f32 %v1392_v33, %v1162_v63  ;;  %3608 = vpow2.f32 %v763_v48  ;;  %v5354_v63 = vld [vmem:[#allocation31_spill] sm:$0xff] }
 0x585   :  { %v1348_v15 = vrot.slane %v1347_v62, 1  ;;  %v1457_v42 = vmul.f32 %v4528_v20, %v5350_v17  ;;  %v1154_v51 = vmul.f32 %v5345_v4, %v5351_v39  ;;  %v1404_v49 = vrot.slane %v1403_v5, 4  ;;  %v5357_v39 = vld [vmem:[#allocation38_spill] sm:$0xff] }
 0x586   :  { %v4568_v2 = vpop.permute.xlu1 %1045  ;;  %v1487_v34 = vmul.f32 %v1483_v40, %v5352_v21  ;;  %v1513_v50 = vadd.f32 %v1509_v19, %v1153_v22  ;;  %v1458_v36 = vmul.f32 %v1454_v18, %v5353_v12  ;;  %v4601_v13 = vadd.f32 %v1421_v31, %v1163_v45 }
 0x587   :  { %v3601_v56 = vpop.eup %3600  ;;  %v1318_v53 = vrot.slane %v1317_v43, 1  ;;  %v1431_v60 = vsel %vm397_vm11, %v1427_v29, 0.0  ;;  %v1376_v48 = vrot.slane %v1375_v47, 2  ;;  %v1510_v37 = vmul.f32 %v4485_v7, %v1484_v30  ;;  %v5355_v29 = vld [vmem:[#allocation35_spill] sm:$0xff] }
 0x588   :  { %v1517_v33 = vmul.f32 %v1513_v50, %v5354_v63  ;;  %v1432_v10 = vsel %vm397_vm11, %v1428_v25, 0.0  ;;  %v1164_v40 = vmul.f32 %v5349_v61, %v4536_v6  ;;  %v1422_v18 = vmul.f32 %v3601_v56, %v4593_v54 }
 0x589   :  { %v1349_v57 = vadd.f32 %v1348_v15, %v1347_v62  ;;  %v1461_v4 = vsel %vm397_vm11, %v1457_v42, 0.0  ;;  %v1405_v22 = vadd.f32 %v1404_v49, %v1403_v5  ;;  %v1514_v19 = vadd.f32 %v1510_v37, %v1154_v51  ;;  %v5356_v62 = vld [vmem:[#allocation36_spill] sm:$0xff] }
 0x58a   :  { %v1242_v8 = vpop.permute.xlu1 %1241  ;;  %v4611_v31 = vpop.eup %3602  ;;  %v1491_v7 = vsel %vm397_vm11, %v1487_v34, 0.0  ;;  %v1462_v59 = vsel %vm397_vm11, %v1458_v36, 0.0  ;;  %v1488_v35 = vmul.f32 %v1484_v30, %v5355_v29  ;;  %v1451_v25 = vmul.f32 %v3597_v23, %v4601_v13 }
 0x58b   :  { %v3605_v38 = vpop.eup %3604  ;;  %v1319_v45 = vadd.f32 %v1318_v53, %v1317_v43  ;;  %v4617_v6 = vadd.f32 %v1376_v48, %v1375_v47  ;;  %v1433_v61 = vadd.f32 %v1432_v10, %v1431_v60  ;;  %v1518_v15 = vmul.f32 %v1514_v19, %v5356_v62  ;;  %v1270_v47 = vpop.permute.xlu0 %1269 }
 0x58c   :  { %v3607_v5 = vpop.eup %3606  ;;  %v1521_v42 = vsel %vm397_vm11, %v1517_v33, 0.0  ;;  %v1165_v51 = vmul.f32 %v4452_v3, %v5357_v39  ;;  %v1426_v21 = vadd.f32 %v1422_v18, %v1164_v40  ;;  %v1406_v23 = vrot.slane %v1405_v22, 2 }
 0x58d   :  { %v4625_v30 = vsel %vm1539_vm1, %v1319_v45, %v1349_v57  ;;  %v1463_v43 = vadd.f32 %v1462_v59, %v1461_v4  ;;  %v1492_v12 = vsel %vm397_vm11, %v1488_v35, 0.0  ;;  %v1339_v36 = vmul.f32 %v4493_v46, %v4523_v52 }
 0x58e   :  { %v1250_v20 = vpop.permute.xlu1 %1249  ;;  %v4628_v50 = vpop.eup %3608  ;;  %v1455_v56 = vadd.f32 %v1451_v25, %v1165_v51  ;;  %v1310_v53 = vmul.f32 %v4495_v24, %v1242_v8  ;;  %v1434_v60 = vrot.slane %v1433_v61, 4  ;;  %v1522_v48 = vsel %vm397_vm11, %v1518_v15, 0.0 }
 0x58f   :  { %v1340_v49 = vmul.f32 %v4521_v9, %v1250_v20  ;;  %v1378_v9 = vrot.slane %v4617_v6, 1  ;;  %v1369_v37 = vmul.f32 %v4530_v0, %v4550_v11  ;;  %v1166_v63 = vmul.f32 %v4452_v3, %v4552_v32  ;;  %v5358_v3 = vld [vmem:[#allocation40_spill] sm:$0xff]  ;;  %v1278_v57 = vpop.permute.xlu0 %1277 }
 0x590   :  { %v1452_v52 = vmul.f32 %v3605_v38, %v1426_v21  ;;  %v4645_v24 = vadd.f32 %v1406_v23, %v1405_v22  ;;  %v1464_v8 = vrot.slane %v1463_v43, 4  ;;  %v1493_v33 = vadd.f32 %v1492_v12, %v1491_v7 }
 0x591   :  { %v1351_v46 = vsel %vm397_vm11, %v1340_v49, 0.0  ;;  %v1399_v40 = vmul.f32 %v4563_v16, %v1262_v27  ;;  %v1481_v0 = vmul.f32 %v4585_v1, %v1455_v56  ;;  %v1321_v11 = vsel %vm397_vm11, %v1310_v53, 0.0 }
 0x592   :  { %v1258_v17 = vpop.permute.xlu1 %1257  ;;  %v1167_v32 = vmul.f32 %v5358_v3, %v4463_v55  ;;  %v1380_v18 = vsel %vm397_vm11, %v1369_v37, 0.0  ;;  %v1456_v27 = vadd.f32 %v1452_v52, %v1166_v63  ;;  %v1408_v1 = vrot.slane %v4645_v24, 1 }
 0x593   :  { %v1370_v34 = vmul.f32 %v4560_v14, %v1258_v17  ;;  %v1309_v14 = vmul.f32 %v4457_v28, %v4500_v26  ;;  %v1350_v28 = vsel %vm397_vm11, %v1339_v36, 0.0  ;;  %v1523_v26 = vadd.f32 %v1522_v48, %v1521_v42 }
 0x594   :  { %v1352_v4 = vadd.f32 %v1351_v46, %v1350_v28  ;;  %v1435_v59 = vadd.f32 %v1434_v60, %v1433_v61  ;;  %v4658_v29 = vadd.f32 %v1464_v8, %v1463_v43  ;;  %v1410_v25 = vsel %vm397_vm11, %v1399_v40, 0.0 }
 0x595   :  { %v1381_v10 = vsel %vm397_vm11, %v1370_v34, 0.0  ;;  %v1320_v19 = vsel %vm397_vm11, %v1309_v14, 0.0  ;;  %v1429_v55 = vmul.f32 %v4601_v13, %v1270_v47  ;;  %v1485_v38 = vadd.f32 %v1481_v0, %v1167_v32  ;;  %v1286_v34 = vpop.permute.xlu0 %1285 }
 0x596   :  { %v4638_v20 = vpop.permute.xlu1 %1057  ;;  %v1382_v7 = vadd.f32 %v1381_v10, %v1380_v18  ;;  %v1322_v35 = vadd.f32 %v1321_v11, %v1320_v19  ;;  %v1494_v62 = vrot.slane %v1493_v33, 4  ;;  %v1524_v15 = vrot.slane %v1523_v26, 4 }
 0x597   :  { %v1353_v17 = vrot.slane %v1352_v4, 4  ;;  %v1482_v49 = vmul.f32 %v3607_v5, %v1456_v27  ;;  %v1436_v23 = vrot.slane %v1435_v59, 2  ;;  %v1466_v43 = vrot.slane %v4658_v29, 2 }
 0x598   :  { %v1383_v51 = vrot.slane %v1382_v7, 4  ;;  %v1323_v12 = vrot.slane %v1322_v35, 4  ;;  %v1440_v47 = vsel %vm397_vm11, %v1429_v55, 0.0  ;;  %v1459_v36 = vmul.f32 %v1455_v56, %v1278_v57 }
 0x599   :  { %v1511_v53 = vmul.f32 %v4611_v31, %v1485_v38  ;;  %v1495_v48 = vadd.f32 %v1494_v62, %v1493_v33  ;;  %v1525_v37 = vadd.f32 %v1524_v15, %v1523_v26  ;;  %v1354_v14 = vadd.f32 %v1353_v17, %v1352_v4  ;;  %v1294_v26 = vpop.permute.xlu0 %1293 }
 0x59a   :  { %v1266_v22 = vpop.permute.xlu1 %1265  ;;  %v1169_v5 = vmul.f32 %v4579_v44, %v4573_v41  ;;  %v1489_v8 = vmul.f32 %v1485_v38, %v1286_v34  ;;  %v1324_v10 = vadd.f32 %v1323_v12, %v1322_v35  ;;  %v1470_v56 = vsel %vm397_vm11, %v1459_v36, 0.0 }
 0x59b   :  { %v1400_v16 = vmul.f32 %v4593_v54, %v1266_v22  ;;  %v1168_v54 = vmul.f32 %v5358_v3, %v4568_v2  ;;  %v1170_v33 = vmul.f32 %v4579_v44, %v4638_v20  ;;  %v1496_v28 = vrot.slane %v1495_v48, 2 }
 0x59c   :  { %v1515_v31 = vadd.f32 %v1511_v53, %v1169_v5  ;;  %v1355_v3 = vrot.slane %v1354_v14, 2  ;;  %v1526_v57 = vrot.slane %v1525_v37, 2  ;;  %v1437_v38 = vadd.f32 %v1436_v23, %v1435_v59 }
 0x59d   :  { %v1411_v45 = vsel %vm397_vm11, %v1400_v16, 0.0  ;;  %v1486_v52 = vadd.f32 %v1482_v49, %v1168_v54  ;;  %v1325_v16 = vrot.slane %v1324_v10, 2 }
 0x59e   :  { %v1412_v42 = vadd.f32 %v1411_v45, %v1410_v25  ;;  %v1274_v39 = vpop.permute.xlu1 %1273  ;;  %v1519_v44 = vmul.f32 %v1515_v31, %v1294_v26  ;;  %v1356_v45 = vadd.f32 %v1355_v3, %v1354_v14  ;;  %v1527_v12 = vadd.f32 %v1526_v57, %v1525_v37 }
 0x59f   :  { %v1430_v61 = vmul.f32 %v1426_v21, %v1274_v39  ;;  %v1384_v21 = vadd.f32 %v1383_v51, %v1382_v7  ;;  %v1512_v19 = vmul.f32 %v4628_v50, %v1486_v52  ;;  %v1500_v7 = vsel %vm397_vm11, %v1489_v8, 0.0 }
 0x5a0   :  { %v1413_v13 = vrot.slane %v1412_v42, 4  ;;  %v1497_v50 = vadd.f32 %v1496_v28, %v1495_v48  ;;  %v1326_v51 = vadd.f32 %v1325_v16, %v1324_v10  ;;  %v3302_v16 = vld [vmem:[%s5276_s11] ss:$0 sm:$0xff] }
 0x5a1   :  { %v1441_v60 = vsel %vm397_vm11, %v1430_v61, 0.0  ;;  %v1385_v4 = vrot.slane %v1384_v21, 2  ;;  %v1516_v55 = vadd.f32 %v1512_v19, %v1170_v33 }
 0x5a2   :  { %v1442_v2 = vadd.f32 %v1441_v60, %v1440_v47  ;;  %v1282_v63 = vpop.permute.xlu1 %1281  ;;  %v1414_v40 = vadd.f32 %v1413_v13, %v1412_v42  ;;  %v1467_v42 = vadd.f32 %v1466_v43, %v4658_v29  ;;  %v1530_v13 = vsel %vm397_vm11, %v1519_v44, 0.0 }
 0x5a3   :  { %v1460_v46 = vmul.f32 %v1456_v27, %v1282_v63  ;;  %v1386_v39 = vadd.f32 %v1385_v4, %v1384_v21  ;;  %v1357_v47 = vrot.slane %v1356_v45, 1  ;;  %v1379_v29 = vadd.f32 %v1378_v9, %v4617_v6 }
 0x5a4   :  { %v1443_v0 = vrot.slane %v1442_v2, 4  ;;  %v1415_v27 = vrot.slane %v1414_v40, 2  ;;  %v1438_v43 = vrot.slane %v1437_v38, 1  ;;  %v1468_v48 = vrot.slane %v1467_v42, 1 }
 0x5a5   :  { %v1471_v11 = vsel %vm397_vm11, %v1460_v46, 0.0  ;;  %v1387_v14 = vrot.slane %v1386_v39, 1  ;;  %v1409_v21 = vadd.f32 %v1408_v1, %v4645_v24  ;;  %v1498_v46 = vrot.slane %v1497_v50, 1 }
 0x5a6   :  { %v1444_v32 = vadd.f32 %v1443_v0, %v1442_v2  ;;  %v1472_v41 = vadd.f32 %v1471_v11, %v1470_v56  ;;  %v1290_v18 = vpop.permute.xlu1 %1289  ;;  %v1416_v61 = vadd.f32 %v1415_v27, %v1414_v40  ;;  %v1327_v2 = vrot.slane %v1326_v51, 1 }
 0x5a7   :  { %v1490_v22 = vmul.f32 %v1486_v52, %v1290_v18  ;;  %v1528_v52 = vrot.slane %v1527_v12, 1  ;;  %v1358_v10 = vadd.f32 %v1357_v47, %v1356_v45  ;;  %v1439_v31 = vadd.f32 %v1438_v43, %v1437_v38  ;;  %v5359_v45 = vld [vmem:[#allocation18_spill] sm:$0xff] }
 0x5a8   :  { %v1473_v35 = vrot.slane %v1472_v41, 4  ;;  %v1445_v20 = vrot.slane %v1444_v32, 2  ;;  %v1417_v63 = vrot.slane %v1416_v61, 1  ;;  %v1469_v6 = vadd.f32 %v1468_v48, %v1467_v42 }
 0x5a9   :  { %v1501_v25 = vsel %vm397_vm11, %v1490_v22, 0.0  ;;  %v1543_v9 = vsel %vm1542_vm2, %v4625_v30, %v1379_v29  ;;  %v1388_v33 = vadd.f32 %v1387_v14, %v1386_v39  ;;  %v1328_v11 = vadd.f32 %v1327_v2, %v1326_v51 }
 0x5aa   :  { %v1474_v62 = vadd.f32 %v1473_v35, %v1472_v41  ;;  %v1502_v15 = vadd.f32 %v1501_v25, %v1500_v7  ;;  %v1298_v17 = vpop.permute.xlu1 %1297  ;;  %v1446_v59 = vadd.f32 %v1445_v20, %v1444_v32  ;;  %v1418_v28 = vadd.f32 %v1417_v63, %v1416_v61 }
 0x5ab   :  { %v1520_v54 = vmul.f32 %v1516_v55, %v1298_v17  ;;  %v1499_v32 = vadd.f32 %v1498_v46, %v1497_v50  ;;  %v1546_v24 = vsel %vm1545_vm3, %v1543_v9, %v1409_v21  ;;  %v1529_v41 = vadd.f32 %v1528_v52, %v1527_v12  ;;  %v1588_v50 = vpop.permute.xlu0 %1587 }
 0x5ac   :  { %v1475_v49 = vrot.slane %v1474_v62, 2  ;;  %v1503_v34 = vrot.slane %v1502_v15, 4  ;;  %v1447_v8 = vrot.slane %v1446_v59, 1  ;;  %v1541_v18 = vsel %vm1539_vm1, %v1328_v11, %v1358_v10 }
 0x5ad   :  { %v1531_v23 = vsel %vm397_vm11, %v1520_v54, 0.0  ;;  %v1549_v22 = vsel %vm1548_vm12, %v1546_v24, %v1439_v31  ;;  %v1544_v30 = vsel %vm1542_vm2, %v1541_v18, %v1388_v33  ;;  %v3311_v18 = vld [vmem:[#allocation7 + $0x1] ss:$0 sm:$0xff] }
 0x5ae   :  { %v1476_v36 = vadd.f32 %v1475_v49, %v1474_v62  ;;  %v1504_v53 = vadd.f32 %v1503_v34, %v1502_v15  ;;  %v1532_v60 = vadd.f32 %v1531_v23, %v1530_v13  ;;  %v1448_v1 = vadd.f32 %v1447_v8, %v1446_v59  ;;  %v5360_v15 = vld [vmem:[#allocation19_spill] sm:$0xff]  ;;  %v1590_v61 = vpop.permute.xlu1 %1589  ;;  %v5362_v23 = vld [vmem:[#allocation12_spill] sm:$0xff] }
 0x5af   :  { %v1552_v7 = vsel %vm1551_vm13, %v1549_v22, %v1469_v6  ;;  %v1547_v35 = vsel %vm1545_vm3, %v1544_v30, %v1418_v28  ;;  %v1567_v62 = vmul.f32 %v3302_v16, %v5359_v45  ;;  %v1568_v17 = vmul.f32 %v3302_v16, %v5360_v15  ;;  %v3510_v16 = vld [vmem:[%s5273_s8 + $0x30] sm:$0xff]   ;;  %v3321_v45 = vld [vmem:[%s5272_s7 + $0x1] ss:$0 sm:$0xff] }
 0x5b0   :  { %v1505_v37 = vrot.slane %v1504_v53, 2  ;;  %v1533_v5 = vrot.slane %v1532_v60, 4  ;;  %v1477_v40 = vrot.slane %v1476_v36, 1  ;;  %v1555_v44 = vsel %vm1554_vm14, %v1552_v7, %v1499_v32  ;;  %v3310_v32 = vld [vmem:[#allocation5 + $0x1] ss:$0 sm:$0xff] }
 0x5b1   :  { %v1550_v20 = vsel %vm1548_vm12, %v1547_v35, %v1448_v1  ;;  %v1558_v25 = vsel %vm1557_vm15, %v1555_v44, %v1529_v41  ;;  %v5361_v13 = vmov 0.0   ;;  %v3509_v7 = vld [vmem:[%s5273_s8 + $0x28] sm:$0xff]   ;;  %v3319_v35 = vld [vmem:[%s5271_s6 + $0x4] sm:$0xf]  ;;  %v5364_v44 = vld [vmem:[#allocation15_spill] sm:$0xff] }
 0x5b2   :  { %v1506_v0 = vadd.f32 %v1505_v37, %v1504_v53  ;;  %v1534_v56 = vadd.f32 %v1533_v5, %v1532_v60  ;;  %v1478_v57 = vadd.f32 %v1477_v40, %v1476_v36  ;;  %v1569_v54 = vadd.f32 %v1567_v62, %v1558_v25  ;;  %v5363_v60 = vld [vmem:[#allocation13_spill] sm:$0xff] }
 0x5b4   :  { %v1507_v26 = vrot.slane %v1506_v0, 1  ;;  %v1535_v3 = vrot.slane %v1534_v56, 2  ;;  %v1553_v38 = vsel %vm1551_vm13, %v1550_v20, %v1478_v57  ;;  %v1593_v49 = vmul.f32 %v1588_v50, %v1569_v54 }
 0x5b5   :  { %v1787_v20 = vrot.slane %v3319_v35, %v5364_v44 }
 0x5b6   :  { %v1536_v4 = vadd.f32 %v1535_v3, %v1534_v56  ;;  %v1508_v19 = vadd.f32 %v1507_v26, %v1506_v0  ;;  %v3506_v0 = vld [vmem:[%s5270_s5 + $0x10] sm:$0xff]   ;;  %v3507_v56 = vld [vmem:[%s5270_s5 + $0x18] sm:$0xff]  }
 0x5b7   :  { %3439 = vmatpush3.bf16.msra.mxu1 %v3506_v0 }
 0x5b8   :  { %v1537_v27 = vrot.slane %v1536_v4, 1  ;;  %v1556_v42 = vsel %vm1554_vm14, %v1553_v38, %v1508_v19  ;;  %3440 = vmatprep.subr.bf16.mxu1 %v5361_v13  ;;  %v3508_v19 = vld [vmem:[%s5273_s8 + $0x20] sm:$0xff]  }
 0x5ba   :  { %v1538_v55 = vadd.f32 %v1537_v27, %v1536_v4  ;;  %v3511_v27 = vld [vmem:[%s5273_s8 + $0x38] sm:$0xff]  }
 0x5bb   :  { %3441 = vmatpush3.bf16.msra.mxu1 %v3507_v56 }
 0x5bc   :  { %v1559_v39 = vsel %vm1557_vm15, %v1556_v42, %v1538_v55  ;;  %3458 = vmatprep.subr.bf16.mxu1 %v5361_v13 }
 0x5bd   :  { %v1570_v51 = vadd.f32 %v1568_v17, %v1559_v39  ;;  %v5365_v17 = vld [vmem:[#allocation16_spill] sm:$0xff] }
 0x5be   :  { %v1807_v42 = vrot.slane %v3319_v35, %v5365_v17 }
 0x5bf   :  { %v1594_v34 = vmul.f32 %v1590_v61, %v1570_v51 }
 0x5c1   :  { %v1595_v12 = vpack.c.bf16 %v1594_v34, %v1593_v49  ;;  %v5366_v34 = vld [vmem:[#allocation17_spill] sm:$0xff] }
 0x5c3   :  { %3435 = vmatmul.mubr.msk.bf16.vlgmr.msra.gmra.mrb[4].mxu0 %vm397_vm11, %v1595_v12  ;;  %v1821_v12 = vrot.slane %v3319_v35, %v5366_v34 }
 0x5c4   :  { %3454 = vmatprep.mubr.msk.bf16.mxu0 %vm3809_vm0, %v5361_v13  ;;  %3447 = vmatpush3.bf16.msra.mxu0 %v3508_v19 }
 0x5c5   :  { %3448 = vmatprep.subr.bf16.mxu0 %v5361_v13 }
 0x5c8   :  { %3449 = vmatpush3.bf16.msra.mxu0 %v3509_v7 }
 0x5c9   :  { %3450 = vmatprep.subr.bf16.mxu0 %v5361_v13 }
 0x5cc   :  { %3451 = vmatpush3.bf16.msra.mxu0 %v3510_v16 }
 0x5cd   :  { %3452 = vmatprep.subr.bf16.mxu0 %v5361_v13 }
 0x5d0   :  { %3453 = vmatpush3.bf16.msra.mxu0 %v3511_v27 }
 0x5d1   :  { %3470 = vmatprep.subr.bf16.mxu0 %v5361_v13 }
 0x696   :  { %v1665_v59 = vpop.f32.mrb[4].mxu0 }
 0x697   :  { %v4710_v47 = vadd.f32 %v1665_v59, %v5362_v23  ;;  %v3436_v36 = vpop.f32.mrb[5].mxu0  ;;  %v1835_v23 = vrot.slane %v3319_v35, %v4020_v58 }
 0x698   :  { %v1668_v53 = vpop.f32.mrb[6].mxu0 }
 0x699   :  { %v4713_v29 = vadd.f32 %v1668_v53, %v5363_v60  ;;  %v3437_v43 = vpop.f32.mrb[7].mxu0  ;;  %v1676_v48 = vsel %vm184_vm4, %v4710_v47, 0.0 }
 0x69a   :  { %1677 = vadd.xlane.f32.xlu0 %v1676_v48 }
 0x69b   :  { %v1679_v14 = vsel %vm184_vm4, %v4713_v29, 0.0 }
 0x69c   :  { %1680 = vadd.xlane.f32.xlu1 %v1679_v14 }
 0x727   :  { %v1678_v2 = vpop.xlane.xlu0 %1677 }
 0x728   :  { %v1682_v63 = vmul.f32 0.03125, %v1678_v2 }
 0x729   :  { %v1681_v37 = vpop.xlane.xlu1 %1680 }
 0x72a   :  { %v1684_v5 = vsub.f32 %v4710_v47, %v1682_v63  ;;  %v1683_v21 = vmul.f32 0.03125, %v1681_v37 }
 0x72c   :  { %v1685_v46 = vsub.f32 %v4713_v29, %v1683_v21  ;;  %v1686_v52 = vmul.f32 %v1684_v5, %v1684_v5 }
 0x72e   :  { %v1688_v8 = vsel %vm184_vm4, %v1686_v52, 0.0  ;;  %v1687_v10 = vmul.f32 %v1685_v46, %v1685_v46 }
 0x72f   :  { %1689 = vadd.xlane.f32.xlu0 %v1688_v8 }
 0x730   :  { %v1691_v40 = vsel %vm184_vm4, %v1687_v10, 0.0 }
 0x733   :  { %1692 = vadd.xlane.f32.xlu0 %v1691_v40 }
 0x7bc   :  { %v1690_v31 = vpop.xlane.xlu0 %1689 }
 0x7bd   :  { %v1694_v6 = vmul.f32 0.03125, %v1690_v31 }
 0x7bf   :  { %v1696_v9 = vadd.f32 1e-05, %v1694_v6 }
 0x7c0   :  { %v1693_v33 = vpop.xlane.xlu0 %1692 }
 0x7c1   :  { %3610 = vrsqrt.f32 %v1696_v9  ;;  %v1695_v11 = vmul.f32 0.03125, %v1693_v33 }
 0x7c3   :  { %v1697_v28 = vadd.f32 1e-05, %v1695_v11 }
 0x7c5   :  { %3612 = vrsqrt.f32 %v1697_v28 }
 0x7cb   :  { %v3611_v26 = vpop.eup %3610 }
 0x7cc   :  { %v1700_v3 = vmul.f32 %v3611_v26, %v1684_v5 }
 0x7ce   :  { %v1708_v1 = vmul.f32 %v3310_v32, %v1700_v3 }
 0x7cf   :  { %v3613_v24 = vpop.eup %3612 }
 0x7d0   :  { %v1701_v41 = vmul.f32 %v3613_v24, %v1685_v46  ;;  %v1716_v4 = vadd.f32 %v3311_v18, %v1708_v1 }
 0x7d2   :  { %v1709_v57 = vmul.f32 %v3310_v32, %v1701_v41 }
 0x7d4   :  { %v1717_v22 = vadd.f32 %v3311_v18, %v1709_v57 }
 0x7d6   :  { %v1718_v30 = vpack.c.bf16 %v1717_v22, %v1716_v4 }
 0x7d8   :  { %3443 = vmatmul.mubr.msk.bf16.vlgmr.msra.gmra.mrb[8].mxu1 %vm184_vm4, %v1718_v30 }
 0x7d9   :  { %3466 = vmatprep.mubr.msk.bf16.mxu1 %vm3809_vm0, %v5361_v13 }
 0x8ab   :  { %v4754_v25 = vpop.f32.mrb[8].mxu1 }
 0x8ac   :  { %v1788_v55 = vmul.f32 %v1787_v20, %v4754_v25  ;;  %v3444_v38 = vpop.f32.mrb[9].mxu1  ;;  %v1798_v62 = vrot.slane %v4754_v25, 7  ;;  %v1812_v50 = vrot.slane %v4754_v25, 6  ;;  %v1826_v49 = vrot.slane %v4754_v25, 5 }
 0x8ad   :  { %v4761_v15 = vpop.f32.mrb[10].mxu1 }
 0x8ae   :  { %v1789_v39 = vmul.f32 %v1787_v20, %v4761_v15  ;;  %v1799_v54 = vrot.slane %v4761_v15, 7  ;;  %v1813_v51 = vrot.slane %v4761_v15, 6  ;;  %v3445_v61 = vpop.f32.mrb[11].mxu1  ;;  %v1827_v59 = vrot.slane %v4761_v15, 5 }
 0x8af   :  { %v1796_v36 = vadd.f32 %v3321_v45, %v1788_v55 }
 0x8b0   :  { %v1800_v60 = vsel %vm307_vm8, %v1798_v62, %v1799_v54  ;;  %v1801_v43 = vsel %vm307_vm8, %v1799_v54, %v1798_v62  ;;  %v1814_v48 = vsel %vm322_vm9, %v1812_v50, %v1813_v51  ;;  %v1815_v63 = vsel %vm322_vm9, %v1813_v51, %v1812_v50  ;;  %v5368_v50 = vld [vmem:[#allocation20_spill] sm:$0xff]  ;;  %v5369_v51 = vld [vmem:[#allocation21_spill] sm:$0xff] }
 0x8b1   :  { %v1802_v14 = vsel %vm179_vm5, %v1801_v43, 0.0  ;;  %v1803_v2 = vsel %vm179_vm5, %v1800_v60, 0.0  ;;  %v1817_v37 = vsel %vm180_vm6, %v1814_v48, 0.0  ;;  %v1797_v5 = vadd.f32 %v3321_v45, %v1789_v39  ;;  %v3338_v54 = vld [vmem:[%s5274_s9 + $0x1] ss:$0 sm:$0xff]  ;;  %v5371_v60 = vld [vmem:[#allocation23_spill] sm:$0xff] }
 0x8b2   :  { %v1808_v21 = vmul.f32 %v1807_v42, %v1802_v14  ;;  %v1809_v46 = vmul.f32 %v1807_v42, %v1803_v2  ;;  %v1816_v52 = vsel %vm180_vm6, %v1815_v63, 0.0  ;;  %v1823_v10 = vmul.f32 %v1821_v12, %v1817_v37 }
 0x8b3   :  { %v1822_v8 = vmul.f32 %v1821_v12, %v1816_v52  ;;  %v1828_v40 = vsel %vm337_vm10, %v1826_v49, %v1827_v59  ;;  %v1829_v0 = vsel %vm337_vm10, %v1827_v59, %v1826_v49  ;;  %v5370_v12 = vld [vmem:[#allocation22_spill] sm:$0xff] }
 0x8b4   :  { %v1810_v56 = vadd.f32 %v1808_v21, %v1796_v36  ;;  %v1811_v31 = vadd.f32 %v1809_v46, %v1797_v5  ;;  %v1830_v6 = vsel %vm181_vm7, %v1829_v0, 0.0  ;;  %v1831_v9 = vsel %vm181_vm7, %v1828_v40, 0.0 }
 0x8b5   :  { %v1836_v28 = vmul.f32 %v1835_v23, %v1830_v6  ;;  %v1837_v26 = vmul.f32 %v1835_v23, %v1831_v9  ;;  %v5372_v9 = vld [vmem:[#allocation24_spill] sm:$0xff] }
 0x8b6   :  { %v1824_v33 = vadd.f32 %v1822_v8, %v1810_v56  ;;  %v1825_v11 = vadd.f32 %v1823_v10, %v1811_v31 }
 0x8b8   :  { %v1838_v3 = vadd.f32 %v1836_v28, %v1824_v33  ;;  %v1839_v32 = vadd.f32 %v1837_v26, %v1825_v11  ;;  %v3343_v28 = vmul.f32 -1.442695, %v4754_v25 }
 0x8ba   :  { %v3322_v24 = vmul.f32 -1.442695, %v1838_v3  ;;  %v3323_v1 = vmul.f32 -1.442695, %v1839_v32 }
 0x8bc   :  { %3614 = vpow2.f32 %v3322_v24  ;;  %v3344_v24 = vmul.f32 -1.442695, %v4761_v15 }
 0x8bd   :  { %3616 = vpow2.f32 %v3323_v1 }
 0x8c6   :  { %v3615_v41 = vpop.eup %3614 }
 0x8c7   :  { %v3617_v18 = vpop.eup %3616  ;;  %v1846_v57 = vadd.f32 1.0, %v3615_v41 }
 0x8c8   :  { %v1847_v4 = vadd.f32 1.0, %v3617_v18  ;;  %v4867_v18 = vld [vmem:[%s5275_s10 + $0x10] sm:$0xff] }
 0x8c9   :  { %3618 = vrcp.f32 %v1846_v57  ;;  %v4872_v57 = vld [vmem:[%s5275_s10 + $0x18] sm:$0xff] }
 0x8ca   :  { %3620 = vrcp.f32 %v1847_v4 }
 0x8d3   :  { %v3619_v22 = vpop.eup %3618 }
 0x8d4   :  { %v3621_v30 = vpop.eup %3620  ;;  %v4796_v19 = vmul.f32 %v3619_v22, %v1838_v3 }
 0x8d5   :  { %v4798_v7 = vmul.f32 %v3621_v30, %v1839_v32 }
 0x8d7   :  { %v1854_v16 = vpack.c.bf16 %v4798_v7, %v4796_v19 }
 0x8d9   :  { %3455 = vmatmul.mubr.msk.bf16.vlgmr.msra.gmra.mrb[8].mxu0 %vm397_vm11, %v1854_v16 }
 0x8da   :  { %3474 = vmatprep.mubr.msk.bf16.mxu0 %vm3809_vm0, %v5361_v13 }
 0x9ac   :  { %v1925_v27 = vpop.f32.mrb[8].mxu0 }
 0x9ad   :  { %v3456_v35 = vpop.f32.mrb[9].mxu0  ;;  %v2362_v20 = vrot.slane %v1925_v27, %v4020_v58  ;;  %v2374_v45 = vrot.slane %v1925_v27, %v5366_v34  ;;  %v2386_v62 = vrot.slane %v1925_v27, %v5365_v17  ;;  %v2398_v42 = vrot.slane %v1925_v27, %v5364_v44 }
 0x9ae   :  { %v4806_v55 = vpop.f32.mrb[10].mxu0  ;;  %v2410_v39 = vrot.slane %v1925_v27, %v5368_v50  ;;  %v2422_v61 = vrot.slane %v1925_v27, %v5369_v51  ;;  %v1940_v49 = vadd.f32 %v3338_v54, %v1925_v27  ;;  %v2434_v59 = vrot.slane %v1925_v27, %v5370_v12 }
 0x9af   :  { %2369 = vbcast.lane.b32.xlu0 %v2362_v20, 328  ;;  %2365 = vbcast.lane.b32.xlu1 %v2362_v20, 320  ;;  %v3457_v38 = vpop.f32.mrb[11].mxu0  ;;  %v2446_v43 = vrot.slane %v1925_v27, %v5371_v60  ;;  %v4820_v63 = vrot.slane %v4806_v55, %v5366_v34  ;;  %v2458_v37 = vrot.slane %v4806_v55, %v4020_v58 }
 0x9b0   :  { %v1948_v23 = vand.u32 2147483647, %v1940_v49  ;;  %v4827_v46 = vrot.slane %v4806_v55, %v5365_v17  ;;  %v4832_v34 = vrot.slane %v4806_v55, %v5364_v44  ;;  %v1942_v0 = vmax.f32 %v1940_v49, 0.0 }
 0x9b1   :  { %v4838_v17 = vrot.slane %v4806_v55, %v5368_v50  ;;  %vm1944_vm5 = vcmp.ne.f32.partialorder %v1940_v49, %v1940_v49  ;;  %v4844_v44 = vrot.slane %v4806_v55, %v5369_v51  ;;  %v4847_v6 = vadd.f32 %v3338_v54, %v4806_v55 }
 0x9b2   :  { %v1950_v36 = vsub.f32 0.0, %v1948_v23  ;;  %v4854_v11 = vrot.slane %v4806_v55, %v5370_v12 }
 0x9b3   :  { %2377 = vbcast.lane.b32.xlu0 %v2374_v45, 320  ;;  %2381 = vbcast.lane.b32.xlu1 %v2374_v45, 328  ;;  %v1949_v26 = vand.u32 2147483647, %v4847_v6  ;;  %vm1945_vm7 = vcmp.ne.f32.partialorder %v4847_v6, %v4847_v6 }
 0x9b4   :  { %v1952_v53 = vmul.f32 1.442695, %v1950_v36 }
 0x9b5   :  { %v1951_v1 = vsub.f32 0.0, %v1949_v26 }
 0x9b6   :  { %3622 = vpow2.f32 %v1952_v53 }
 0x9b7   :  { %2389 = vbcast.lane.b32.xlu0 %v2386_v62, 320  ;;  %2393 = vbcast.lane.b32.xlu1 %v2386_v62, 328  ;;  %v1954_v22 = vmul.f32 1.442695, %v1951_v1 }
 0x9bb   :  { %2401 = vbcast.lane.b32.xlu0 %v2398_v42, 320  ;;  %2405 = vbcast.lane.b32.xlu1 %v2398_v42, 328 }
 0x9bf   :  { %2413 = vbcast.lane.b32.xlu0 %v2410_v39, 320  ;;  %2417 = vbcast.lane.b32.xlu1 %v2410_v39, 328 }
 0x9c0   :  { %v3623_v48 = vpop.eup %3622 }
 0x9c1   :  { %v1956_v14 = vadd.f32 1.0, %v3623_v48  ;;  %v1959_v2 = vmul.f32 -0.5, %v3623_v48  ;;  %v1962_v52 = vand.u32 2147483647, %v3623_v48 }
 0x9c3   :  { %2425 = vbcast.lane.b32.xlu0 %v2422_v61, 320  ;;  %2429 = vbcast.lane.b32.xlu1 %v2422_v61, 328  ;;  %3624 = vlog2.f32 %v1956_v14  ;;  %v1960_v21 = vadd.f32 1.0, %v1959_v2  ;;  %vm1963_vm0 = vcmp.lt.f32.partialorder %v1962_v52, 0.0004427343 }
 0x9c4   :  { %3626 = vpow2.f32 %v3343_v28 }
 0x9c5   :  { %v1961_v10 = vmul.f32 %v3623_v48, %v1960_v21  ;;  %3628 = vpow2.f32 %v3344_v24 }
 0x9c6   :  { %3630 = vpow2.f32 %v1954_v22 }
 0x9c7   :  { %2437 = vbcast.lane.b32.xlu0 %v2434_v59, 320  ;;  %2441 = vbcast.lane.b32.xlu1 %v2434_v59, 328 }
 0x9cb   :  { %2665 = vbcast.lane.b32.xlu0 %v2362_v20, 336  ;;  %2669 = vbcast.lane.b32.xlu1 %v2362_v20, 344 }
 0x9cd   :  { %v3625_v5 = vpop.eup %3624 }
 0x9ce   :  { %v1958_v8 = vmul.f32 0.6931472, %v3625_v5 }
 0x9cf   :  { %2673 = vbcast.lane.b32.xlu0 %v2374_v45, 336  ;;  %2677 = vbcast.lane.b32.xlu1 %v2374_v45, 344  ;;  %v3627_v45 = vpop.eup %3626 }
 0x9d0   :  { %v1964_v40 = vsel %vm1963_vm0, %v1961_v10, %v1958_v8 }
 0x9d1   :  { %v1974_v56 = vadd.f32 %v1964_v40, %v1942_v0 }
 0x9d3   :  { %2681 = vbcast.lane.b32.xlu0 %v2386_v62, 336  ;;  %2685 = vbcast.lane.b32.xlu1 %v2386_v62, 344  ;;  %v1976_v31 = vsel %vm1944_vm5, %v1940_v49, %v1974_v56  ;;  %v4883_v62 = vrot.slane %v4806_v55, %v5371_v60  ;;  %v3063_v49 = vadd.f32 1.0, %v3627_v45  ;;  %v3629_v55 = vpop.eup %3628 }
 0x9d4   :  { %v1990_v33 = vrot.slane %v1976_v31, %v5372_v9  ;;  %v1983_v27 = vcombine.high %v1976_v31, %v1976_v31  ;;  %v4892_v12 = vmul.f32 %v1976_v31, %v4796_v19  ;;  %v3064_v14 = vadd.f32 1.0, %v3629_v55 }
 0x9d6   :  { %v2006_v3 = vrot.slane %v1990_v33, %v5372_v9  ;;  %v1998_v32 = vcombine.high %v1990_v33, %v1990_v33  ;;  %v2268_v2 = vrot.slane %v4892_v12, %v5372_v9 }
 0x9d7   :  { %2449 = vbcast.lane.b32.xlu0 %v2446_v43, 320  ;;  %2453 = vbcast.lane.b32.xlu1 %v2446_v43, 328 }
 0x9d8   :  { %v2084_v41 = vrot.slane %v2006_v3, %v4020_v58  ;;  %v2020_v4 = vrot.slane %v1998_v32, %v5372_v9  ;;  %v2028_v20 = vcombine.high %v2006_v3, %v2006_v3  ;;  %v2284_v10 = vrot.slane %v2268_v2, %v5372_v9 }
 0x9d9   :  { %v2276_v40 = vcombine.high %v2268_v2, %v2268_v2 }
 0x9da   :  { %v2161_v30 = vmul.f32 %v4867_v18, %v2084_v41  ;;  %v2162_v16 = vmul.f32 %v4872_v57, %v2084_v41  ;;  %v2088_v35 = vrot.slane %v2020_v4, %v4020_v58  ;;  %v2030_v50 = vcombine.high %v2020_v4, %v2020_v4 }
 0x9db   :  { %2689 = vbcast.lane.b32.xlu0 %v2398_v42, 336  ;;  %2693 = vbcast.lane.b32.xlu1 %v2398_v42, 344  ;;  %v2092_v51 = vrot.slane %v2028_v20, %v4020_v58  ;;  %v2554_v1 = vrot.slane %v2284_v10, %v4020_v58  ;;  %v4919_v41 = vrot.slane %v2276_v40, %v5372_v9 }
 0x9dc   :  { %v2193_v38 = vmul.f32 1.442695, %v2161_v30  ;;  %v2195_v42 = vmul.f32 1.442695, %v2162_v16  ;;  %v2163_v54 = vmul.f32 %v4867_v18, %v2088_v35 }
 0x9dd   :  { %v2165_v60 = vmul.f32 %v4867_v18, %v2092_v51  ;;  %v2166_v48 = vmul.f32 %v4872_v57, %v2092_v51 }
 0x9de   :  { %3632 = vpow2.f32 %v2193_v38  ;;  %v2197_v53 = vmul.f32 1.442695, %v2163_v54 }
 0x9df   :  { %2697 = vbcast.lane.b32.xlu0 %v2410_v39, 336  ;;  %2701 = vbcast.lane.b32.xlu1 %v2410_v39, 344  ;;  %v1997_v39 = vrot.slane %v1983_v27, %v5372_v9  ;;  %3634 = vpow2.f32 %v2195_v42  ;;  %v2201_v52 = vmul.f32 1.442695, %v2165_v60 }
 0x9e0   :  { %3636 = vrcp.f32 %v3063_v49  ;;  %v2306_v49 = vcombine.high %v2284_v10, %v2284_v10  ;;  %v2308_v10 = vcombine.high %v4919_v41, %v4919_v41 }
 0x9e1   :  { %v2013_v23 = vrot.slane %v1997_v39, %v5372_v9  ;;  %v1999_v36 = vcombine.high %v1997_v39, %v1997_v39  ;;  %3638 = vpow2.f32 %v2197_v53 }
 0x9e3   :  { %2705 = vbcast.lane.b32.xlu0 %v2422_v61, 336  ;;  %2709 = vbcast.lane.b32.xlu1 %v2422_v61, 344  ;;  %v2164_v61 = vmul.f32 %v4872_v57, %v2088_v35  ;;  %v2100_v5 = vrot.slane %v2013_v23, %v4020_v58  ;;  %v2027_v21 = vrot.slane %v1999_v36, %v5372_v9 }
 0x9e4   :  { %v2029_v0 = vcombine.high %v2013_v23, %v2013_v23 }
 0x9e5   :  { %v2169_v33 = vmul.f32 %v4867_v18, %v2100_v5  ;;  %v2104_v28 = vrot.slane %v2027_v21, %v4020_v58  ;;  %v2170_v24 = vmul.f32 %v4872_v57, %v2100_v5  ;;  %v2031_v35 = vcombine.high %v2027_v21, %v2027_v21 }
 0x9e6   :  { %v2108_v4 = vrot.slane %v2029_v0, %v4020_v58 }
 0x9e7   :  { %2713 = vbcast.lane.b32.xlu0 %v2434_v59, 336  ;;  %2717 = vbcast.lane.b32.xlu1 %v2434_v59, 344  ;;  %v2096_v59 = vrot.slane %v2030_v50, %v4020_v58  ;;  %v2209_v16 = vmul.f32 1.442695, %v2169_v33  ;;  %v2171_v27 = vmul.f32 %v4867_v18, %v2104_v28  ;;  %v2261_v50 = vcombine.high %v4892_v12, %v4892_v12 }
 0x9e8   :  { %v2211_v39 = vmul.f32 1.442695, %v2170_v24  ;;  %v2172_v54 = vmul.f32 %v4872_v57, %v2104_v28  ;;  %v2173_v12 = vmul.f32 %v4867_v18, %v2108_v4  ;;  %v2112_v60 = vrot.slane %v2031_v35, %v4020_v58 }
 0x9e9   :  { %v2168_v8 = vmul.f32 %v4872_v57, %v2096_v59  ;;  %v2275_v5 = vrot.slane %v2261_v50, %v5372_v9 }
 0x9ea   :  { %v2215_v21 = vmul.f32 1.442695, %v2172_v54  ;;  %v2217_v28 = vmul.f32 1.442695, %v2173_v12 }
 0x9eb   :  { %2721 = vbcast.lane.b32.xlu0 %v2446_v43, 336  ;;  %2725 = vbcast.lane.b32.xlu1 %v2446_v43, 344  ;;  %v2199_v43 = vmul.f32 1.442695, %v2164_v61  ;;  %v2207_v32 = vmul.f32 1.442695, %v2168_v8  ;;  %v2558_v61 = vrot.slane %v4919_v41, %v4020_v58  ;;  %v2562_v8 = vrot.slane %v2306_v49, %v4020_v58 }
 0x9ed   :  { %3640 = vpow2.f32 %v2199_v43 }
 0x9ee   :  { %3642 = vrcp.f32 %v3064_v14 }
 0x9ef   :  { %2473 = vbcast.lane.b32.xlu0 %v4820_v63, 320  ;;  %2461 = vbcast.lane.b32.xlu1 %v2458_v37, 320  ;;  %3644 = vpow2.f32 %v2201_v52  ;;  %v2174_v52 = vmul.f32 %v4872_v57, %v2108_v4 }
 0x9f3   :  { %2485 = vbcast.lane.b32.xlu0 %v4827_v46, 320  ;;  %2465 = vbcast.lane.b32.xlu1 %v2458_v37, 328 }
 0x9f7   :  { %2497 = vbcast.lane.b32.xlu0 %v4832_v34, 320  ;;  %2477 = vbcast.lane.b32.xlu1 %v4820_v63, 328 }
 0x9fb   :  { %2509 = vbcast.lane.b32.xlu0 %v4838_v17, 320  ;;  %2489 = vbcast.lane.b32.xlu1 %v4827_v46, 328 }
 0x9ff   :  { %2521 = vbcast.lane.b32.xlu0 %v4844_v44, 320  ;;  %2501 = vbcast.lane.b32.xlu1 %v4832_v34, 328 }
 0xa03   :  { %2533 = vbcast.lane.b32.xlu0 %v4854_v11, 320  ;;  %2513 = vbcast.lane.b32.xlu1 %v4838_v17, 328 }
 0xa07   :  { %2729 = vbcast.lane.b32.xlu0 %v2458_v37, 336  ;;  %2525 = vbcast.lane.b32.xlu1 %v4844_v44, 328 }
 0xa0b   :  { %2737 = vbcast.lane.b32.xlu0 %v4820_v63, 336  ;;  %2537 = vbcast.lane.b32.xlu1 %v4854_v11, 328 }
 0xa0f   :  { %2745 = vbcast.lane.b32.xlu0 %v4827_v46, 336  ;;  %2733 = vbcast.lane.b32.xlu1 %v2458_v37, 344  ;;  %v2167_v37 = vmul.f32 %v4867_v18, %v2096_v59 }
 0xa11   :  { %v2205_v31 = vmul.f32 1.442695, %v2167_v37 }
 0xa13   :  { %2545 = vbcast.lane.b32.xlu0 %v4883_v62, 320  ;;  %2741 = vbcast.lane.b32.xlu1 %v4820_v63, 344  ;;  %v4902_v63 = vpop.eup %3630 }
 0xa14   :  { %v1965_v56 = vadd.f32 1.0, %v4902_v63  ;;  %v3633_v26 = vpop.eup %3632  ;;  %v1968_v49 = vmul.f32 -0.5, %v4902_v63 }
 0xa15   :  { %v3635_v3 = vpop.eup %3634  ;;  %v2791_v38 = vmul.f32 0.0, %v3633_v26  ;;  %v2175_v26 = vmul.f32 %v4867_v18, %v2112_v60 }
 0xa16   :  { %v2792_v45 = vmul.f32 0.0, %v3635_v3  ;;  %v3637_v42 = vpop.eup %3636 }
 0xa17   :  { %2753 = vbcast.lane.b32.xlu0 %v4832_v34, 336  ;;  %2749 = vbcast.lane.b32.xlu1 %v4827_v46, 344  ;;  %v2203_v46 = vmul.f32 1.442695, %v2166_v48  ;;  %v3639_v51 = vpop.eup %3638 }
 0xa18   :  { %v3641_v23 = vpop.eup %3640 }
 0xa19   :  { %3646 = vpow2.f32 %v2203_v46  ;;  %v3643_v37 = vpop.eup %3642 }
 0xa1a   :  { %3648 = vlog2.f32 %v1965_v56  ;;  %v3645_v46 = vpop.eup %3644 }
 0xa1b   :  { %2761 = vbcast.lane.b32.xlu0 %v4838_v17, 336  ;;  %2549 = vbcast.lane.b32.xlu1 %v4883_v62, 328  ;;  %3650 = vpow2.f32 %v2205_v31 }
 0xa1c   :  { %3652 = vpow2.f32 %v2207_v32 }
 0xa1d   :  { %3654 = vpow2.f32 %v2209_v16  ;;  %v2566_v16 = vrot.slane %v2308_v10, %v4020_v58 }
 0xa1e   :  { %3656 = vpow2.f32 %v2211_v39 }
 0xa1f   :  { %2769 = vbcast.lane.b32.xlu0 %v4844_v44, 336  ;;  %2757 = vbcast.lane.b32.xlu1 %v4832_v34, 344 }
 0xa21   :  { %v2370_v22 = vpop.permute.xlu0 %2369  ;;  %v2366_v30 = vpop.permute.xlu1 %2365 }
 0xa22   :  { %v2632_v34 = vmul.f32 %v2554_v1, %v2370_v22  ;;  %v2631_v20 = vmul.f32 %v2554_v1, %v2366_v30  ;;  %v2291_v22 = vrot.slane %v2275_v5, %v5372_v9  ;;  %v2176_v30 = vmul.f32 %v4872_v57, %v2112_v60 }
 0xa23   :  { %2777 = vbcast.lane.b32.xlu0 %v4854_v11, 336  ;;  %2765 = vbcast.lane.b32.xlu1 %v4838_v17, 344  ;;  %v2213_v17 = vmul.f32 1.442695, %v2171_v27  ;;  %v3647_v56 = vpop.eup %3646  ;;  %v2277_v27 = vcombine.high %v2275_v5, %v2275_v5 }
 0xa24   :  { %v4930_v55 = vadd.f32 %v2791_v38, %v2631_v20  ;;  %v4932_v59 = vadd.f32 %v2792_v45, %v2632_v34  ;;  %v3649_v3 = vpop.eup %3648  ;;  %v2307_v10 = vcombine.high %v2291_v22, %v2291_v22 }
 0xa25   :  { %v2378_v36 = vpop.permute.xlu0 %2377  ;;  %v2382_v53 = vpop.permute.xlu1 %2381  ;;  %3658 = vpow2.f32 %v2213_v17 }
 0xa26   :  { %v2633_v43 = vmul.f32 %v2558_v61, %v2378_v36  ;;  %v2634_v48 = vmul.f32 %v2558_v61, %v2382_v53  ;;  %v2821_v14 = vmul.f32 %v3639_v51, %v4930_v55  ;;  %v2822_v2 = vmul.f32 %v3641_v23, %v4932_v59  ;;  %v3651_v4 = vpop.eup %3650 }
 0xa27   :  { %2785 = vbcast.lane.b32.xlu0 %v4883_v62, 336  ;;  %2773 = vbcast.lane.b32.xlu1 %v4844_v44, 344  ;;  %v3069_v44 = vmul.f32 %v3637_v42, %v4754_v25  ;;  %3660 = vpow2.f32 %v2215_v21  ;;  %v2219_v25 = vmul.f32 1.442695, %v2174_v52  ;;  %v3653_v20 = vpop.eup %3652  ;;  %v2221_v42 = vmul.f32 1.442695, %v2175_v26 }
 0xa28   :  { %v4945_v40 = vadd.f32 %v2821_v14, %v2633_v43  ;;  %v4947_v0 = vadd.f32 %v2822_v2, %v2634_v48  ;;  %3662 = vpow2.f32 %v2217_v28  ;;  %v3655_v51 = vpop.eup %3654  ;;  %v2223_v61 = vmul.f32 1.442695, %v2176_v30 }
 0xa29   :  { %v2390_v31 = vpop.permute.xlu0 %2389  ;;  %v2394_v33 = vpop.permute.xlu1 %2393  ;;  %3664 = vpow2.f32 %v2219_v25  ;;  %v2570_v23 = vrot.slane %v2291_v22, %v4020_v58  ;;  %v4968_v36 = vrot.slane %v2277_v27, %v5372_v9  ;;  %v3070_v48 = vmul.f32 %v3643_v37, %v4761_v15 }
 0xa2a   :  { %v2635_v32 = vmul.f32 %v2562_v8, %v2390_v31  ;;  %v2636_v24 = vmul.f32 %v2562_v8, %v2394_v33  ;;  %v2851_v1 = vmul.f32 %v3645_v46, %v4945_v40  ;;  %v2852_v41 = vmul.f32 %v3647_v56, %v4947_v0  ;;  %v3657_v12 = vpop.eup %3656 }
 0xa2b   :  { %3073 = vrot.lane.b32.xlu0 %v3069_v44, %s3804_s3  ;;  %2781 = vbcast.lane.b32.xlu1 %v4854_v11, 344  ;;  %3666 = vpow2.f32 %v2221_v42  ;;  %v1969_v52 = vadd.f32 1.0, %v1968_v49  ;;  %v1971_v46 = vand.u32 2147483647, %v4902_v63  ;;  %v2574_v8 = vrot.slane %v4968_v36, %v4020_v58 }
 0xa2c   :  { %v4958_v35 = vadd.f32 %v2851_v1, %v2635_v32  ;;  %v4960_v34 = vadd.f32 %v2852_v41, %v2636_v24  ;;  %3668 = vpow2.f32 %v2223_v61  ;;  %v1967_v44 = vmul.f32 0.6931472, %v3649_v3  ;;  %v3512_v3 = vld [vmem:[%s5277_s12 + $0x20] sm:$0xff]  }
 0xa2d   :  { %v2402_v38 = vpop.permute.xlu0 %2401  ;;  %v2406_v45 = vpop.permute.xlu1 %2405  ;;  %v1970_v41 = vmul.f32 %v4902_v63, %v1969_v52  ;;  %vm4993_vm6 = vcmp.lt.f32.partialorder %v1971_v46, 0.0004427343  ;;  %3459 = vmatpush3.bf16.msra.mxu1 %v3512_v3 }
 0xa2e   :  { %v2637_v50 = vmul.f32 %v2566_v16, %v2402_v38  ;;  %v2638_v11 = vmul.f32 %v2566_v16, %v2406_v45  ;;  %v2881_v39 = vmul.f32 %v3651_v4, %v4958_v35  ;;  %v2882_v54 = vmul.f32 %v3653_v20, %v4960_v34  ;;  %3460 = vmatprep.subr.bf16.mxu1 %v5361_v13 }
 0xa2f   :  { %2789 = vbcast.lane.b32.xlu1 %v4883_v62, 344  ;;  %v3659_v21 = vpop.eup %3658  ;;  %v2578_v4 = vrot.slane %v2307_v10, %v4020_v58  ;;  %v1973_v63 = vsel %vm4993_vm6, %v1970_v41, %v1967_v44 }
 0xa30   :  { %v4970_v53 = vadd.f32 %v2881_v39, %v2637_v50  ;;  %v4972_v17 = vadd.f32 %v2882_v54, %v2638_v11  ;;  %v3513_v11 = vld [vmem:[%s5277_s12 + $0x28] sm:$0xff]   ;;  %v1943_v54 = vmax.f32 %v4847_v6, 0.0 }
 0xa31   :  { %v2414_v60 = vpop.permute.xlu0 %2413  ;;  %v2418_v43 = vpop.permute.xlu1 %2417  ;;  %3461 = vmatpush3.bf16.msra.mxu1 %v3513_v11 }
 0xa32   :  { %v2639_v62 = vmul.f32 %v2570_v23, %v2414_v60  ;;  %v2640_v14 = vmul.f32 %v2570_v23, %v2418_v43  ;;  %v2911_v2 = vmul.f32 %v3655_v51, %v4970_v53  ;;  %v2912_v5 = vmul.f32 %v3657_v12, %v4972_v17  ;;  %v3661_v37 = vpop.eup %3660  ;;  %3462 = vmatprep.subr.bf16.mxu1 %v5361_v13 }
 0xa33   :  { %3075 = vrot.lane.b32.xlu1 %v3070_v48, %s3804_s3  ;;  %v3663_v1 = vpop.eup %3662  ;;  %v1975_v60 = vadd.f32 %v1973_v63, %v1943_v54 }
 0xa34   :  { %v4981_v56 = vadd.f32 %v2911_v2, %v2639_v62  ;;  %v4983_v15 = vadd.f32 %v2912_v5, %v2640_v14  ;;  %v3665_v16 = vpop.eup %3664  ;;  %v3514_v2 = vld [vmem:[%s5277_s12 + $0x30] sm:$0xff]  }
 0xa35   :  { %v2426_v31 = vpop.permute.xlu0 %2425  ;;  %v2430_v33 = vpop.permute.xlu1 %2429  ;;  %v5026_v46 = vsel %vm1945_vm7, %v4847_v6, %v1975_v60  ;;  %3463 = vmatpush3.bf16.msra.mxu1 %v3514_v2  ;;  %v2309_v6 = vcombine.high %v4968_v36, %v4968_v36 }
 0xa36   :  { %v2641_v28 = vmul.f32 %v2574_v8, %v2426_v31  ;;  %v2642_v26 = vmul.f32 %v2574_v8, %v2430_v33  ;;  %v2941_v32 = vmul.f32 %v3659_v21, %v4981_v56  ;;  %v2942_v24 = vmul.f32 %v3661_v37, %v4983_v15  ;;  %v3667_v39 = vpop.eup %3666  ;;  %v3515_v37 = vld [vmem:[%s5277_s12 + $0x38] sm:$0xff]   ;;  %3464 = vmatprep.subr.bf16.mxu1 %v5361_v13 }
 0xa37   :  { %v3669_v49 = vpop.eup %3668  ;;  %v2582_v36 = vrot.slane %v2309_v6, %v4020_v58 }
 0xa38   :  { %v4989_v22 = vadd.f32 %v2941_v32, %v2641_v28  ;;  %v4991_v25 = vadd.f32 %v2942_v24, %v2642_v26 }
 0xa39   :  { %v2438_v27 = vpop.permute.xlu0 %2437  ;;  %v2442_v20 = vpop.permute.xlu1 %2441  ;;  %3465 = vmatpush3.bf16.msra.mxu1 %v3515_v37 }
 0xa3a   :  { %v2643_v38 = vmul.f32 %v2578_v4, %v2438_v27  ;;  %v2644_v45 = vmul.f32 %v2578_v4, %v2442_v20  ;;  %v2971_v42 = vmul.f32 %v3663_v1, %v4989_v22  ;;  %v2972_v50 = vmul.f32 %v3665_v16, %v4991_v25 }
 0xa3c   :  { %v5009_v51 = vadd.f32 %v2971_v42, %v2643_v38  ;;  %v5011_v61 = vadd.f32 %v2972_v50, %v2644_v45 }
 0xa3d   :  { %v2666_v23 = vpop.permute.xlu0 %2665  ;;  %v2670_v12 = vpop.permute.xlu1 %2669 }
 0xa3e   :  { %v2799_v43 = vmul.f32 %v4930_v55, %v2666_v23  ;;  %v2800_v48 = vmul.f32 %v4932_v59, %v2670_v12  ;;  %v3001_v62 = vmul.f32 %v3667_v39, %v5009_v51  ;;  %v3002_v14 = vmul.f32 %v3669_v49, %v5011_v61 }
 0xa40   :  { %v2803_v5 = vsel %vm397_vm11, %v2799_v43, 0.0  ;;  %v2804_v21 = vsel %vm397_vm11, %v2800_v48, 0.0 }
 0xa41   :  { %v2805_v55 = vadd.f32 %v2804_v21, %v2803_v5  ;;  %v2674_v59 = vpop.permute.xlu0 %2673  ;;  %v2678_v52 = vpop.permute.xlu1 %2677 }
 0xa42   :  { %v2829_v8 = vmul.f32 %v4945_v40, %v2674_v59  ;;  %v2830_v10 = vmul.f32 %v4947_v0, %v2678_v52  ;;  %v2039_v40 = vrot.slane %v5026_v46, %v5372_v9 }
 0xa43   :  { %v2806_v31 = vrot.slane %v2805_v55, 4 }
 0xa44   :  { %v2833_v33 = vsel %vm397_vm11, %v2829_v8, 0.0  ;;  %v2834_v44 = vsel %vm397_vm11, %v2830_v10, 0.0  ;;  %v5046_v16 = vrot.slane %v2039_v40, %v5372_v9  ;;  %v2047_v54 = vcombine.high %v2039_v40, %v2039_v40 }
 0xa45   :  { %v2807_v28 = vadd.f32 %v2806_v31, %v2805_v55  ;;  %v2835_v0 = vadd.f32 %v2834_v44, %v2833_v33  ;;  %v2682_v26 = vpop.permute.xlu0 %2681  ;;  %v2686_v32 = vpop.permute.xlu1 %2685 }
 0xa46   :  { %v2859_v24 = vmul.f32 %v4958_v35, %v2682_v26  ;;  %v2860_v1 = vmul.f32 %v4960_v34, %v2686_v32  ;;  %v2116_v49 = vrot.slane %v5046_v16, %v4020_v58  ;;  %v5059_v59 = vrot.slane %v2047_v54, %v5372_v9 }
 0xa47   :  { %v2808_v41 = vrot.slane %v2807_v28, 2  ;;  %v2836_v4 = vrot.slane %v2835_v0, 4  ;;  %v5068_v26 = vmul.f32 %v5026_v46, %v4798_v7 }
 0xa48   :  { %v2863_v30 = vsel %vm397_vm11, %v2859_v24, 0.0  ;;  %v2864_v3 = vsel %vm397_vm11, %v2860_v1, 0.0  ;;  %v2177_v52 = vmul.f32 %v4867_v18, %v2116_v49  ;;  %v2178_v6 = vmul.f32 %v4872_v57, %v2116_v49 }
 0xa49   :  { %v2809_v27 = vadd.f32 %v2808_v41, %v2807_v28  ;;  %v2837_v20 = vadd.f32 %v2836_v4, %v2835_v0  ;;  %v2865_v63 = vadd.f32 %v2864_v3, %v2863_v30  ;;  %v2450_v38 = vpop.permute.xlu0 %2449  ;;  %v2454_v45 = vpop.permute.xlu1 %2453  ;;  %v2120_v1 = vrot.slane %v5059_v59, %v4020_v58 }
 0xa4a   :  { %v2645_v35 = vmul.f32 %v2582_v36, %v2450_v38  ;;  %v2646_v42 = vmul.f32 %v2582_v36, %v2454_v45  ;;  %v2225_v3 = vmul.f32 1.442695, %v2177_v52 }
 0xa4b   :  { %v2838_v34 = vrot.slane %v2837_v20, 2  ;;  %v2866_v50 = vrot.slane %v2865_v63, 4  ;;  %v2810_v23 = vrot.slane %v2809_v27, 1 }
 0xa4c   :  { %v5048_v11 = vadd.f32 %v3001_v62, %v2645_v35  ;;  %v5050_v39 = vadd.f32 %v3002_v14, %v2646_v42  ;;  %v5081_v42 = vrot.slane %v5068_v26, %v5372_v9  ;;  %3670 = vpow2.f32 %v2225_v3 }
 0xa4d   :  { %v2839_v12 = vadd.f32 %v2838_v34, %v2837_v20  ;;  %v2867_v60 = vadd.f32 %v2866_v50, %v2865_v63  ;;  %v2690_v43 = vpop.permute.xlu0 %2689  ;;  %v2694_v48 = vpop.permute.xlu1 %2693  ;;  %v2811_v8 = vadd.f32 %v2810_v23, %v2809_v27  ;;  %v2227_v20 = vmul.f32 1.442695, %v2178_v6 }
 0xa4e   :  { %v2889_v2 = vmul.f32 %v4970_v53, %v2690_v43  ;;  %v2890_v5 = vmul.f32 %v4972_v17, %v2694_v48  ;;  %v2032_v63 = vcombine.high %v5026_v46, %v5026_v46 }
 0xa4f   :  { %v2840_v21 = vrot.slane %v2839_v12, 1  ;;  %v2868_v55 = vrot.slane %v2867_v60, 2  ;;  %3672 = vpow2.f32 %v2227_v20 }
 0xa50   :  { %v2893_v62 = vsel %vm397_vm11, %v2889_v2, 0.0  ;;  %v2894_v14 = vsel %vm397_vm11, %v2890_v5, 0.0  ;;  %v2180_v2 = vmul.f32 %v4872_v57, %v2120_v1 }
 0xa51   :  { %v2841_v10 = vadd.f32 %v2840_v21, %v2839_v12  ;;  %v2869_v37 = vadd.f32 %v2868_v55, %v2867_v60  ;;  %v2895_v31 = vadd.f32 %v2894_v14, %v2893_v62  ;;  %v2698_v33 = vpop.permute.xlu0 %2697  ;;  %v2702_v44 = vpop.permute.xlu1 %2701 }
 0xa52   :  { %v2919_v53 = vmul.f32 %v4981_v56, %v2698_v33  ;;  %v2920_v17 = vmul.f32 %v4983_v15, %v2702_v44  ;;  %v2231_v6 = vmul.f32 1.442695, %v2180_v2 }
 0xa53   :  { %v3031_v40 = vsel %vm1539_vm1, %v2811_v8, %v2841_v10  ;;  %v2870_v28 = vrot.slane %v2869_v37, 1  ;;  %v2896_v0 = vrot.slane %v2895_v31, 4 }
 0xa54   :  { %v2923_v32 = vsel %vm397_vm11, %v2919_v53, 0.0  ;;  %v2924_v24 = vsel %vm397_vm11, %v2920_v17, 0.0  ;;  %v2079_v17 = vcombine.high %v5059_v59, %v5059_v59  ;;  %v2325_v59 = vcombine.high %v5081_v42, %v5081_v42 }
 0xa55   :  { %v2871_v56 = vadd.f32 %v2870_v28, %v2869_v37  ;;  %v2897_v41 = vadd.f32 %v2896_v0, %v2895_v31  ;;  %v2925_v15 = vadd.f32 %v2924_v24, %v2923_v32  ;;  %v2706_v4 = vpop.permute.xlu0 %2705  ;;  %v2710_v30 = vpop.permute.xlu1 %2709 }
 0xa56   :  { %v2949_v36 = vmul.f32 %v4989_v22, %v2706_v4  ;;  %v2950_v27 = vmul.f32 %v4991_v25, %v2710_v30  ;;  %v2077_v22 = vcombine.high %v5046_v16, %v5046_v16  ;;  %v2179_v25 = vmul.f32 %v4867_v18, %v2120_v1 }
 0xa57   :  { %v3033_v38 = vsel %vm1542_vm2, %v3031_v40, %v2871_v56  ;;  %v2898_v45 = vrot.slane %v2897_v41, 2  ;;  %v2926_v35 = vrot.slane %v2925_v15, 4  ;;  %v5093_v16 = vrot.slane %v5081_v42, %v5372_v9 }
 0xa58   :  { %v2953_v34 = vsel %vm397_vm11, %v2949_v36, 0.0  ;;  %v2954_v50 = vsel %vm397_vm11, %v2950_v27, 0.0  ;;  %v2124_v52 = vrot.slane %v2077_v22, %v4020_v58  ;;  %v2229_v8 = vmul.f32 1.442695, %v2179_v25  ;;  %v3671_v27 = vpop.eup %3670 }
 0xa59   :  { %v2899_v54 = vadd.f32 %v2898_v45, %v2897_v41  ;;  %v2927_v49 = vadd.f32 %v2926_v35, %v2925_v15  ;;  %v2955_v23 = vadd.f32 %v2954_v50, %v2953_v34  ;;  %v2714_v12 = vpop.permute.xlu0 %2713  ;;  %v2718_v60 = vpop.permute.xlu1 %2717  ;;  %v2586_v3 = vrot.slane %v5093_v16, %v4020_v58 }
 0xa5a   :  { %v2979_v43 = vmul.f32 %v5009_v51, %v2714_v12  ;;  %v2980_v48 = vmul.f32 %v5011_v61, %v2718_v60  ;;  %3674 = vpow2.f32 %v2229_v8  ;;  %v2181_v56 = vmul.f32 %v4867_v18, %v2124_v52  ;;  %v3673_v34 = vpop.eup %3672 }
 0xa5b   :  { %v2900_v5 = vrot.slane %v2899_v54, 1  ;;  %v2928_v21 = vrot.slane %v2927_v49, 2  ;;  %v2956_v55 = vrot.slane %v2955_v23, 4  ;;  %3676 = vpow2.f32 %v2231_v6 }
 0xa5c   :  { %v2983_v62 = vsel %vm397_vm11, %v2979_v43, 0.0  ;;  %v2984_v14 = vsel %vm397_vm11, %v2980_v48, 0.0  ;;  %v2182_v36 = vmul.f32 %v4872_v57, %v2124_v52  ;;  %v2128_v22 = vrot.slane %v2079_v17, %v4020_v58 }
 0xa5d   :  { %v2901_v51 = vadd.f32 %v2900_v5, %v2899_v54  ;;  %v2929_v10 = vadd.f32 %v2928_v21, %v2927_v49  ;;  %v2957_v61 = vadd.f32 %v2956_v55, %v2955_v23  ;;  %v2985_v37 = vadd.f32 %v2984_v14, %v2983_v62  ;;  %v2722_v31 = vpop.permute.xlu0 %2721  ;;  %v2726_v33 = vpop.permute.xlu1 %2725 }
 0xa5e   :  { %v3009_v44 = vmul.f32 %v5048_v11, %v2722_v31  ;;  %v3010_v53 = vmul.f32 %v5050_v39, %v2726_v33  ;;  %v2046_v42 = vrot.slane %v2032_v63, %v5372_v9  ;;  %v2233_v60 = vmul.f32 1.442695, %v2181_v56 }
 0xa5f   :  { %v2930_v40 = vrot.slane %v2929_v10, 1  ;;  %v2958_v28 = vrot.slane %v2957_v61, 2  ;;  %v2986_v0 = vrot.slane %v2985_v37, 4  ;;  %v3035_v32 = vsel %vm1545_vm3, %v3033_v38, %v2901_v51 }
 0xa60   :  { %v3013_v24 = vsel %vm397_vm11, %v3009_v44, 0.0  ;;  %v3014_v1 = vsel %vm397_vm11, %v3010_v53, 0.0  ;;  %v5118_v43 = vrot.slane %v2325_v59, %v5372_v9  ;;  %v2793_v2 = vmul.f32 0.0, %v3671_v27 }
 0xa61   :  { %v2931_v41 = vadd.f32 %v2930_v40, %v2929_v10  ;;  %v2959_v11 = vadd.f32 %v2958_v28, %v2957_v61  ;;  %v2987_v15 = vadd.f32 %v2986_v0, %v2985_v37  ;;  %v3015_v39 = vadd.f32 %v3014_v1, %v3013_v24  ;;  %v2474_v4 = vpop.permute.xlu0 %2473  ;;  %v2462_v30 = vpop.permute.xlu1 %2461 }
 0xa62   :  { %v2647_v50 = vmul.f32 %v2586_v3, %v2462_v30  ;;  %v2235_v5 = vmul.f32 1.442695, %v2182_v36  ;;  %v2794_v62 = vmul.f32 0.0, %v3673_v34  ;;  %v2183_v46 = vmul.f32 %v4867_v18, %v2128_v22 }
 0xa63   :  { %v2960_v20 = vrot.slane %v2959_v11, 1  ;;  %v2988_v38 = vrot.slane %v2987_v15, 2  ;;  %v3016_v45 = vrot.slane %v3015_v39, 4  ;;  %v3037_v35 = vsel %vm1548_vm12, %v3035_v32, %v2931_v41 }
 0xa64   :  { %v5121_v52 = vadd.f32 %v2793_v2, %v2647_v50  ;;  %v5125_v63 = vrot.slane %v2046_v42, %v5372_v9  ;;  %3678 = vpow2.f32 %v2233_v60  ;;  %v3675_v31 = vpop.eup %3674  ;;  %v2184_v33 = vmul.f32 %v4872_v57, %v2128_v22 }
 0xa65   :  { %v2961_v25 = vadd.f32 %v2960_v20, %v2959_v11  ;;  %v2989_v54 = vadd.f32 %v2988_v38, %v2987_v15  ;;  %v3017_v49 = vadd.f32 %v3016_v45, %v3015_v39  ;;  %v2486_v23 = vpop.permute.xlu0 %2485  ;;  %v2466_v12 = vpop.permute.xlu1 %2465  ;;  %3680 = vpow2.f32 %v2235_v5 }
 0xa66   :  { %v2648_v48 = vmul.f32 %v2586_v3, %v2466_v12  ;;  %v2590_v53 = vrot.slane %v5118_v43, %v4020_v58  ;;  %v3677_v6 = vpop.eup %3676  ;;  %v2823_v40 = vmul.f32 %v3675_v31, %v5121_v52  ;;  %v2237_v28 = vmul.f32 1.442695, %v2183_v46 }
 0xa67   :  { %v2990_v21 = vrot.slane %v2989_v54, 1  ;;  %v3018_v55 = vrot.slane %v3017_v49, 2  ;;  %v3039_v14 = vsel %vm1551_vm13, %v3037_v35, %v2961_v25  ;;  %v2048_v0 = vcombine.high %v2046_v42, %v2046_v42 }
 0xa68   :  { %v5129_v37 = vadd.f32 %v2794_v62, %v2648_v48  ;;  %v2132_v41 = vrot.slane %v5125_v63, %v4020_v58  ;;  %v2649_v15 = vmul.f32 %v2590_v53, %v2474_v4  ;;  %v2239_v39 = vmul.f32 1.442695, %v2184_v33 }
 0xa69   :  { %v2991_v8 = vadd.f32 %v2990_v21, %v2989_v54  ;;  %v3019_v51 = vadd.f32 %v3018_v55, %v3017_v49  ;;  %v5127_v10 = vpop.permute.xlu0 %2497  ;;  %v2478_v61 = vpop.permute.xlu1 %2477  ;;  %v2355_v30 = vcombine.high %v5093_v16, %v5093_v16  ;;  %3682 = vpow2.f32 %v2237_v28 }
 0xa6a   :  { %v2650_v32 = vmul.f32 %v2590_v53, %v2478_v61  ;;  %v2824_v56 = vmul.f32 %v3677_v6, %v5129_v37  ;;  %v5146_v3 = vadd.f32 %v2823_v40, %v2649_v15  ;;  %v2185_v38 = vmul.f32 %v4867_v18, %v2132_v41 }
 0xa6b   :  { %v3020_v44 = vrot.slane %v3019_v51, 1  ;;  %v3041_v17 = vsel %vm1554_vm14, %v3039_v14, %v2991_v8  ;;  %v2076_v45 = vrot.slane %v2048_v0, %v5372_v9  ;;  %3684 = vpow2.f32 %v2239_v39 }
 0xa6c   :  { %v5150_v20 = vadd.f32 %v2824_v56, %v2650_v32  ;;  %v2186_v4 = vmul.f32 %v4872_v57, %v2132_v41  ;;  %v2594_v16 = vrot.slane %v2355_v30, %v4020_v58  ;;  %v2241_v49 = vmul.f32 1.442695, %v2185_v38 }
 0xa6d   :  { %v5136_v24 = vpop.permute.xlu0 %2509  ;;  %v2490_v1 = vpop.permute.xlu1 %2489  ;;  %v3021_v11 = vadd.f32 %v3020_v44, %v3019_v51  ;;  %v2136_v12 = vrot.slane %v2076_v45, %v4020_v58  ;;  %v2357_v2 = vcombine.high %v5118_v43, %v5118_v43  ;;  %v2310_v5 = vcombine.high %v5068_v26, %v5068_v26 }
 0xa6e   :  { %v3679_v35 = vpop.eup %3678  ;;  %v2652_v22 = vmul.f32 %v2594_v16, %v2490_v1  ;;  %v2651_v60 = vmul.f32 %v2594_v16, %v2486_v23  ;;  %v2243_v48 = vmul.f32 1.442695, %v2186_v4  ;;  %3686 = vpow2.f32 %v2241_v49 }
 0xa6f   :  { %v5144_v59 = vsel %vm1557_vm15, %v3041_v17, %v3021_v11  ;;  %v3681_v34 = vpop.eup %3680  ;;  %v2853_v50 = vmul.f32 %v3679_v35, %v5146_v3  ;;  %v2187_v46 = vmul.f32 %v4867_v18, %v2136_v12  ;;  %v2078_v8 = vcombine.high %v5125_v63, %v5125_v63 }
 0xa70   :  { %v2854_v54 = vmul.f32 %v3681_v34, %v5150_v20  ;;  %3688 = vpow2.f32 %v2243_v48  ;;  %v2188_v23 = vmul.f32 %v4872_v57, %v2136_v12  ;;  %v2598_v43 = vrot.slane %v2357_v2, %v4020_v58 }
 0xa71   :  { %v5148_v36 = vpop.permute.xlu0 %2521  ;;  %v2502_v27 = vpop.permute.xlu1 %2501  ;;  %v5165_v21 = vadd.f32 %v2853_v50, %v2651_v60  ;;  %v2324_v26 = vrot.slane %v2310_v5, %v5372_v9  ;;  %v2245_v17 = vmul.f32 1.442695, %v2187_v46  ;;  %v2140_v40 = vrot.slane %v2078_v8, %v4020_v58 }
 0xa72   :  { %v2858_v14 = vadd.f32 %v2854_v54, %v2652_v22  ;;  %v2654_v33 = vmul.f32 %v2598_v43, %v2502_v27  ;;  %v2653_v63 = vmul.f32 %v2598_v43, %v5127_v10  ;;  %v2247_v28 = vmul.f32 1.442695, %v2188_v23 }
 0xa73   :  { %v3683_v51 = vpop.eup %3682  ;;  %v5181_v0 = vrot.slane %v2324_v26, %v5372_v9  ;;  %3690 = vpow2.f32 %v2245_v17  ;;  %v2189_v11 = vmul.f32 %v4867_v18, %v2140_v40  ;;  %v2080_v15 = vcombine.high %v2076_v45, %v2076_v45 }
 0xa74   :  { %v2883_v31 = vmul.f32 %v3683_v51, %v5165_v21  ;;  %3692 = vpow2.f32 %v2247_v28  ;;  %v2190_v39 = vmul.f32 %v4872_v57, %v2140_v40  ;;  %v2326_v10 = vcombine.high %v2324_v26, %v2324_v26 }
 0xa75   :  { %v5157_v42 = vpop.permute.xlu0 %2533  ;;  %v2514_v25 = vpop.permute.xlu1 %2513  ;;  %v2602_v27 = vrot.slane %v5181_v0, %v4020_v58  ;;  %v2249_v50 = vmul.f32 1.442695, %v2189_v11  ;;  %v2144_v54 = vrot.slane %v2080_v15, %v4020_v58 }
 0xa76   :  { %v3685_v61 = vpop.eup %3684  ;;  %v2887_v32 = vadd.f32 %v2883_v31, %v2653_v63  ;;  %v2251_v49 = vmul.f32 1.442695, %v2190_v39  ;;  %v2354_v12 = vrot.slane %v2326_v10, %v5372_v9 }
 0xa77   :  { %v2884_v6 = vmul.f32 %v3685_v61, %v2858_v14  ;;  %v2656_v35 = vmul.f32 %v2602_v27, %v2514_v25  ;;  %v2655_v45 = vmul.f32 %v2602_v27, %v5136_v24  ;;  %3694 = vpow2.f32 %v2249_v50 }
 0xa78   :  { %v3687_v30 = vpop.eup %3686  ;;  %v2191_v46 = vmul.f32 %v4867_v18, %v2144_v54  ;;  %3696 = vpow2.f32 %v2251_v49  ;;  %v2192_v8 = vmul.f32 %v4872_v57, %v2144_v54  ;;  %v2606_v51 = vrot.slane %v2354_v12, %v4020_v58 }
 0xa79   :  { %v5167_v55 = vpop.permute.xlu0 %2729  ;;  %v2526_v62 = vpop.permute.xlu1 %2525  ;;  %v2888_v41 = vadd.f32 %v2884_v6, %v2654_v33  ;;  %v2913_v4 = vmul.f32 %v3687_v30, %v2887_v32  ;;  %v2358_v10 = vcombine.high %v2354_v12, %v2354_v12 }
 0xa7a   :  { %v3689_v38 = vpop.eup %3688  ;;  %v2658_v31 = vmul.f32 %v2606_v51, %v2526_v62  ;;  %v2253_v6 = vmul.f32 1.442695, %v2191_v46  ;;  %v2657_v40 = vmul.f32 %v2606_v51, %v5148_v36  ;;  %v2801_v57 = vmul.f32 %v5121_v52, %v5167_v55 }
 0xa7b   :  { %v2914_v22 = vmul.f32 %v3689_v38, %v2888_v41  ;;  %v2917_v60 = vadd.f32 %v2913_v4, %v2655_v45  ;;  %v2255_v63 = vmul.f32 1.442695, %v2192_v8  ;;  %v2614_v12 = vrot.slane %v2358_v10, %v4020_v58 }
 0xa7c   :  { %3698 = vpow2.f32 %v2253_v6  ;;  %v2812_v55 = vsel %vm397_vm11, %v2801_v57, 0.0 }
 0xa7d   :  { %v2738_v44 = vpop.permute.xlu0 %2737  ;;  %v5176_v53 = vpop.permute.xlu1 %2537  ;;  %v2918_v5 = vadd.f32 %v2914_v22, %v2656_v35  ;;  %3700 = vpow2.f32 %v2255_v63 }
 0xa7e   :  { %v3691_v23 = vpop.eup %3690  ;;  %v2831_v26 = vmul.f32 %v5146_v3, %v2738_v44  ;;  %v2356_v3 = vcombine.high %v5181_v0, %v5181_v0 }
 0xa7f   :  { %v3693_v24 = vpop.eup %3692  ;;  %v2943_v61 = vmul.f32 %v3691_v23, %v2917_v60 }
 0xa80   :  { %v2842_v62 = vsel %vm397_vm11, %v2831_v26, 0.0  ;;  %v2610_v30 = vrot.slane %v2356_v3, %v4020_v58 }
 0xa81   :  { %v2746_v1 = vpop.permute.xlu0 %2745  ;;  %v2734_v56 = vpop.permute.xlu1 %2733  ;;  %v2947_v28 = vadd.f32 %v2943_v61, %v2657_v40 }
 0xa82   :  { %v2802_v9 = vmul.f32 %v5129_v37, %v2734_v56  ;;  %v2861_v33 = vmul.f32 %v5165_v21, %v2746_v1  ;;  %v3695_v0 = vpop.eup %3694  ;;  %v2660_v50 = vmul.f32 %v2610_v30, %v5176_v53 }
 0xa83   :  { %v3697_v38 = vpop.eup %3696 }
 0xa84   :  { %v2813_v21 = vsel %vm397_vm11, %v2802_v9, 0.0  ;;  %v2872_v1 = vsel %vm397_vm11, %v2861_v33, 0.0 }
 0xa85   :  { %v5187_v16 = vpop.permute.xlu0 %2545  ;;  %v2742_v34 = vpop.permute.xlu1 %2741  ;;  %v2814_v27 = vadd.f32 %v2813_v21, %v2812_v55 }
 0xa86   :  { %v2832_v25 = vmul.f32 %v5150_v20, %v2742_v34  ;;  %v2944_v20 = vmul.f32 %v3693_v24, %v2918_v5  ;;  %v2973_v34 = vmul.f32 %v3695_v0, %v2947_v28  ;;  %v2661_v61 = vmul.f32 %v2614_v12, %v5187_v16 }
 0xa87   :  { %v2815_v46 = vrot.slane %v2814_v27, 4 }
 0xa88   :  { %v2948_v52 = vadd.f32 %v2944_v20, %v2658_v31 }
 0xa89   :  { %v2754_v48 = vpop.permute.xlu0 %2753  ;;  %v2750_v2 = vpop.permute.xlu1 %2749  ;;  %v2816_v33 = vadd.f32 %v2815_v46, %v2814_v27 }
 0xa8a   :  { %v2862_v43 = vmul.f32 %v2858_v14, %v2750_v2  ;;  %v2843_v14 = vsel %vm397_vm11, %v2832_v25, 0.0  ;;  %v2891_v44 = vmul.f32 %v2887_v32, %v2754_v48  ;;  %v2974_v49 = vmul.f32 %v3697_v38, %v2948_v52 }
 0xa8b   :  { %v2844_v36 = vadd.f32 %v2843_v14, %v2842_v62 }
 0xa8c   :  { %v2873_v37 = vsel %vm397_vm11, %v2862_v43, 0.0  ;;  %v2902_v32 = vsel %vm397_vm11, %v2891_v44, 0.0  ;;  %v2978_v9 = vadd.f32 %v2974_v49, %v2660_v50 }
 0xa8d   :  { %v2762_v17 = vpop.permute.xlu0 %2761  ;;  %v2550_v18 = vpop.permute.xlu1 %2549  ;;  %v2874_v15 = vadd.f32 %v2873_v37, %v2872_v1  ;;  %v2845_v22 = vrot.slane %v2844_v36, 4 }
 0xa8e   :  { %v2921_v4 = vmul.f32 %v2917_v60, %v2762_v17  ;;  %v2662_v17 = vmul.f32 %v2614_v12, %v2550_v18 }
 0xa8f   :  { %v2875_v48 = vrot.slane %v2874_v15, 4  ;;  %v2846_v53 = vadd.f32 %v2845_v22, %v2844_v36 }
 0xa90   :  { %v2932_v60 = vsel %vm397_vm11, %v2921_v4, 0.0 }
 0xa91   :  { %v2770_v56 = vpop.permute.xlu0 %2769  ;;  %v2758_v11 = vpop.permute.xlu1 %2757  ;;  %v2847_v3 = vrot.slane %v2846_v53, 2 }
 0xa92   :  { %v2892_v39 = vmul.f32 %v2888_v41, %v2758_v11  ;;  %v2659_v41 = vmul.f32 %v2610_v30, %v5157_v42  ;;  %v2951_v23 = vmul.f32 %v2947_v28, %v2770_v56  ;;  %v2876_v42 = vadd.f32 %v2875_v48, %v2874_v15 }
 0xa93   :  { %v2817_v56 = vrot.slane %v2816_v33, 2  ;;  %v2848_v30 = vadd.f32 %v2847_v3, %v2846_v53 }
 0xa94   :  { %v2903_v35 = vsel %vm397_vm11, %v2892_v39, 0.0  ;;  %v2977_v51 = vadd.f32 %v2973_v34, %v2659_v41  ;;  %v2962_v40 = vsel %vm397_vm11, %v2951_v23, 0.0  ;;  %v2877_v28 = vrot.slane %v2876_v42, 2 }
 0xa95   :  { %v2904_v54 = vadd.f32 %v2903_v35, %v2902_v32  ;;  %v2766_v45 = vpop.permute.xlu1 %2765  ;;  %v2778_v8 = vpop.permute.xlu0 %2777  ;;  %v2818_v35 = vadd.f32 %v2817_v56, %v2816_v33  ;;  %v2849_v41 = vrot.slane %v2848_v30, 1 }
 0xa96   :  { %v2922_v2 = vmul.f32 %v2918_v5, %v2766_v45  ;;  %v3699_v5 = vpop.eup %3698  ;;  %v2981_v57 = vmul.f32 %v2977_v51, %v2778_v8  ;;  %v2878_v32 = vadd.f32 %v2877_v28, %v2876_v42 }
 0xa97   :  { %v2905_v25 = vrot.slane %v2904_v54, 4  ;;  %v3701_v20 = vpop.eup %3700  ;;  %v3003_v14 = vmul.f32 %v3699_v5, %v2977_v51 }
 0xa98   :  { %v2933_v43 = vsel %vm397_vm11, %v2922_v2, 0.0  ;;  %v3004_v16 = vmul.f32 %v3701_v20, %v2978_v9  ;;  %v2992_v55 = vsel %vm397_vm11, %v2981_v57, 0.0  ;;  %v2879_v12 = vrot.slane %v2878_v32, 1  ;;  %v3342_v57 = vld [vmem:[%s5276_s11 + $0x1] ss:$0 sm:$0xff] }
 0xa99   :  { %v2934_v24 = vadd.f32 %v2933_v43, %v2932_v60  ;;  %v2774_v26 = vpop.permute.xlu1 %2773  ;;  %v2906_v58 = vadd.f32 %v2905_v25, %v2904_v54  ;;  %v2786_v62 = vpop.permute.xlu0 %2785  ;;  %v3007_v1 = vadd.f32 %v3003_v14, %v2661_v61  ;;  %v2819_v25 = vrot.slane %v2818_v35, 1 }
 0xa9a   :  { %v2952_v31 = vmul.f32 %v2948_v52, %v2774_v26  ;;  %v3008_v52 = vadd.f32 %v3004_v16, %v2662_v17  ;;  %v2850_v43 = vadd.f32 %v2849_v41, %v2848_v30 }
 0xa9b   :  { %v2935_v6 = vrot.slane %v2934_v24, 4  ;;  %v2907_v18 = vrot.slane %v2906_v58, 2  ;;  %v3011_v39 = vmul.f32 %v3007_v1, %v2786_v62  ;;  %v2820_v61 = vadd.f32 %v2819_v25, %v2818_v35 }
 0xa9c   :  { %v2963_v63 = vsel %vm397_vm11, %v2952_v31, 0.0 }
 0xa9d   :  { %v2936_v37 = vadd.f32 %v2935_v6, %v2934_v24  ;;  %v2964_v21 = vadd.f32 %v2963_v63, %v2962_v40  ;;  %v2782_v44 = vpop.permute.xlu1 %2781  ;;  %v2908_v34 = vadd.f32 %v2907_v18, %v2906_v58  ;;  %v3022_v45 = vsel %vm397_vm11, %v3011_v39, 0.0  ;;  %v3074_v28 = vpop.permute.xlu0 %3073 }
 0xa9e   :  { %v2982_v36 = vmul.f32 %v2978_v9, %v2782_v44  ;;  %v2880_v9 = vadd.f32 %v2879_v12, %v2878_v32  ;;  %v3032_v17 = vsel %vm1539_vm1, %v2820_v61, %v2850_v43  ;;  %v3054_v44 = vmul.f32 %v3342_v57, %v4798_v7 }
 0xa9f   :  { %v2965_v11 = vrot.slane %v2964_v21, 4  ;;  %v2937_v15 = vrot.slane %v2936_v37, 2  ;;  %v2909_v8 = vrot.slane %v2908_v34, 1 }
 0xaa0   :  { %v2993_v0 = vsel %vm397_vm11, %v2982_v36, 0.0  ;;  %v3034_v20 = vsel %vm1542_vm2, %v3032_v17, %v2880_v9 }
 0xaa1   :  { %v2966_v27 = vadd.f32 %v2965_v11, %v2964_v21  ;;  %v2994_v10 = vadd.f32 %v2993_v0, %v2992_v55  ;;  %v2790_v38 = vpop.permute.xlu1 %2789  ;;  %v2938_v54 = vadd.f32 %v2937_v15, %v2936_v37  ;;  %v2910_v42 = vadd.f32 %v2909_v8, %v2908_v34 }
 0xaa2   :  { %v3012_v4 = vmul.f32 %v3008_v52, %v2790_v38  ;;  %v3053_v21 = vmul.f32 %v3342_v57, %v4796_v19 }
 0xaa3   :  { %v2967_v50 = vrot.slane %v2966_v27, 2  ;;  %v2995_v22 = vrot.slane %v2994_v10, 4  ;;  %v2939_v51 = vrot.slane %v2938_v54, 1  ;;  %v3036_v63 = vsel %vm1545_vm3, %v3034_v20, %v2910_v42 }
 0xaa4   :  { %v3023_v49 = vsel %vm397_vm11, %v3012_v4, 0.0  ;;  %v3055_v36 = vadd.f32 %v3053_v21, %v5144_v59 }
 0xaa5   :  { %v2968_v48 = vadd.f32 %v2967_v50, %v2966_v27  ;;  %v2996_v2 = vadd.f32 %v2995_v22, %v2994_v10  ;;  %v3024_v46 = vadd.f32 %v3023_v49, %v3022_v45  ;;  %v2940_v33 = vadd.f32 %v2939_v51, %v2938_v54  ;;  %v3076_v18 = vpop.permute.xlu1 %3075  ;;  %v3516_v54 = vld [vmem:[#allocation2] sm:$0xff]   ;;  %v3517_v45 = vld [vmem:[#allocation2 + $0x8] sm:$0xff]  }
 0xaa6   :  { %v3079_v11 = vmul.f32 %v3074_v28, %v3055_v36  ;;  %3471 = vmatpush3.bf16.msra.mxu0 %v3516_v54 }
 0xaa7   :  { %v2997_v60 = vrot.slane %v2996_v2, 2  ;;  %v3025_v23 = vrot.slane %v3024_v46, 4  ;;  %v2969_v53 = vrot.slane %v2968_v48, 1  ;;  %v3038_v3 = vsel %vm1548_vm12, %v3036_v63, %v2940_v33  ;;  %3472 = vmatprep.subr.bf16.mxu0 %v5361_v13  ;;  %v3359_v13 = vld [vmem:[%s5279_s14] ss:$0 sm:$0xff] }
 0xaa9   :  { %v2998_v24 = vadd.f32 %v2997_v60, %v2996_v2  ;;  %v3026_v26 = vadd.f32 %v3025_v23, %v3024_v46  ;;  %v2970_v58 = vadd.f32 %v2969_v53, %v2968_v48  ;;  %v3358_v60 = vld [vmem:[%s5278_s13] ss:$0 sm:$0xff]  ;;  %s3772_s13 = scalar_lea.vmem %s3272_s24, 256 }
 0xaaa   :  { %3473 = vmatpush3.bf16.msra.mxu0 %v3517_v45  ;;  %p3773_p10 = scmp.ne.s32.totalorder %s3272_s24, %s3772_s13  ;;  %p3778_p12 = scmp.lt.s32.totalorder %s3772_s13, %s3772_s13 }
 0xaab   :  { %v2999_v31 = vrot.slane %v2998_v24, 1  ;;  %v3027_v5 = vrot.slane %v3026_v26, 2  ;;  %v3040_v62 = vsel %vm1551_vm13, %v3038_v3, %v2970_v58 }
 0xaac   :  { %p3779_p13 = por %p3778_p12, %p3777_p11 }
 0xaad   :  { %v3028_v6 = vadd.f32 %v3027_v5, %v3026_v26  ;;  %v3000_v40 = vadd.f32 %v2999_v31, %v2998_v24 }
 0xaae   :  { %p3780_p0 = pnand %p3779_p13, %p3773_p10 }
 0xaaf   :  { %v3029_v14 = vrot.slane %v3028_v6, 1  ;;  %v3042_v16 = vsel %vm1554_vm14, %v3040_v62, %v3000_v40 }
 0xab1   :  { %v3030_v37 = vadd.f32 %v3029_v14, %v3028_v6 }
 0xab3   :  { %v3044_v1 = vsel %vm1557_vm15, %v3042_v16, %v3030_v37 }
 0xab4   :  { %v3056_v56 = vadd.f32 %v3054_v44, %v3044_v1 }
 0xab6   :  { %v3080_v52 = vmul.f32 %v3076_v18, %v3056_v56 }
 0xab8   :  { %v3081_v55 = vpack.c.bf16 %v3080_v52, %v3079_v11 }
 0xaba   :  { %3467 = vmatmul.mubr.msk.bf16.vlgmr.msra.gmra.mrb[12].mxu1 %vm397_vm11, %v3081_v55 }
 0xb8d   :  { %v3152_v15 = vpop.f32.mrb[12].mxu1 }
 0xb8e   :  { %v3153_v39 = vadd.f32 %v3152_v15, %v4710_v47  ;;  %v3468_v19 = vpop.f32.mrb[13].mxu1 }
 0xb8f   :  { %v3155_v0 = vpop.f32.mrb[14].mxu1 }
 0xb90   :  { %v3156_v7 = vadd.f32 %v3155_v0, %v4713_v29  ;;  %v3469_v30 = vpop.f32.mrb[15].mxu1  ;;  %v3161_v27 = vsel %vm184_vm4, %v3153_v39, 0.0 }
 0xb91   :  { %3162 = vadd.xlane.f32.xlu0 %v3161_v27 }
 0xb92   :  { %v3164_v59 = vsel %vm184_vm4, %v3156_v7, 0.0 }
 0xb93   :  { %3165 = vadd.xlane.f32.xlu1 %v3164_v59 }
 0xc1e   :  { %v3163_v10 = vpop.xlane.xlu0 %3162 }
 0xc1f   :  { %v3167_v38 = vmul.f32 0.03125, %v3163_v10 }
 0xc20   :  { %v3166_v32 = vpop.xlane.xlu1 %3165 }
 0xc21   :  { %v3169_v4 = vsub.f32 %v3153_v39, %v3167_v38  ;;  %v3168_v35 = vmul.f32 0.03125, %v3166_v32 }
 0xc23   :  { %v3170_v34 = vsub.f32 %v3156_v7, %v3168_v35  ;;  %v3171_v50 = vmul.f32 %v3169_v4, %v3169_v4 }
 0xc25   :  { %v3173_v47 = vsel %vm184_vm4, %v3171_v50, 0.0  ;;  %v3172_v22 = vmul.f32 %v3170_v34, %v3170_v34 }
 0xc26   :  { %3174 = vadd.xlane.f32.xlu0 %v3173_v47 }
 0xc27   :  { %v3176_v29 = vsel %vm184_vm4, %v3172_v22, 0.0 }
 0xc2a   :  { %3177 = vadd.xlane.f32.xlu0 %v3176_v29 }
 0xcb3   :  { %v3175_v49 = vpop.xlane.xlu0 %3174 }
 0xcb4   :  { %v3179_v41 = vmul.f32 0.03125, %v3175_v49 }
 0xcb6   :  { %v3181_v48 = vadd.f32 1e-05, %v3179_v41 }
 0xcb7   :  { %v3178_v2 = vpop.xlane.xlu0 %3177 }
 0xcb8   :  { %3702 = vrsqrt.f32 %v3181_v48  ;;  %v3180_v46 = vmul.f32 0.03125, %v3178_v2 }
 0xcba   :  { %v3182_v12 = vadd.f32 1e-05, %v3180_v46 }
 0xcbc   :  { %3704 = vrsqrt.f32 %v3182_v12 }
 0xcc2   :  { %v3703_v25 = vpop.eup %3702 }
 0xcc3   :  { %v3185_v8 = vmul.f32 %v3703_v25, %v3169_v4 }
 0xcc5   :  { %v3193_v51 = vmul.f32 %v3358_v60, %v3185_v8 }
 0xcc6   :  { %v3705_v23 = vpop.eup %3704 }
 0xcc7   :  { %v3186_v43 = vmul.f32 %v3705_v23, %v3170_v34  ;;  %v3201_v24 = vadd.f32 %v3359_v13, %v3193_v51 }
 0xcc9   :  { %v3194_v53 = vmul.f32 %v3358_v60, %v3186_v43 }
 0xccb   :  { %v3202_v26 = vadd.f32 %v3359_v13, %v3194_v53 }
 0xccd   :  { %v3203_v9 = vpack.c.bf16 %v3202_v26, %v3201_v24 }
 0xccf   :  { %3475 = vmatmul.mubr.msk.bf16.vlgmr.msra.gmra.mrb[12].mxu0 %vm184_vm4, %v3203_v9 }
 0xda2   :  { %v3257_v61 = vpop.f32.mrb[12].mxu0 }
 0xda3   :  { %3264 = vst [vmem:[#allocation8] sm:$0xff] %v3257_v61  ;;  %v3476_v42 = vpop.f32.mrb[13].mxu0 }
 0xda4   :  { %v3260_v31 = vpop.f32.mrb[14].mxu0 }
 0xda5   :  { %3265 = vst [vmem:[#allocation8 + $0x8] sm:$0xff] %v3260_v31  ;;  %v3477_v5 = vpop.f32.mrb[15].mxu0 }
 0xda6   :  { %3783 = shalt.err (!%p3780_p0)
}
 0xda7   :  { %s3784_s26 = scalar_lea.hbm %s5280_s15, 256 }
 0xda8   :  { %p3785_p1 = scmp.ne.s32.totalorder %s5280_s15, %s3784_s26  ;;  %p3788_p2 = scmp.lt.u32.totalorder %s3784_s26, %s5280_s15 }
 0xdaa   :  { %p3790_p3 = pnand %p3788_p2, %p3785_p1 }
 0xdac   :  { %3793 = shalt.err (!%p3790_p3)
}
 0xdad   :  { %s3812_s6 = smov 128   ;;  %s3813_s7 = smov 8  }
 0xdae   :  { %3277 = dma.vmem_to_hbm [thread:$0]  %s3272_s24, 256, %s5280_s15, [#allocation4], %s3812_s6, %s3812_s6, %s3813_s7  }
 0xdaf   :  { %3798 = dma.done.wait [#allocation4], 256  }
 0xdb0   :  { %3799 = vsyncadd [#allocation4], 4294967040 }
 0xdb1   :  { %3281 = vsyncpa [#allocation3], 1 }
 0xdb2   :  { %3282 = vsyncpa [#allocation6], 1 }
 0xdb3   :  { %3283 = vsyncpa [#allocation4], 1 }

</bundles_post_ra>
